<compile_context>
chip_gen: v6e
topology: v6e:2x2x1
jax: 0.10.0
libtpu: 0.0.40
codegen_flags: <defaults>
</compile_context>

<pallas_src>
import numpy as np
import jax
import jax.numpy as jnp
from jax.experimental import pallas as pl
from jax.experimental.pallas import tpu as pltpu


# tap t = kh*3 + kw reads parity plane (kh&1)*2 + (kw&1) at static row shift
# d = (kh//2)*8 + (kw//2) inside that plane's batch-local 8x8 grid.
_TAPS = tuple(((kh & 1) * 2 + (kw & 1), (kh // 2) * 8 + (kw // 2))
              for kh in range(3) for kw in range(3))


# ----------------------------- fused Pallas kernel -------------------------- #

def _network_kernel(p1_ref, w1_ref, s2_ref, t2_ref, bl_ref, w2_hbm, wl_hbm,
                    o_ref, y1_ref, col_ref, y2_ref, w2_ref, wl_ref, sem):
    """conv1+BN+ReLU -> conv2+BN+ReLU -> linear -> softmax, all in one kernel."""
    B = o_ref.shape[0]

    # Kick off the conv2 / linear weight DMAs immediately; conv1 + the im2col build
    # hides them (w2 ~576 KB bf16, wl ~320 KB bf16).
    w2_cp = pltpu.make_async_copy(w2_hbm, w2_ref, sem.at[0])
    wl_cp = pltpu.make_async_copy(wl_hbm, wl_ref, sem.at[1])
    w2_cp.start()
    wl_cp.start()

    # conv1 + folded BN1 + ReLU.  The BN1 scale is folded into w1 and the BN1 shift
    # rides on the all-ones bias column (col 9) of the patch matrix, so parity-plane
    # ring rows (whose patch rows are all zero) come out exactly 0 -- no mask needed.
    # Row layout: r = b*256 + plane*64 + i*8 + j, plane = (h-parity, w-parity).
    y1_ref[...] = jnp.maximum(
        jnp.dot(p1_ref[...], w1_ref[...], preferred_element_type=jnp.float32), 0.0)

    # conv2 im2col: every 3x3 tap is a statically shifted (64, 128) slice of one
    # parity plane -> a single dense (B*64, 1152) @ (1152, 256) MXU matmul.
    # Reads never cross a batch block; the only wrong values land in output rows
    # with oh==7 or ow==7 on the padded 8x8 grid (finite, nulled by the zero-padded
    # linear weight below).
    for b in range(B):
        for t, (plane, d) in enumerate(_TAPS):
            src = b * 256 + plane * 64 + d
            col_ref[b * 64:(b + 1) * 64, t * 128:(t + 1) * 128] = (
                y1_ref[src:src + 64, :].astype(jnp.bfloat16))

    w2_cp.wait()
    acc = jnp.dot(col_ref[...], w2_ref[...], preferred_element_type=jnp.float32)
    # folded BN2 + ReLU epilogue in f32.
    y2_ref[...] = jnp.maximum(acc * s2_ref[...] + t2_ref[...], 0.0)

    wl_cp.wait()
    # Linear (7*7*256 -> 10): per-(batch, class) VPU multiply + reduce against the
    # lane-dense (10*64, 256) weight, then softmax over the 10 classes.
    rows = []
    for b in range(B):
        y2b = y2_ref[b * 64:(b + 1) * 64, :]                        # (64, 256) f32
        cls = []
        for c in range(10):
            w_c = wl_ref[c * 64:(c + 1) * 64, :].astype(jnp.float32)
            lane_sum = jnp.sum(y2b * w_c, axis=1, keepdims=True)    # (64, 1)
            cls.append(jnp.sum(lane_sum, axis=0, keepdims=True))    # (1, 1)
        rows.append(jnp.concatenate(cls, axis=1))                   # (1, 10)
    logits = jnp.concatenate(rows, axis=0) + bl_ref[...]            # (B, 10)
    m = jnp.max(logits, axis=-1, keepdims=True)
    e = jnp.exp(logits - m)
    o_ref[...] = e / jnp.sum(e, axis=-1, keepdims=True)


def fused_forward(p1, w1f, s2, t2, bl, w2, wl):
    B = p1.shape[0] // 256
    n = B * 64
    vmem = pl.BlockSpec(memory_space=pltpu.MemorySpace.VMEM)
    hbm = pl.BlockSpec(memory_space=pl.ANY)
    flops = (2 * p1.shape[0] * 10 * 128          # conv1
             + 2 * n * 1152 * 256                # conv2
             + 2 * B * 10 * 64 * 256)            # linear
    bytes_accessed = (p1.size * 2 + w1f.size * 2 + w2.size * 2 + wl.size * 2
                      + (s2.size + t2.size + bl.size) * 4 + B * 10 * 4)
    return pl.pallas_call(
        _network_kernel,
        out_shape=jax.ShapeDtypeStruct((B, 10), jnp.float32),
        in_specs=[vmem, vmem, vmem, vmem, vmem, hbm, hbm],
        out_specs=vmem,
        scratch_shapes=[
            pltpu.VMEM((B * 256, 128), jnp.float32),    # y1 parity planes
            pltpu.VMEM((n, 1152), jnp.bfloat16),        # conv2 im2col
            pltpu.VMEM((n, 256), jnp.float32),          # conv2 output
            pltpu.VMEM((1152, 256), jnp.bfloat16),      # w2 (manual DMA dst)
            pltpu.VMEM((640, 256), jnp.bfloat16),       # linear weight (manual DMA dst)
            pltpu.SemaphoreType.DMA((2,)),
        ],
        cost_estimate=pl.CostEstimate(flops=int(flops), transcendentals=int(B * 10),
                                      bytes_accessed=int(bytes_accessed)),
    )(p1, w1f, s2, t2, bl, w2, wl)


# ------------------------------ host-side glue ------------------------------ #

def build_gather_index():
    """Static (4*64*10,) gather map building the conv1 patch matrix in parity-plane
    order from the flattened 28x28 input.  Slot 784 = zero (conv1 padding and the
    conv2 padding ring), slot 785 = one (bias column carrying the folded BN1 shift)."""
    idx = np.full((4, 8, 8, 10), 784, dtype=np.int32)
    for plane in range(4):
        p, q = plane // 2, plane % 2
        for i in range(8):
            for j in range(8):
                oh, ow = 2 * i + p - 1, 2 * j + q - 1
                if 0 <= oh < 14 and 0 <= ow < 14:
                    idx[plane, i, j, 9] = 785
                    for kh in range(3):
                        for kw in range(3):
                            h, w = 2 * oh + kh - 1, 2 * ow + kw - 1
                            if 0 <= h < 28 and 0 <= w < 28:
                                idx[plane, i, j, kh * 3 + kw] = h * 28 + w
    return idx.reshape(-1)


def fold_bn(conv_bias, gamma, beta, running_mean, running_var, eps=1e-5):
    scale = gamma / jnp.sqrt(running_var + eps)
    shift = (conv_bias - running_mean) * scale + beta
    return scale.reshape(1, -1), shift.reshape(1, -1)


def init_params(key):
    ks = jax.random.split(key, 14)
    p = {}
    # conv1: Cin=1, Cout=128 -> im2col weight (9, 128), rows ordered (kh, kw, cin)
    p["w1"] = jax.random.normal(ks[0], (9, 128), jnp.float32) * 0.1
    p["b1"] = jax.random.normal(ks[1], (128,), jnp.float32) * 0.05
    p["g1"] = 1.0 + 0.1 * jax.random.normal(ks[2], (128,), jnp.float32)
    p["be1"] = 0.05 * jax.random.normal(ks[3], (128,), jnp.float32)
    p["m1"] = 0.05 * jax.random.normal(ks[4], (128,), jnp.float32)
    p["v1"] = 0.5 + jax.random.uniform(ks[5], (128,), jnp.float32)
    # conv2: Cin=128, Cout=256 -> im2col weight (1152, 256), rows ordered (kh, kw, cin)
    p["w2"] = jax.random.normal(ks[6], (9 * 128, 256), jnp.float32) * 0.03
    p["b2"] = jax.random.normal(ks[7], (256,), jnp.float32) * 0.05
    p["g2"] = 1.0 + 0.1 * jax.random.normal(ks[8], (256,), jnp.float32)
    p["be2"] = 0.05 * jax.random.normal(ks[9], (256,), jnp.float32)
    p["m2"] = 0.05 * jax.random.normal(ks[10], (256,), jnp.float32)
    p["v2"] = 0.5 + jax.random.uniform(ks[11], (256,), jnp.float32)
    # linear: 7*7*256 -> 10; rows ordered (C, H, W) to match torch .view on NCHW
    p["wl"] = jax.random.normal(ks[12], (256 * 7 * 7, 10), jnp.float32) * 0.01
    p["bl"] = jax.random.normal(ks[13], (1, 10), jnp.float32) * 0.01
    return p


def prepare_params(p, eps=1e-5):
    """One-time prep: fold BN into weights, cast matmul weights to bf16, re-layout
    the linear weight to (class, padded 8x8 spatial, channel) lane-dense order."""
    s1, t1 = fold_bn(p["b1"], p["g1"], p["be1"], p["m1"], p["v1"], eps)
    s2, t2 = fold_bn(p["b2"], p["g2"], p["be2"], p["m2"], p["v2"], eps)
    # BN1 folded entirely into the conv1 matmul: rows 0..8 = w1*scale, row 9 = shift.
    w1f = jnp.concatenate([p["w1"] * s1, t1], axis=0).astype(jnp.bfloat16)   # (10, 128)
    # linear weight: torch flattens NCHW (c*49 + h*7 + w); zero-pad spatial to 8x8 so
    # the conv2 garbage rows (oh==7 / ow==7) are nulled inside the kernel.
    wl4 = p["wl"].reshape(256, 7, 7, 10).transpose(3, 1, 2, 0)               # (o, h, w, c)
    wl4 = jnp.pad(wl4, ((0, 0), (0, 1), (0, 1), (0, 0)))                     # (10, 8, 8, 256)
    return {
        "idx": jnp.asarray(build_gather_index()),
        "w1f": w1f,
        "s2": s2, "t2": t2,
        "w2": p["w2"].astype(jnp.bfloat16),
        "wl": wl4.reshape(10 * 64, 256).astype(jnp.bfloat16),
        "bl": p["bl"].astype(jnp.float32),
    }


def forward(prep, x_nchw):
    B = x_nchw.shape[0]
    # Minimal host-side glue: flatten (C=1), append [zero, one] slots, one gather to
    # build the parity-plane conv1 patch matrix (rows (b, plane, i, j), 9 taps + bias).
    xf = x_nchw.reshape(B, 28 * 28)
    x2 = jnp.concatenate(
        [xf, jnp.zeros((B, 1), xf.dtype), jnp.ones((B, 1), xf.dtype)], axis=1)
    p1 = jnp.take(x2, prep["idx"], axis=1).reshape(B * 256, 10).astype(jnp.bfloat16)
    return fused_forward(p1, prep["w1f"], prep["s2"], prep["t2"], prep["bl"],
                         prep["w2"], prep["wl"])


# --------------------------- pure-JAX reference ----------------------------- #

def reference(params, x_nchw, eps=1e-5):
    def conv_bn_relu(x, w_mat, b, g, be, m, v, cin, cout):
        w = w_mat.reshape(3, 3, cin, cout)                   # HWIO
        y = jax.lax.conv_general_dilated(
            x, w, window_strides=(2, 2), padding=((1, 1), (1, 1)),
            dimension_numbers=("NHWC", "HWIO", "NHWC"))
        y = (y + b - m) / jnp.sqrt(v + eps) * g + be
        return jnp.maximum(y, 0.0)

    x = jnp.transpose(x_nchw, (0, 2, 3, 1))
    y1 = conv_bn_relu(x, params["w1"], params["b1"], params["g1"],
                      params["be1"], params["m1"], params["v1"], 1, 128)
    y2 = conv_bn_relu(y1, params["w2"], params["b2"], params["g2"],
                      params["be2"], params["m2"], params["v2"], 128, 256)
    flat = jnp.transpose(y2, (0, 3, 1, 2)).reshape(x.shape[0], -1)
    logits = flat @ params["wl"] + params["bl"]
    return jax.nn.softmax(logits, axis=-1)


if __name__ == "__main__":
    key = jax.random.PRNGKey(0)
    kx, kp = jax.random.split(key)
    B = 2
    # 28x28 spatial is forced by the 7*7*256 linear layer (two stride-2 convs).
    x = jax.random.normal(kx, (B, 1, 28, 28), jnp.float32)   # NCHW like PyTorch
    params = init_params(kp)
    prep = prepare_params(params)

    fwd = jax.jit(forward)
    out = jax.block_until_ready(fwd(prep, x))
    ref = jax.block_until_ready(reference(params, x))

    assert out.shape == (B, 10)
    assert bool(jnp.all(jnp.isfinite(out)))
    assert bool(jnp.allclose(jnp.sum(out, axis=-1), 1.0, atol=1e-3))
    assert bool(jnp.allclose(out, ref, atol=2e-2)), "mismatch vs pure-JAX reference"
    print("KERNEL_OK")
</pallas_src>

<mosaic_0001>
module attributes {stable_mosaic.version = 11 : i64} {
  func.func @_network_kernel(%arg0: memref<512x10xbf16, #tpu.memory_space<vmem>>, %arg1: memref<10x128xbf16, #tpu.memory_space<vmem>>, %arg2: memref<1x256xf32, #tpu.memory_space<vmem>>, %arg3: memref<1x256xf32, #tpu.memory_space<vmem>>, %arg4: memref<1x10xf32, #tpu.memory_space<vmem>>, %arg5: memref<1152x256xbf16, #tpu.memory_space<any>>, %arg6: memref<640x256xbf16, #tpu.memory_space<any>>, %arg7: memref<2x10xf32, #tpu.memory_space<vmem>>, %arg8: memref<512x128xf32, #tpu.memory_space<vmem>>, %arg9: memref<128x1152xbf16, #tpu.memory_space<vmem>>, %arg10: memref<128x256xf32, #tpu.memory_space<vmem>>, %arg11: memref<1152x256xbf16, #tpu.memory_space<vmem>>, %arg12: memref<640x256xbf16, #tpu.memory_space<vmem>>, %arg13: memref<2x!tpu.dma_semaphore, #tpu.memory_space<semaphore_mem>>) attributes {dimension_semantics = [], scalar_prefetch = 0 : i64, scratch_operands = 6 : i64, tpu.core_type = #tpu.core_type<tc>} {
    %c0_i32 = arith.constant 0 : i32
    %0 = tpu.memref_slice %arg13[%c0_i32] : memref<2x!tpu.dma_semaphore, #tpu.memory_space<semaphore_mem>> -> memref<1x!tpu.dma_semaphore, #tpu.memory_space<semaphore_mem>>
    %1 = tpu.memref_squeeze %0 : memref<1x!tpu.dma_semaphore, #tpu.memory_space<semaphore_mem>> -> memref<!tpu.dma_semaphore, #tpu.memory_space<semaphore_mem>>
    tpu.enqueue_dma source(%arg5 : memref<1152x256xbf16, #tpu.memory_space<any>>) target(%arg11 : memref<1152x256xbf16, #tpu.memory_space<vmem>>) target_semaphore(%1 : memref<!tpu.dma_semaphore, #tpu.memory_space<semaphore_mem>>)
    %c1_i32 = arith.constant 1 : i32
    %2 = tpu.memref_slice %arg13[%c1_i32] : memref<2x!tpu.dma_semaphore, #tpu.memory_space<semaphore_mem>> -> memref<1x!tpu.dma_semaphore, #tpu.memory_space<semaphore_mem>>
    %3 = tpu.memref_squeeze %2 : memref<1x!tpu.dma_semaphore, #tpu.memory_space<semaphore_mem>> -> memref<!tpu.dma_semaphore, #tpu.memory_space<semaphore_mem>>
    tpu.enqueue_dma source(%arg6 : memref<640x256xbf16, #tpu.memory_space<any>>) target(%arg12 : memref<640x256xbf16, #tpu.memory_space<vmem>>) target_semaphore(%3 : memref<!tpu.dma_semaphore, #tpu.memory_space<semaphore_mem>>)
    %c0 = arith.constant 0 : index
    %c0_0 = arith.constant 0 : index
    %4 = vector.load %arg0[%c0, %c0_0] : memref<512x10xbf16, #tpu.memory_space<vmem>>, vector<512x10xbf16>
    %c0_1 = arith.constant 0 : index
    %c0_2 = arith.constant 0 : index
    %5 = vector.load %arg1[%c0_1, %c0_2] : memref<10x128xbf16, #tpu.memory_space<vmem>>, vector<10x128xbf16>
    %cst = arith.constant dense<0.000000e+00> : vector<512x128xf32>
    %6 = tpu.matmul %4, %5, %cst {dimension_numbers = #tpu.dot_dimension_numbers<[1], [0], [0], [1], [0, 0, 1, 1], [], []>} : vector<512x10xbf16>, vector<10x128xbf16>, vector<512x128xf32> -> vector<512x128xf32>
    %cst_3 = arith.constant 0.000000e+00 : f32
    %7 = vector.broadcast %cst_3 : f32 to vector<512x128xf32>
    %8 = arith.maximumf %6, %7 : vector<512x128xf32>
    %c0_4 = arith.constant 0 : index
    %c0_5 = arith.constant 0 : index
    %9 = vector.load %arg8[%c0_4, %c0_5] : memref<512x128xf32, #tpu.memory_space<vmem>>, vector<512x128xf32>
    tpu.vector_store %arg8[%c0_4, %c0_5], %8 {strides = array<i32>} : memref<512x128xf32, #tpu.memory_space<vmem>>, vector<512x128xf32>,
    %c0_6 = arith.constant 0 : index
    %c0_7 = arith.constant 0 : index
    %10 = vector.load %arg8[%c0_6, %c0_7] : memref<512x128xf32, #tpu.memory_space<vmem>>, vector<64x128xf32>
    %11 = arith.truncf %10 : vector<64x128xf32> to vector<64x128xbf16>
    %c0_8 = arith.constant 0 : index
    %c0_9 = arith.constant 0 : index
    %12 = vector.load %arg9[%c0_8, %c0_9] : memref<128x1152xbf16, #tpu.memory_space<vmem>>, vector<64x128xbf16>
    tpu.vector_store %arg9[%c0_8, %c0_9], %11 {strides = array<i32>} : memref<128x1152xbf16, #tpu.memory_space<vmem>>, vector<64x128xbf16>,
    %c64 = arith.constant 64 : index
    %c0_10 = arith.constant 0 : index
    %13 = vector.load %arg8[%c64, %c0_10] : memref<512x128xf32, #tpu.memory_space<vmem>>, vector<64x128xf32>
    %14 = arith.truncf %13 : vector<64x128xf32> to vector<64x128xbf16>
    %c0_11 = arith.constant 0 : index
    %c128 = arith.constant 128 : index
    %15 = vector.load %arg9[%c0_11, %c128] : memref<128x1152xbf16, #tpu.memory_space<vmem>>, vector<64x128xbf16>
    tpu.vector_store %arg9[%c0_11, %c128], %14 {strides = array<i32>} : memref<128x1152xbf16, #tpu.memory_space<vmem>>, vector<64x128xbf16>,
    %c1 = arith.constant 1 : index
    %c0_12 = arith.constant 0 : index
    %16 = vector.load %arg8[%c1, %c0_12] : memref<512x128xf32, #tpu.memory_space<vmem>>, vector<64x128xf32>
    %17 = arith.truncf %16 : vector<64x128xf32> to vector<64x128xbf16>
    %c0_13 = arith.constant 0 : index
    %c256 = arith.constant 256 : index
    %18 = vector.load %arg9[%c0_13, %c256] : memref<128x1152xbf16, #tpu.memory_space<vmem>>, vector<64x128xbf16>
    tpu.vector_store %arg9[%c0_13, %c256], %17 {strides = array<i32>} : memref<128x1152xbf16, #tpu.memory_space<vmem>>, vector<64x128xbf16>,
    %c128_14 = arith.constant 128 : index
    %c0_15 = arith.constant 0 : index
    %19 = vector.load %arg8[%c128_14, %c0_15] : memref<512x128xf32, #tpu.memory_space<vmem>>, vector<64x128xf32>
    %20 = arith.truncf %19 : vector<64x128xf32> to vector<64x128xbf16>
    %c0_16 = arith.constant 0 : index
    %c384 = arith.constant 384 : index
    %21 = vector.load %arg9[%c0_16, %c384] : memref<128x1152xbf16, #tpu.memory_space<vmem>>, vector<64x128xbf16>
    tpu.vector_store %arg9[%c0_16, %c384], %20 {strides = array<i32>} : memref<128x1152xbf16, #tpu.memory_space<vmem>>, vector<64x128xbf16>,
    %c192 = arith.constant 192 : index
    %c0_17 = arith.constant 0 : index
    %22 = vector.load %arg8[%c192, %c0_17] : memref<512x128xf32, #tpu.memory_space<vmem>>, vector<64x128xf32>
    %23 = arith.truncf %22 : vector<64x128xf32> to vector<64x128xbf16>
    %c0_18 = arith.constant 0 : index
    %c512 = arith.constant 512 : index
    %24 = vector.load %arg9[%c0_18, %c512] : memref<128x1152xbf16, #tpu.memory_space<vmem>>, vector<64x128xbf16>
    tpu.vector_store %arg9[%c0_18, %c512], %23 {strides = array<i32>} : memref<128x1152xbf16, #tpu.memory_space<vmem>>, vector<64x128xbf16>,
    %c129 = arith.constant 129 : index
    %c0_19 = arith.constant 0 : index
    %25 = vector.load %arg8[%c129, %c0_19] : memref<512x128xf32, #tpu.memory_space<vmem>>, vector<64x128xf32>
    %26 = arith.truncf %25 : vector<64x128xf32> to vector<64x128xbf16>
    %c0_20 = arith.constant 0 : index
    %c640 = arith.constant 640 : index
    %27 = vector.load %arg9[%c0_20, %c640] : memref<128x1152xbf16, #tpu.memory_space<vmem>>, vector<64x128xbf16>
    tpu.vector_store %arg9[%c0_20, %c640], %26 {strides = array<i32>} : memref<128x1152xbf16, #tpu.memory_space<vmem>>, vector<64x128xbf16>,
    %c8 = arith.constant 8 : index
    %c0_21 = arith.constant 0 : index
    %28 = vector.load %arg8[%c8, %c0_21] : memref<512x128xf32, #tpu.memory_space<vmem>>, vector<64x128xf32>
    %29 = arith.truncf %28 : vector<64x128xf32> to vector<64x128xbf16>
    %c0_22 = arith.constant 0 : index
    %c768 = arith.constant 768 : index
    %30 = vector.load %arg9[%c0_22, %c768] : memref<128x1152xbf16, #tpu.memory_space<vmem>>, vector<64x128xbf16>
    tpu.vector_store %arg9[%c0_22, %c768], %29 {strides = array<i32>} : memref<128x1152xbf16, #tpu.memory_space<vmem>>, vector<64x128xbf16>,
    %c72 = arith.constant 72 : index
    %c0_23 = arith.constant 0 : index
    %31 = vector.load %arg8[%c72, %c0_23] : memref<512x128xf32, #tpu.memory_space<vmem>>, vector<64x128xf32>
    %32 = arith.truncf %31 : vector<64x128xf32> to vector<64x128xbf16>
    %c0_24 = arith.constant 0 : index
    %c896 = arith.constant 896 : index
    %33 = vector.load %arg9[%c0_24, %c896] : memref<128x1152xbf16, #tpu.memory_space<vmem>>, vector<64x128xbf16>
    tpu.vector_store %arg9[%c0_24, %c896], %32 {strides = array<i32>} : memref<128x1152xbf16, #tpu.memory_space<vmem>>, vector<64x128xbf16>,
    %c9 = arith.constant 9 : index
    %c0_25 = arith.constant 0 : index
    %34 = vector.load %arg8[%c9, %c0_25] : memref<512x128xf32, #tpu.memory_space<vmem>>, vector<64x128xf32>
    %35 = arith.truncf %34 : vector<64x128xf32> to vector<64x128xbf16>
    %c0_26 = arith.constant 0 : index
    %c1024 = arith.constant 1024 : index
    %36 = vector.load %arg9[%c0_26, %c1024] : memref<128x1152xbf16, #tpu.memory_space<vmem>>, vector<64x128xbf16>
    tpu.vector_store %arg9[%c0_26, %c1024], %35 {strides = array<i32>} : memref<128x1152xbf16, #tpu.memory_space<vmem>>, vector<64x128xbf16>,
    %c256_27 = arith.constant 256 : index
    %c0_28 = arith.constant 0 : index
    %37 = vector.load %arg8[%c256_27, %c0_28] : memref<512x128xf32, #tpu.memory_space<vmem>>, vector<64x128xf32>
    %38 = arith.truncf %37 : vector<64x128xf32> to vector<64x128xbf16>
    %c64_29 = arith.constant 64 : index
    %c0_30 = arith.constant 0 : index
    %39 = vector.load %arg9[%c64_29, %c0_30] : memref<128x1152xbf16, #tpu.memory_space<vmem>>, vector<64x128xbf16>
    tpu.vector_store %arg9[%c64_29, %c0_30], %38 {strides = array<i32>} : memref<128x1152xbf16, #tpu.memory_space<vmem>>, vector<64x128xbf16>,
    %c320 = arith.constant 320 : index
    %c0_31 = arith.constant 0 : index
    %40 = vector.load %arg8[%c320, %c0_31] : memref<512x128xf32, #tpu.memory_space<vmem>>, vector<64x128xf32>
    %41 = arith.truncf %40 : vector<64x128xf32> to vector<64x128xbf16>
    %c64_32 = arith.constant 64 : index
    %c128_33 = arith.constant 128 : index
    %42 = vector.load %arg9[%c64_32, %c128_33] : memref<128x1152xbf16, #tpu.memory_space<vmem>>, vector<64x128xbf16>
    tpu.vector_store %arg9[%c64_32, %c128_33], %41 {strides = array<i32>} : memref<128x1152xbf16, #tpu.memory_space<vmem>>, vector<64x128xbf16>,
    %c257 = arith.constant 257 : index
    %c0_34 = arith.constant 0 : index
    %43 = vector.load %arg8[%c257, %c0_34] : memref<512x128xf32, #tpu.memory_space<vmem>>, vector<64x128xf32>
    %44 = arith.truncf %43 : vector<64x128xf32> to vector<64x128xbf16>
    %c64_35 = arith.constant 64 : index
    %c256_36 = arith.constant 256 : index
    %45 = vector.load %arg9[%c64_35, %c256_36] : memref<128x1152xbf16, #tpu.memory_space<vmem>>, vector<64x128xbf16>
    tpu.vector_store %arg9[%c64_35, %c256_36], %44 {strides = array<i32>} : memref<128x1152xbf16, #tpu.memory_space<vmem>>, vector<64x128xbf16>,
    %c384_37 = arith.constant 384 : index
    %c0_38 = arith.constant 0 : index
    %46 = vector.load %arg8[%c384_37, %c0_38] : memref<512x128xf32, #tpu.memory_space<vmem>>, vector<64x128xf32>
    %47 = arith.truncf %46 : vector<64x128xf32> to vector<64x128xbf16>
    %c64_39 = arith.constant 64 : index
    %c384_40 = arith.constant 384 : index
    %48 = vector.load %arg9[%c64_39, %c384_40] : memref<128x1152xbf16, #tpu.memory_space<vmem>>, vector<64x128xbf16>
    tpu.vector_store %arg9[%c64_39, %c384_40], %47 {strides = array<i32>} : memref<128x1152xbf16, #tpu.memory_space<vmem>>, vector<64x128xbf16>,
    %c448 = arith.constant 448 : index
    %c0_41 = arith.constant 0 : index
    %49 = vector.load %arg8[%c448, %c0_41] : memref<512x128xf32, #tpu.memory_space<vmem>>, vector<64x128xf32>
    %50 = arith.truncf %49 : vector<64x128xf32> to vector<64x128xbf16>
    %c64_42 = arith.constant 64 : index
    %c512_43 = arith.constant 512 : index
    %51 = vector.load %arg9[%c64_42, %c512_43] : memref<128x1152xbf16, #tpu.memory_space<vmem>>, vector<64x128xbf16>
    tpu.vector_store %arg9[%c64_42, %c512_43], %50 {strides = array<i32>} : memref<128x1152xbf16, #tpu.memory_space<vmem>>, vector<64x128xbf16>,
    %c385 = arith.constant 385 : index
    %c0_44 = arith.constant 0 : index
    %52 = vector.load %arg8[%c385, %c0_44] : memref<512x128xf32, #tpu.memory_space<vmem>>, vector<64x128xf32>
    %53 = arith.truncf %52 : vector<64x128xf32> to vector<64x128xbf16>
    %c64_45 = arith.constant 64 : index
    %c640_46 = arith.constant 640 : index
    %54 = vector.load %arg9[%c64_45, %c640_46] : memref<128x1152xbf16, #tpu.memory_space<vmem>>, vector<64x128xbf16>
    tpu.vector_store %arg9[%c64_45, %c640_46], %53 {strides = array<i32>} : memref<128x1152xbf16, #tpu.memory_space<vmem>>, vector<64x128xbf16>,
    %c264 = arith.constant 264 : index
    %c0_47 = arith.constant 0 : index
    %55 = vector.load %arg8[%c264, %c0_47] : memref<512x128xf32, #tpu.memory_space<vmem>>, vector<64x128xf32>
    %56 = arith.truncf %55 : vector<64x128xf32> to vector<64x128xbf16>
    %c64_48 = arith.constant 64 : index
    %c768_49 = arith.constant 768 : index
    %57 = vector.load %arg9[%c64_48, %c768_49] : memref<128x1152xbf16, #tpu.memory_space<vmem>>, vector<64x128xbf16>
    tpu.vector_store %arg9[%c64_48, %c768_49], %56 {strides = array<i32>} : memref<128x1152xbf16, #tpu.memory_space<vmem>>, vector<64x128xbf16>,
    %c328 = arith.constant 328 : index
    %c0_50 = arith.constant 0 : index
    %58 = vector.load %arg8[%c328, %c0_50] : memref<512x128xf32, #tpu.memory_space<vmem>>, vector<64x128xf32>
    %59 = arith.truncf %58 : vector<64x128xf32> to vector<64x128xbf16>
    %c64_51 = arith.constant 64 : index
    %c896_52 = arith.constant 896 : index
    %60 = vector.load %arg9[%c64_51, %c896_52] : memref<128x1152xbf16, #tpu.memory_space<vmem>>, vector<64x128xbf16>
    tpu.vector_store %arg9[%c64_51, %c896_52], %59 {strides = array<i32>} : memref<128x1152xbf16, #tpu.memory_space<vmem>>, vector<64x128xbf16>,
    %c265 = arith.constant 265 : index
    %c0_53 = arith.constant 0 : index
    %61 = vector.load %arg8[%c265, %c0_53] : memref<512x128xf32, #tpu.memory_space<vmem>>, vector<64x128xf32>
    %62 = arith.truncf %61 : vector<64x128xf32> to vector<64x128xbf16>
    %c64_54 = arith.constant 64 : index
    %c1024_55 = arith.constant 1024 : index
    %63 = vector.load %arg9[%c64_54, %c1024_55] : memref<128x1152xbf16, #tpu.memory_space<vmem>>, vector<64x128xbf16>
    tpu.vector_store %arg9[%c64_54, %c1024_55], %62 {strides = array<i32>} : memref<128x1152xbf16, #tpu.memory_space<vmem>>, vector<64x128xbf16>,
    %c0_i32_56 = arith.constant 0 : i32
    %64 = tpu.memref_slice %arg13[%c0_i32_56] : memref<2x!tpu.dma_semaphore, #tpu.memory_space<semaphore_mem>> -> memref<1x!tpu.dma_semaphore, #tpu.memory_space<semaphore_mem>>
    %65 = tpu.memref_squeeze %64 : memref<1x!tpu.dma_semaphore, #tpu.memory_space<semaphore_mem>> -> memref<!tpu.dma_semaphore, #tpu.memory_space<semaphore_mem>>
    tpu.wait_dma2 semaphore(%65 : memref<!tpu.dma_semaphore, #tpu.memory_space<semaphore_mem>>) src(%arg5 : memref<1152x256xbf16, #tpu.memory_space<any>>) dst(%arg11 : memref<1152x256xbf16, #tpu.memory_space<vmem>>)
    %c0_57 = arith.constant 0 : index
    %c0_58 = arith.constant 0 : index
    %66 = vector.load %arg9[%c0_57, %c0_58] : memref<128x1152xbf16, #tpu.memory_space<vmem>>, vector<128x1152xbf16>
    %c0_59 = arith.constant 0 : index
    %c0_60 = arith.constant 0 : index
    %67 = vector.load %arg11[%c0_59, %c0_60] : memref<1152x256xbf16, #tpu.memory_space<vmem>>, vector<1152x256xbf16>
    %cst_61 = arith.constant dense<0.000000e+00> : vector<128x256xf32>
    %68 = tpu.matmul %66, %67, %cst_61 {dimension_numbers = #tpu.dot_dimension_numbers<[1], [0], [0], [1], [0, 0, 1, 1], [], []>} : vector<128x1152xbf16>, vector<1152x256xbf16>, vector<128x256xf32> -> vector<128x256xf32>
    %c0_62 = arith.constant 0 : index
    %c0_63 = arith.constant 0 : index
    %69 = vector.load %arg2[%c0_62, %c0_63] : memref<1x256xf32, #tpu.memory_space<vmem>>, vector<1x256xf32>
    %70 = vector.broadcast %69 : vector<1x256xf32> to vector<128x256xf32>
    %71 = arith.mulf %68, %70 : vector<128x256xf32>
    %c0_64 = arith.constant 0 : index
    %c0_65 = arith.constant 0 : index
    %72 = vector.load %arg3[%c0_64, %c0_65] : memref<1x256xf32, #tpu.memory_space<vmem>>, vector<1x256xf32>
    %73 = vector.broadcast %72 : vector<1x256xf32> to vector<128x256xf32>
    %74 = arith.addf %71, %73 : vector<128x256xf32>
    %cst_66 = arith.constant 0.000000e+00 : f32
    %75 = vector.broadcast %cst_66 : f32 to vector<128x256xf32>
    %76 = arith.maximumf %74, %75 : vector<128x256xf32>
    %c0_67 = arith.constant 0 : index
    %c0_68 = arith.constant 0 : index
    %77 = vector.load %arg10[%c0_67, %c0_68] : memref<128x256xf32, #tpu.memory_space<vmem>>, vector<128x256xf32>
    tpu.vector_store %arg10[%c0_67, %c0_68], %76 {strides = array<i32>} : memref<128x256xf32, #tpu.memory_space<vmem>>, vector<128x256xf32>,
    %c1_i32_69 = arith.constant 1 : i32
    %78 = tpu.memref_slice %arg13[%c1_i32_69] : memref<2x!tpu.dma_semaphore, #tpu.memory_space<semaphore_mem>> -> memref<1x!tpu.dma_semaphore, #tpu.memory_space<semaphore_mem>>
    %79 = tpu.memref_squeeze %78 : memref<1x!tpu.dma_semaphore, #tpu.memory_space<semaphore_mem>> -> memref<!tpu.dma_semaphore, #tpu.memory_space<semaphore_mem>>
    tpu.wait_dma2 semaphore(%79 : memref<!tpu.dma_semaphore, #tpu.memory_space<semaphore_mem>>) src(%arg6 : memref<640x256xbf16, #tpu.memory_space<any>>) dst(%arg12 : memref<640x256xbf16, #tpu.memory_space<vmem>>)
    %c0_70 = arith.constant 0 : index
    %c0_71 = arith.constant 0 : index
    %80 = vector.load %arg10[%c0_70, %c0_71] : memref<128x256xf32, #tpu.memory_space<vmem>>, vector<64x256xf32>
    %c0_72 = arith.constant 0 : index
    %c0_73 = arith.constant 0 : index
    %81 = vector.load %arg12[%c0_72, %c0_73] : memref<640x256xbf16, #tpu.memory_space<vmem>>, vector<64x256xbf16>
    %82 = arith.extf %81 : vector<64x256xbf16> to vector<64x256xf32>
    %83 = arith.mulf %80, %82 : vector<64x256xf32>
    %cst_74 = arith.constant dense<0.000000e+00> : vector<64xf32>
    %84 = vector.multi_reduction <add>, %83, %cst_74 [1] : vector<64x256xf32> to vector<64xf32>
    %85 = vector.shape_cast %84 : vector<64xf32> to vector<64x1xf32>
    %cst_75 = arith.constant dense<0.000000e+00> : vector<1xf32>
    %86 = vector.multi_reduction <add>, %85, %cst_75 [0] : vector<64x1xf32> to vector<1xf32>
    %87 = vector.shape_cast %86 : vector<1xf32> to vector<1x1xf32>
    %c64_76 = arith.constant 64 : index
    %c0_77 = arith.constant 0 : index
    %88 = vector.load %arg12[%c64_76, %c0_77] : memref<640x256xbf16, #tpu.memory_space<vmem>>, vector<64x256xbf16>
    %89 = arith.extf %88 : vector<64x256xbf16> to vector<64x256xf32>
    %90 = arith.mulf %80, %89 : vector<64x256xf32>
    %cst_78 = arith.constant dense<0.000000e+00> : vector<64xf32>
    %91 = vector.multi_reduction <add>, %90, %cst_78 [1] : vector<64x256xf32> to vector<64xf32>
    %92 = vector.shape_cast %91 : vector<64xf32> to vector<64x1xf32>
    %cst_79 = arith.constant dense<0.000000e+00> : vector<1xf32>
    %93 = vector.multi_reduction <add>, %92, %cst_79 [0] : vector<64x1xf32> to vector<1xf32>
    %94 = vector.shape_cast %93 : vector<1xf32> to vector<1x1xf32>
    %c128_80 = arith.constant 128 : index
    %c0_81 = arith.constant 0 : index
    %95 = vector.load %arg12[%c128_80, %c0_81] : memref<640x256xbf16, #tpu.memory_space<vmem>>, vector<64x256xbf16>
    %96 = arith.extf %95 : vector<64x256xbf16> to vector<64x256xf32>
    %97 = arith.mulf %80, %96 : vector<64x256xf32>
    %cst_82 = arith.constant dense<0.000000e+00> : vector<64xf32>
    %98 = vector.multi_reduction <add>, %97, %cst_82 [1] : vector<64x256xf32> to vector<64xf32>
    %99 = vector.shape_cast %98 : vector<64xf32> to vector<64x1xf32>
    %cst_83 = arith.constant dense<0.000000e+00> : vector<1xf32>
    %100 = vector.multi_reduction <add>, %99, %cst_83 [0] : vector<64x1xf32> to vector<1xf32>
    %101 = vector.shape_cast %100 : vector<1xf32> to vector<1x1xf32>
    %c192_84 = arith.constant 192 : index
    %c0_85 = arith.constant 0 : index
    %102 = vector.load %arg12[%c192_84, %c0_85] : memref<640x256xbf16, #tpu.memory_space<vmem>>, vector<64x256xbf16>
    %103 = arith.extf %102 : vector<64x256xbf16> to vector<64x256xf32>
    %104 = arith.mulf %80, %103 : vector<64x256xf32>
    %cst_86 = arith.constant dense<0.000000e+00> : vector<64xf32>
    %105 = vector.multi_reduction <add>, %104, %cst_86 [1] : vector<64x256xf32> to vector<64xf32>
    %106 = vector.shape_cast %105 : vector<64xf32> to vector<64x1xf32>
    %cst_87 = arith.constant dense<0.000000e+00> : vector<1xf32>
    %107 = vector.multi_reduction <add>, %106, %cst_87 [0] : vector<64x1xf32> to vector<1xf32>
    %108 = vector.shape_cast %107 : vector<1xf32> to vector<1x1xf32>
    %c256_88 = arith.constant 256 : index
    %c0_89 = arith.constant 0 : index
    %109 = vector.load %arg12[%c256_88, %c0_89] : memref<640x256xbf16, #tpu.memory_space<vmem>>, vector<64x256xbf16>
    %110 = arith.extf %109 : vector<64x256xbf16> to vector<64x256xf32>
    %111 = arith.mulf %80, %110 : vector<64x256xf32>
    %cst_90 = arith.constant dense<0.000000e+00> : vector<64xf32>
    %112 = vector.multi_reduction <add>, %111, %cst_90 [1] : vector<64x256xf32> to vector<64xf32>
    %113 = vector.shape_cast %112 : vector<64xf32> to vector<64x1xf32>
    %cst_91 = arith.constant dense<0.000000e+00> : vector<1xf32>
    %114 = vector.multi_reduction <add>, %113, %cst_91 [0] : vector<64x1xf32> to vector<1xf32>
    %115 = vector.shape_cast %114 : vector<1xf32> to vector<1x1xf32>
    %c320_92 = arith.constant 320 : index
    %c0_93 = arith.constant 0 : index
    %116 = vector.load %arg12[%c320_92, %c0_93] : memref<640x256xbf16, #tpu.memory_space<vmem>>, vector<64x256xbf16>
    %117 = arith.extf %116 : vector<64x256xbf16> to vector<64x256xf32>
    %118 = arith.mulf %80, %117 : vector<64x256xf32>
    %cst_94 = arith.constant dense<0.000000e+00> : vector<64xf32>
    %119 = vector.multi_reduction <add>, %118, %cst_94 [1] : vector<64x256xf32> to vector<64xf32>
    %120 = vector.shape_cast %119 : vector<64xf32> to vector<64x1xf32>
    %cst_95 = arith.constant dense<0.000000e+00> : vector<1xf32>
    %121 = vector.multi_reduction <add>, %120, %cst_95 [0] : vector<64x1xf32> to vector<1xf32>
    %122 = vector.shape_cast %121 : vector<1xf32> to vector<1x1xf32>
    %c384_96 = arith.constant 384 : index
    %c0_97 = arith.constant 0 : index
    %123 = vector.load %arg12[%c384_96, %c0_97] : memref<640x256xbf16, #tpu.memory_space<vmem>>, vector<64x256xbf16>
    %124 = arith.extf %123 : vector<64x256xbf16> to vector<64x256xf32>
    %125 = arith.mulf %80, %124 : vector<64x256xf32>
    %cst_98 = arith.constant dense<0.000000e+00> : vector<64xf32>
    %126 = vector.multi_reduction <add>, %125, %cst_98 [1] : vector<64x256xf32> to vector<64xf32>
    %127 = vector.shape_cast %126 : vector<64xf32> to vector<64x1xf32>
    %cst_99 = arith.constant dense<0.000000e+00> : vector<1xf32>
    %128 = vector.multi_reduction <add>, %127, %cst_99 [0] : vector<64x1xf32> to vector<1xf32>
    %129 = vector.shape_cast %128 : vector<1xf32> to vector<1x1xf32>
    %c448_100 = arith.constant 448 : index
    %c0_101 = arith.constant 0 : index
    %130 = vector.load %arg12[%c448_100, %c0_101] : memref<640x256xbf16, #tpu.memory_space<vmem>>, vector<64x256xbf16>
    %131 = arith.extf %130 : vector<64x256xbf16> to vector<64x256xf32>
    %132 = arith.mulf %80, %131 : vector<64x256xf32>
    %cst_102 = arith.constant dense<0.000000e+00> : vector<64xf32>
    %133 = vector.multi_reduction <add>, %132, %cst_102 [1] : vector<64x256xf32> to vector<64xf32>
    %134 = vector.shape_cast %133 : vector<64xf32> to vector<64x1xf32>
    %cst_103 = arith.constant dense<0.000000e+00> : vector<1xf32>
    %135 = vector.multi_reduction <add>, %134, %cst_103 [0] : vector<64x1xf32> to vector<1xf32>
    %136 = vector.shape_cast %135 : vector<1xf32> to vector<1x1xf32>
    %c512_104 = arith.constant 512 : index
    %c0_105 = arith.constant 0 : index
    %137 = vector.load %arg12[%c512_104, %c0_105] : memref<640x256xbf16, #tpu.memory_space<vmem>>, vector<64x256xbf16>
    %138 = arith.extf %137 : vector<64x256xbf16> to vector<64x256xf32>
    %139 = arith.mulf %80, %138 : vector<64x256xf32>
    %cst_106 = arith.constant dense<0.000000e+00> : vector<64xf32>
    %140 = vector.multi_reduction <add>, %139, %cst_106 [1] : vector<64x256xf32> to vector<64xf32>
    %141 = vector.shape_cast %140 : vector<64xf32> to vector<64x1xf32>
    %cst_107 = arith.constant dense<0.000000e+00> : vector<1xf32>
    %142 = vector.multi_reduction <add>, %141, %cst_107 [0] : vector<64x1xf32> to vector<1xf32>
    %143 = vector.shape_cast %142 : vector<1xf32> to vector<1x1xf32>
    %c576 = arith.constant 576 : index
    %c0_108 = arith.constant 0 : index
    %144 = vector.load %arg12[%c576, %c0_108] : memref<640x256xbf16, #tpu.memory_space<vmem>>, vector<64x256xbf16>
    %145 = arith.extf %144 : vector<64x256xbf16> to vector<64x256xf32>
    %146 = arith.mulf %80, %145 : vector<64x256xf32>
    %cst_109 = arith.constant dense<0.000000e+00> : vector<64xf32>
    %147 = vector.multi_reduction <add>, %146, %cst_109 [1] : vector<64x256xf32> to vector<64xf32>
    %148 = vector.shape_cast %147 : vector<64xf32> to vector<64x1xf32>
    %cst_110 = arith.constant dense<0.000000e+00> : vector<1xf32>
    %149 = vector.multi_reduction <add>, %148, %cst_110 [0] : vector<64x1xf32> to vector<1xf32>
    %150 = vector.shape_cast %149 : vector<1xf32> to vector<1x1xf32>
    %151 = tpu.concatenate %87, %94, %101, %108, %115, %122, %129, %136, %143, %150 in 1 : vector<1x1xf32>, vector<1x1xf32>, vector<1x1xf32>, vector<1x1xf32>, vector<1x1xf32>, vector<1x1xf32>, vector<1x1xf32>, vector<1x1xf32>, vector<1x1xf32>, vector<1x1xf32> -> vector<1x10xf32>
    %c64_111 = arith.constant 64 : index
    %c0_112 = arith.constant 0 : index
    %152 = vector.load %arg10[%c64_111, %c0_112] : memref<128x256xf32, #tpu.memory_space<vmem>>, vector<64x256xf32>
    %c0_113 = arith.constant 0 : index
    %c0_114 = arith.constant 0 : index
    %153 = vector.load %arg12[%c0_113, %c0_114] : memref<640x256xbf16, #tpu.memory_space<vmem>>, vector<64x256xbf16>
    %154 = arith.extf %153 : vector<64x256xbf16> to vector<64x256xf32>
    %155 = arith.mulf %152, %154 : vector<64x256xf32>
    %cst_115 = arith.constant dense<0.000000e+00> : vector<64xf32>
    %156 = vector.multi_reduction <add>, %155, %cst_115 [1] : vector<64x256xf32> to vector<64xf32>
    %157 = vector.shape_cast %156 : vector<64xf32> to vector<64x1xf32>
    %cst_116 = arith.constant dense<0.000000e+00> : vector<1xf32>
    %158 = vector.multi_reduction <add>, %157, %cst_116 [0] : vector<64x1xf32> to vector<1xf32>
    %159 = vector.shape_cast %158 : vector<1xf32> to vector<1x1xf32>
    %c64_117 = arith.constant 64 : index
    %c0_118 = arith.constant 0 : index
    %160 = vector.load %arg12[%c64_117, %c0_118] : memref<640x256xbf16, #tpu.memory_space<vmem>>, vector<64x256xbf16>
    %161 = arith.extf %160 : vector<64x256xbf16> to vector<64x256xf32>
    %162 = arith.mulf %152, %161 : vector<64x256xf32>
    %cst_119 = arith.constant dense<0.000000e+00> : vector<64xf32>
    %163 = vector.multi_reduction <add>, %162, %cst_119 [1] : vector<64x256xf32> to vector<64xf32>
    %164 = vector.shape_cast %163 : vector<64xf32> to vector<64x1xf32>
    %cst_120 = arith.constant dense<0.000000e+00> : vector<1xf32>
    %165 = vector.multi_reduction <add>, %164, %cst_120 [0] : vector<64x1xf32> to vector<1xf32>
    %166 = vector.shape_cast %165 : vector<1xf32> to vector<1x1xf32>
    %c128_121 = arith.constant 128 : index
    %c0_122 = arith.constant 0 : index
    %167 = vector.load %arg12[%c128_121, %c0_122] : memref<640x256xbf16, #tpu.memory_space<vmem>>, vector<64x256xbf16>
    %168 = arith.extf %167 : vector<64x256xbf16> to vector<64x256xf32>
    %169 = arith.mulf %152, %168 : vector<64x256xf32>
    %cst_123 = arith.constant dense<0.000000e+00> : vector<64xf32>
    %170 = vector.multi_reduction <add>, %169, %cst_123 [1] : vector<64x256xf32> to vector<64xf32>
    %171 = vector.shape_cast %170 : vector<64xf32> to vector<64x1xf32>
    %cst_124 = arith.constant dense<0.000000e+00> : vector<1xf32>
    %172 = vector.multi_reduction <add>, %171, %cst_124 [0] : vector<64x1xf32> to vector<1xf32>
    %173 = vector.shape_cast %172 : vector<1xf32> to vector<1x1xf32>
    %c192_125 = arith.constant 192 : index
    %c0_126 = arith.constant 0 : index
    %174 = vector.load %arg12[%c192_125, %c0_126] : memref<640x256xbf16, #tpu.memory_space<vmem>>, vector<64x256xbf16>
    %175 = arith.extf %174 : vector<64x256xbf16> to vector<64x256xf32>
    %176 = arith.mulf %152, %175 : vector<64x256xf32>
    %cst_127 = arith.constant dense<0.000000e+00> : vector<64xf32>
    %177 = vector.multi_reduction <add>, %176, %cst_127 [1] : vector<64x256xf32> to vector<64xf32>
    %178 = vector.shape_cast %177 : vector<64xf32> to vector<64x1xf32>
    %cst_128 = arith.constant dense<0.000000e+00> : vector<1xf32>
    %179 = vector.multi_reduction <add>, %178, %cst_128 [0] : vector<64x1xf32> to vector<1xf32>
    %180 = vector.shape_cast %179 : vector<1xf32> to vector<1x1xf32>
    %c256_129 = arith.constant 256 : index
    %c0_130 = arith.constant 0 : index
    %181 = vector.load %arg12[%c256_129, %c0_130] : memref<640x256xbf16, #tpu.memory_space<vmem>>, vector<64x256xbf16>
    %182 = arith.extf %181 : vector<64x256xbf16> to vector<64x256xf32>
    %183 = arith.mulf %152, %182 : vector<64x256xf32>
    %cst_131 = arith.constant dense<0.000000e+00> : vector<64xf32>
    %184 = vector.multi_reduction <add>, %183, %cst_131 [1] : vector<64x256xf32> to vector<64xf32>
    %185 = vector.shape_cast %184 : vector<64xf32> to vector<64x1xf32>
    %cst_132 = arith.constant dense<0.000000e+00> : vector<1xf32>
    %186 = vector.multi_reduction <add>, %185, %cst_132 [0] : vector<64x1xf32> to vector<1xf32>
    %187 = vector.shape_cast %186 : vector<1xf32> to vector<1x1xf32>
    %c320_133 = arith.constant 320 : index
    %c0_134 = arith.constant 0 : index
    %188 = vector.load %arg12[%c320_133, %c0_134] : memref<640x256xbf16, #tpu.memory_space<vmem>>, vector<64x256xbf16>
    %189 = arith.extf %188 : vector<64x256xbf16> to vector<64x256xf32>
    %190 = arith.mulf %152, %189 : vector<64x256xf32>
    %cst_135 = arith.constant dense<0.000000e+00> : vector<64xf32>
    %191 = vector.multi_reduction <add>, %190, %cst_135 [1] : vector<64x256xf32> to vector<64xf32>
    %192 = vector.shape_cast %191 : vector<64xf32> to vector<64x1xf32>
    %cst_136 = arith.constant dense<0.000000e+00> : vector<1xf32>
    %193 = vector.multi_reduction <add>, %192, %cst_136 [0] : vector<64x1xf32> to vector<1xf32>
    %194 = vector.shape_cast %193 : vector<1xf32> to vector<1x1xf32>
    %c384_137 = arith.constant 384 : index
    %c0_138 = arith.constant 0 : index
    %195 = vector.load %arg12[%c384_137, %c0_138] : memref<640x256xbf16, #tpu.memory_space<vmem>>, vector<64x256xbf16>
    %196 = arith.extf %195 : vector<64x256xbf16> to vector<64x256xf32>
    %197 = arith.mulf %152, %196 : vector<64x256xf32>
    %cst_139 = arith.constant dense<0.000000e+00> : vector<64xf32>
    %198 = vector.multi_reduction <add>, %197, %cst_139 [1] : vector<64x256xf32> to vector<64xf32>
    %199 = vector.shape_cast %198 : vector<64xf32> to vector<64x1xf32>
    %cst_140 = arith.constant dense<0.000000e+00> : vector<1xf32>
    %200 = vector.multi_reduction <add>, %199, %cst_140 [0] : vector<64x1xf32> to vector<1xf32>
    %201 = vector.shape_cast %200 : vector<1xf32> to vector<1x1xf32>
    %c448_141 = arith.constant 448 : index
    %c0_142 = arith.constant 0 : index
    %202 = vector.load %arg12[%c448_141, %c0_142] : memref<640x256xbf16, #tpu.memory_space<vmem>>, vector<64x256xbf16>
    %203 = arith.extf %202 : vector<64x256xbf16> to vector<64x256xf32>
    %204 = arith.mulf %152, %203 : vector<64x256xf32>
    %cst_143 = arith.constant dense<0.000000e+00> : vector<64xf32>
    %205 = vector.multi_reduction <add>, %204, %cst_143 [1] : vector<64x256xf32> to vector<64xf32>
    %206 = vector.shape_cast %205 : vector<64xf32> to vector<64x1xf32>
    %cst_144 = arith.constant dense<0.000000e+00> : vector<1xf32>
    %207 = vector.multi_reduction <add>, %206, %cst_144 [0] : vector<64x1xf32> to vector<1xf32>
    %208 = vector.shape_cast %207 : vector<1xf32> to vector<1x1xf32>
    %c512_145 = arith.constant 512 : index
    %c0_146 = arith.constant 0 : index
    %209 = vector.load %arg12[%c512_145, %c0_146] : memref<640x256xbf16, #tpu.memory_space<vmem>>, vector<64x256xbf16>
    %210 = arith.extf %209 : vector<64x256xbf16> to vector<64x256xf32>
    %211 = arith.mulf %152, %210 : vector<64x256xf32>
    %cst_147 = arith.constant dense<0.000000e+00> : vector<64xf32>
    %212 = vector.multi_reduction <add>, %211, %cst_147 [1] : vector<64x256xf32> to vector<64xf32>
    %213 = vector.shape_cast %212 : vector<64xf32> to vector<64x1xf32>
    %cst_148 = arith.constant dense<0.000000e+00> : vector<1xf32>
    %214 = vector.multi_reduction <add>, %213, %cst_148 [0] : vector<64x1xf32> to vector<1xf32>
    %215 = vector.shape_cast %214 : vector<1xf32> to vector<1x1xf32>
    %c576_149 = arith.constant 576 : index
    %c0_150 = arith.constant 0 : index
    %216 = vector.load %arg12[%c576_149, %c0_150] : memref<640x256xbf16, #tpu.memory_space<vmem>>, vector<64x256xbf16>
    %217 = arith.extf %216 : vector<64x256xbf16> to vector<64x256xf32>
    %218 = arith.mulf %152, %217 : vector<64x256xf32>
    %cst_151 = arith.constant dense<0.000000e+00> : vector<64xf32>
    %219 = vector.multi_reduction <add>, %218, %cst_151 [1] : vector<64x256xf32> to vector<64xf32>
    %220 = vector.shape_cast %219 : vector<64xf32> to vector<64x1xf32>
    %cst_152 = arith.constant dense<0.000000e+00> : vector<1xf32>
    %221 = vector.multi_reduction <add>, %220, %cst_152 [0] : vector<64x1xf32> to vector<1xf32>
    %222 = vector.shape_cast %221 : vector<1xf32> to vector<1x1xf32>
    %223 = tpu.concatenate %159, %166, %173, %180, %187, %194, %201, %208, %215, %222 in 1 : vector<1x1xf32>, vector<1x1xf32>, vector<1x1xf32>, vector<1x1xf32>, vector<1x1xf32>, vector<1x1xf32>, vector<1x1xf32>, vector<1x1xf32>, vector<1x1xf32>, vector<1x1xf32> -> vector<1x10xf32>
    %224 = tpu.concatenate %151, %223 in 0 : vector<1x10xf32>, vector<1x10xf32> -> vector<2x10xf32>
    %c0_153 = arith.constant 0 : index
    %c0_154 = arith.constant 0 : index
    %225 = vector.load %arg4[%c0_153, %c0_154] : memref<1x10xf32, #tpu.memory_space<vmem>>, vector<1x10xf32>
    %226 = vector.broadcast %225 : vector<1x10xf32> to vector<2x10xf32>
    %227 = arith.addf %224, %226 : vector<2x10xf32>
    %cst_155 = arith.constant dense<0xFF800000> : vector<2xf32>
    %228 = vector.multi_reduction <maximumf>, %227, %cst_155 [1] : vector<2x10xf32> to vector<2xf32>
    %229 = vector.shape_cast %228 : vector<2xf32> to vector<2x1xf32>
    %230 = vector.broadcast %229 : vector<2x1xf32> to vector<2x10xf32>
    %231 = arith.subf %227, %230 : vector<2x10xf32>
    %232 = math.exp %231 : vector<2x10xf32>
    %cst_156 = arith.constant dense<0.000000e+00> : vector<2xf32>
    %233 = vector.multi_reduction <add>, %232, %cst_156 [1] : vector<2x10xf32> to vector<2xf32>
    %234 = vector.shape_cast %233 : vector<2xf32> to vector<2x1xf32>
    %235 = vector.broadcast %234 : vector<2x1xf32> to vector<2x10xf32>
    %236 = arith.divf %232, %235 : vector<2x10xf32>
    %c0_157 = arith.constant 0 : index
    %c0_158 = arith.constant 0 : index
    %237 = vector.load %arg7[%c0_157, %c0_158] : memref<2x10xf32, #tpu.memory_space<vmem>>, vector<2x10xf32>
    tpu.vector_store %arg7[%c0_157, %c0_158], %236 {strides = array<i32>} : memref<2x10xf32, #tpu.memory_space<vmem>>, vector<2x10xf32>,
    return
  }
}

</mosaic_0001>

<bundles_post_ra>
// kernel: forward.1
= control target key start
LH: loop header
LB: loop body
LE: loop exit
PB: predicated region body
PF: predicated region fallthrough
CT: control target
= control target key end

     0   :  { %12 = vsyncpa [#allocation9], 0  ;;  %s9757_s0 = inlined_call_operand.vmem [shape: bf16[512,10], index: 0, kind: input, shape index: {}]   ;;  %s9758_s1 = inlined_call_operand.vmem [shape: bf16[10,128], index: 1, kind: input, shape index: {}]   ;;  %s9759_s2 = inlined_call_operand.vmem [shape: f32[1,256], index: 2, kind: input, shape index: {}]   ;;  %s9760_s3 = inlined_call_operand.vmem [shape: f32[1,256], index: 3, kind: input, shape index: {}]   ;;  %s9761_s4 = inlined_call_operand.vmem [shape: f32[1,10], index: 4, kind: input, shape index: {}]   ;;  %s9762_s5 = inlined_call_operand.vmem [shape: bf16[1152,256], index: 5, kind: input, shape index: {}]   ;;  %s9763_s6 = inlined_call_operand.vmem [shape: bf16[640,256], index: 6, kind: input, shape index: {}]   ;;  %s9764_s7 = inlined_call_operand.hbm [shape: f32[2,10], index: 7, kind: output, shape index: {}]  }
   0x1   :  { %v6519_v0 = vld [vmem:[%s9762_s5] sm:$0xff]  ;;  %v6524_v1 = vld [vmem:[%s9762_s5 + $0x8] sm:$0xff]  ;;  %v6529_v2 = vld [vmem:[%s9762_s5 + $0x10] sm:$0xff] }
   0x2   :  { %v6534_v3 = vld [vmem:[%s9762_s5 + $0x18] sm:$0xff]  ;;  %v6539_v4 = vld [vmem:[%s9762_s5 + $0x20] sm:$0xff]  ;;  %v6544_v5 = vld [vmem:[%s9762_s5 + $0x28] sm:$0xff] }
   0x3   :  { %v6549_v6 = vld [vmem:[%s9762_s5 + $0x30] sm:$0xff]  ;;  %v6554_v7 = vld [vmem:[%s9762_s5 + $0x38] sm:$0xff]  ;;  %v6559_v8 = vld [vmem:[%s9762_s5 + $0x40] sm:$0xff] }
   0x4   :  { %v6564_v9 = vld [vmem:[%s9762_s5 + $0x48] sm:$0xff]  ;;  %v6569_v10 = vld [vmem:[%s9762_s5 + $0x50] sm:$0xff]  ;;  %v6574_v11 = vld [vmem:[%s9762_s5 + $0x58] sm:$0xff] }
   0x5   :  { %v6579_v12 = vld [vmem:[%s9762_s5 + $0x60] sm:$0xff]  ;;  %v6584_v13 = vld [vmem:[%s9762_s5 + $0x68] sm:$0xff]  ;;  %v6589_v14 = vld [vmem:[%s9762_s5 + $0x70] sm:$0xff] }
   0x6   :  { %v6594_v15 = vld [vmem:[%s9762_s5 + $0x78] sm:$0xff]  ;;  %v6599_v16 = vld [vmem:[%s9762_s5 + $0x80] sm:$0xff]  ;;  %v6604_v17 = vld [vmem:[%s9762_s5 + $0x88] sm:$0xff] }
   0x7   :  { %10007 = vst [vmem:[#allocation15_spill] sm:$0xff] %v6599_v16  ;;  %10008 = vst [vmem:[#allocation16_spill] sm:$0xff] %v6604_v17  ;;  %v6609_v18 = vld [vmem:[%s9762_s5 + $0x90] sm:$0xff]  ;;  %v6614_v19 = vld [vmem:[%s9762_s5 + $0x98] sm:$0xff] }
   0x8   :  { %10009 = vst [vmem:[#allocation17_spill] sm:$0xff] %v6609_v18  ;;  %10010 = vst [vmem:[#allocation18_spill] sm:$0xff] %v6614_v19  ;;  %v6619_v20 = vld [vmem:[%s9762_s5 + $0xa0] sm:$0xff]  ;;  %v6624_v21 = vld [vmem:[%s9762_s5 + $0xa8] sm:$0xff] }
   0x9   :  { %10011 = vst [vmem:[#allocation19_spill] sm:$0xff] %v6619_v20  ;;  %10012 = vst [vmem:[#allocation20_spill] sm:$0xff] %v6624_v21  ;;  %v6629_v22 = vld [vmem:[%s9762_s5 + $0xb0] sm:$0xff]  ;;  %v6634_v23 = vld [vmem:[%s9762_s5 + $0xb8] sm:$0xff] }
   0xa   :  { %10013 = vst [vmem:[#allocation21_spill] sm:$0xff] %v6629_v22  ;;  %v6639_v24 = vld [vmem:[%s9762_s5 + $0xc0] sm:$0xff]  ;;  %v6644_v25 = vld [vmem:[%s9762_s5 + $0xc8] sm:$0xff]  ;;  %v6649_v26 = vld [vmem:[%s9762_s5 + $0xd0] sm:$0xff] }
   0xb   :  { %v6654_v27 = vld [vmem:[%s9762_s5 + $0xd8] sm:$0xff]  ;;  %v6659_v28 = vld [vmem:[%s9762_s5 + $0xe0] sm:$0xff]  ;;  %v6664_v29 = vld [vmem:[%s9762_s5 + $0xe8] sm:$0xff] }
   0xc   :  { %v6669_v30 = vld [vmem:[%s9762_s5 + $0xf0] sm:$0xff]  ;;  %v6674_v31 = vld [vmem:[%s9762_s5 + $0xf8] sm:$0xff]  ;;  %v6679_v32 = vld [vmem:[%s9762_s5 + $0x100] sm:$0xff] }
   0xd   :  { %10014 = vst [vmem:[#allocation22_spill] sm:$0xff] %v6679_v32  ;;  %v6684_v33 = vld [vmem:[%s9762_s5 + $0x108] sm:$0xff]  ;;  %v6689_v34 = vld [vmem:[%s9762_s5 + $0x110] sm:$0xff]  ;;  %v6694_v35 = vld [vmem:[%s9762_s5 + $0x118] sm:$0xff] }
   0xe   :  { %10015 = vst [vmem:[#allocation23_spill] sm:$0xff] %v6684_v33  ;;  %10016 = vst [vmem:[#allocation24_spill] sm:$0xff] %v6689_v34  ;;  %v6699_v36 = vld [vmem:[%s9762_s5 + $0x120] sm:$0xff]  ;;  %v6704_v37 = vld [vmem:[%s9762_s5 + $0x128] sm:$0xff] }
   0xf   :  { %10017 = vst [vmem:[#allocation25_spill] sm:$0xff] %v6694_v35  ;;  %10018 = vst [vmem:[#allocation26_spill] sm:$0xff] %v6699_v36  ;;  %v6709_v38 = vld [vmem:[%s9762_s5 + $0x130] sm:$0xff]  ;;  %v6714_v39 = vld [vmem:[%s9762_s5 + $0x138] sm:$0xff] }
  0x10   :  { %10019 = vst [vmem:[#allocation27_spill] sm:$0xff] %v6704_v37  ;;  %10020 = vst [vmem:[#allocation28_spill] sm:$0xff] %v6709_v38  ;;  %v6719_v40 = vld [vmem:[%s9762_s5 + $0x140] sm:$0xff]  ;;  %v6724_v41 = vld [vmem:[%s9762_s5 + $0x148] sm:$0xff] }
  0x11   :  { %10021 = vst [vmem:[#allocation29_spill] sm:$0xff] %v6714_v39  ;;  %10022 = vst [vmem:[#allocation30_spill] sm:$0xff] %v6719_v40  ;;  %v6729_v42 = vld [vmem:[%s9762_s5 + $0x150] sm:$0xff]  ;;  %v6734_v43 = vld [vmem:[%s9762_s5 + $0x158] sm:$0xff] }
  0x12   :  { %10023 = vst [vmem:[#allocation31_spill] sm:$0xff] %v6724_v41  ;;  %10024 = vst [vmem:[#allocation32_spill] sm:$0xff] %v6729_v42  ;;  %v6739_v44 = vld [vmem:[%s9762_s5 + $0x160] sm:$0xff]  ;;  %v6744_v45 = vld [vmem:[%s9762_s5 + $0x168] sm:$0xff] }
  0x13   :  { %10025 = vst [vmem:[#allocation33_spill] sm:$0xff] %v6734_v43  ;;  %10026 = vst [vmem:[#allocation34_spill] sm:$0xff] %v6739_v44  ;;  %v6749_v46 = vld [vmem:[%s9762_s5 + $0x170] sm:$0xff]  ;;  %v6754_v47 = vld [vmem:[%s9762_s5 + $0x178] sm:$0xff] }
  0x14   :  { %10027 = vst [vmem:[#allocation35_spill] sm:$0xff] %v6744_v45  ;;  %10028 = vst [vmem:[#allocation36_spill] sm:$0xff] %v6749_v46  ;;  %v6759_v48 = vld [vmem:[%s9762_s5 + $0x180] sm:$0xff]  ;;  %v6764_v49 = vld [vmem:[%s9762_s5 + $0x188] sm:$0xff] }
  0x15   :  { %10029 = vst [vmem:[#allocation37_spill] sm:$0xff] %v6754_v47  ;;  %10030 = vst [vmem:[#allocation38_spill] sm:$0xff] %v6759_v48  ;;  %v6769_v50 = vld [vmem:[%s9762_s5 + $0x190] sm:$0xff]  ;;  %v6774_v51 = vld [vmem:[%s9762_s5 + $0x198] sm:$0xff] }
  0x16   :  { %10031 = vst [vmem:[#allocation39_spill] sm:$0xff] %v6764_v49  ;;  %10032 = vst [vmem:[#allocation40_spill] sm:$0xff] %v6769_v50  ;;  %v6779_v52 = vld [vmem:[%s9762_s5 + $0x1a0] sm:$0xff]  ;;  %v6784_v53 = vld [vmem:[%s9762_s5 + $0x1a8] sm:$0xff] }
  0x17   :  { %10033 = vst [vmem:[#allocation41_spill] sm:$0xff] %v6774_v51  ;;  %10034 = vst [vmem:[#allocation42_spill] sm:$0xff] %v6779_v52  ;;  %v6789_v54 = vld [vmem:[%s9762_s5 + $0x1b0] sm:$0xff]  ;;  %v6794_v55 = vld [vmem:[%s9762_s5 + $0x1b8] sm:$0xff] }
  0x18   :  { %10035 = vst [vmem:[#allocation43_spill] sm:$0xff] %v6784_v53  ;;  %10036 = vst [vmem:[#allocation44_spill] sm:$0xff] %v6789_v54  ;;  %v6799_v56 = vld [vmem:[%s9762_s5 + $0x1c0] sm:$0xff]  ;;  %v6804_v57 = vld [vmem:[%s9762_s5 + $0x1c8] sm:$0xff] }
  0x19   :  { %10037 = vst [vmem:[#allocation45_spill] sm:$0xff] %v6794_v55  ;;  %10038 = vst [vmem:[#allocation46_spill] sm:$0xff] %v6799_v56  ;;  %v6809_v58 = vld [vmem:[%s9762_s5 + $0x1d0] sm:$0xff]  ;;  %v6814_v59 = vld [vmem:[%s9762_s5 + $0x1d8] sm:$0xff] }
  0x1a   :  { %10039 = vst [vmem:[#allocation47_spill] sm:$0xff] %v6804_v57  ;;  %10040 = vst [vmem:[#allocation48_spill] sm:$0xff] %v6809_v58  ;;  %v6819_v60 = vld [vmem:[%s9762_s5 + $0x1e0] sm:$0xff]  ;;  %v6824_v61 = vld [vmem:[%s9762_s5 + $0x1e8] sm:$0xff] }
  0x1b   :  { %10041 = vst [vmem:[#allocation49_spill] sm:$0xff] %v6814_v59  ;;  %10042 = vst [vmem:[#allocation50_spill] sm:$0xff] %v6819_v60  ;;  %v6829_v62 = vld [vmem:[%s9762_s5 + $0x1f0] sm:$0xff]  ;;  %v6834_v63 = vld [vmem:[%s9762_s5 + $0x1f8] sm:$0xff] }
  0x1c   :  { %10043 = vst [vmem:[#allocation51_spill] sm:$0xff] %v6824_v61  ;;  %10044 = vst [vmem:[#allocation52_spill] sm:$0xff] %v6829_v62  ;;  %v6839_v48 = vld [vmem:[%s9762_s5 + $0x200] sm:$0xff]  ;;  %v6844_v49 = vld [vmem:[%s9762_s5 + $0x208] sm:$0xff] }
  0x1d   :  { %10045 = vst [vmem:[#allocation53_spill] sm:$0xff] %v6834_v63  ;;  %v6849_v50 = vld [vmem:[%s9762_s5 + $0x210] sm:$0xff]  ;;  %v6854_v51 = vld [vmem:[%s9762_s5 + $0x218] sm:$0xff]  ;;  %v6859_v52 = vld [vmem:[%s9762_s5 + $0x220] sm:$0xff] }
  0x1e   :  { %v6864_v53 = vld [vmem:[%s9762_s5 + $0x228] sm:$0xff]  ;;  %v6869_v54 = vld [vmem:[%s9762_s5 + $0x230] sm:$0xff]  ;;  %v6874_v55 = vld [vmem:[%s9762_s5 + $0x238] sm:$0xff] }
  0x1f   :  { %v6879_v56 = vld [vmem:[%s9762_s5 + $0x240] sm:$0xff]  ;;  %v6884_v57 = vld [vmem:[%s9762_s5 + $0x248] sm:$0xff]  ;;  %v6889_v58 = vld [vmem:[%s9762_s5 + $0x250] sm:$0xff] }
  0x20   :  { %v6894_v59 = vld [vmem:[%s9762_s5 + $0x258] sm:$0xff]  ;;  %v6899_v60 = vld [vmem:[%s9762_s5 + $0x260] sm:$0xff]  ;;  %v6904_v61 = vld [vmem:[%s9762_s5 + $0x268] sm:$0xff] }
  0x21   :  { %v6909_v62 = vld [vmem:[%s9762_s5 + $0x270] sm:$0xff]  ;;  %v6914_v63 = vld [vmem:[%s9762_s5 + $0x278] sm:$0xff]  ;;  %v6919_v32 = vld [vmem:[%s9762_s5 + $0x280] sm:$0xff] }
  0x22   :  { %10046 = vst [vmem:[#allocation54_spill] sm:$0xff] %v6919_v32  ;;  %v6924_v33 = vld [vmem:[%s9762_s5 + $0x288] sm:$0xff]  ;;  %v6929_v34 = vld [vmem:[%s9762_s5 + $0x290] sm:$0xff]  ;;  %v6934_v35 = vld [vmem:[%s9762_s5 + $0x298] sm:$0xff] }
  0x23   :  { %10047 = vst [vmem:[#allocation55_spill] sm:$0xff] %v6924_v33  ;;  %10048 = vst [vmem:[#allocation56_spill] sm:$0xff] %v6929_v34  ;;  %v6939_v36 = vld [vmem:[%s9762_s5 + $0x2a0] sm:$0xff]  ;;  %v6944_v37 = vld [vmem:[%s9762_s5 + $0x2a8] sm:$0xff] }
  0x24   :  { %10049 = vst [vmem:[#allocation57_spill] sm:$0xff] %v6934_v35  ;;  %10050 = vst [vmem:[#allocation58_spill] sm:$0xff] %v6939_v36  ;;  %v6949_v38 = vld [vmem:[%s9762_s5 + $0x2b0] sm:$0xff]  ;;  %v6954_v39 = vld [vmem:[%s9762_s5 + $0x2b8] sm:$0xff] }
  0x25   :  { %10051 = vst [vmem:[#allocation59_spill] sm:$0xff] %v6944_v37  ;;  %10052 = vst [vmem:[#allocation60_spill] sm:$0xff] %v6949_v38  ;;  %v6959_v40 = vld [vmem:[%s9762_s5 + $0x2c0] sm:$0xff]  ;;  %v6964_v41 = vld [vmem:[%s9762_s5 + $0x2c8] sm:$0xff] }
  0x26   :  { %10053 = vst [vmem:[#allocation61_spill] sm:$0xff] %v6954_v39  ;;  %10054 = vst [vmem:[#allocation62_spill] sm:$0xff] %v6959_v40  ;;  %v6969_v42 = vld [vmem:[%s9762_s5 + $0x2d0] sm:$0xff]  ;;  %v6974_v43 = vld [vmem:[%s9762_s5 + $0x2d8] sm:$0xff] }
  0x27   :  { %10055 = vst [vmem:[#allocation63_spill] sm:$0xff] %v6964_v41  ;;  %10056 = vst [vmem:[#allocation64_spill] sm:$0xff] %v6969_v42  ;;  %v6979_v32 = vld [vmem:[%s9762_s5 + $0x2e0] sm:$0xff]  ;;  %v6984_v33 = vld [vmem:[%s9762_s5 + $0x2e8] sm:$0xff] }
  0x28   :  { %10057 = vst [vmem:[#allocation65_spill] sm:$0xff] %v6974_v43  ;;  %v6989_v44 = vld [vmem:[%s9762_s5 + $0x2f0] sm:$0xff]  ;;  %v6994_v45 = vld [vmem:[%s9762_s5 + $0x2f8] sm:$0xff]  ;;  %v6999_v34 = vld [vmem:[%s9762_s5 + $0x300] sm:$0xff] }
  0x29   :  { %10058 = vst [vmem:[#allocation66_spill] sm:$0xff] %v6999_v34  ;;  %v7004_v35 = vld [vmem:[%s9762_s5 + $0x308] sm:$0xff]  ;;  %v7009_v46 = vld [vmem:[%s9762_s5 + $0x310] sm:$0xff]  ;;  %v7014_v47 = vld [vmem:[%s9762_s5 + $0x318] sm:$0xff] }
  0x2a   :  { %10059 = vst [vmem:[#allocation67_spill] sm:$0xff] %v7004_v35  ;;  %10060 = vst [vmem:[#allocation68_spill] sm:$0xff] %v7009_v46  ;;  %v7019_v36 = vld [vmem:[%s9762_s5 + $0x320] sm:$0xff]  ;;  %v7024_v34 = vld [vmem:[%s9762_s5 + $0x328] sm:$0xff] }
  0x2b   :  { %10061 = vst [vmem:[#allocation69_spill] sm:$0xff] %v7014_v47  ;;  %10062 = vst [vmem:[#allocation70_spill] sm:$0xff] %v7019_v36  ;;  %v7029_v35 = vld [vmem:[%s9762_s5 + $0x330] sm:$0xff]  ;;  %v7034_v46 = vld [vmem:[%s9762_s5 + $0x338] sm:$0xff] }
  0x2c   :  { %10063 = vst [vmem:[#allocation71_spill] sm:$0xff] %v7024_v34  ;;  %10064 = vst [vmem:[#allocation72_spill] sm:$0xff] %v7029_v35  ;;  %v7039_v47 = vld [vmem:[%s9762_s5 + $0x340] sm:$0xff]  ;;  %v7044_v36 = vld [vmem:[%s9762_s5 + $0x348] sm:$0xff] }
  0x2d   :  { %10065 = vst [vmem:[#allocation73_spill] sm:$0xff] %v7034_v46  ;;  %10066 = vst [vmem:[#allocation74_spill] sm:$0xff] %v7039_v47  ;;  %v7049_v34 = vld [vmem:[%s9762_s5 + $0x350] sm:$0xff]  ;;  %v7054_v35 = vld [vmem:[%s9762_s5 + $0x358] sm:$0xff] }
  0x2e   :  { %10067 = vst [vmem:[#allocation75_spill] sm:$0xff] %v7044_v36  ;;  %10068 = vst [vmem:[#allocation76_spill] sm:$0xff] %v7049_v34  ;;  %v7059_v46 = vld [vmem:[%s9762_s5 + $0x360] sm:$0xff]  ;;  %v7064_v47 = vld [vmem:[%s9762_s5 + $0x368] sm:$0xff] }
  0x2f   :  { %10069 = vst [vmem:[#allocation77_spill] sm:$0xff] %v7054_v35  ;;  %10070 = vst [vmem:[#allocation78_spill] sm:$0xff] %v7059_v46  ;;  %v7069_v36 = vld [vmem:[%s9762_s5 + $0x370] sm:$0xff]  ;;  %v7074_v34 = vld [vmem:[%s9762_s5 + $0x378] sm:$0xff] }
  0x30   :  { %10071 = vst [vmem:[#allocation79_spill] sm:$0xff] %v7064_v47  ;;  %10072 = vst [vmem:[#allocation80_spill] sm:$0xff] %v7069_v36  ;;  %v7079_v35 = vld [vmem:[%s9762_s5 + $0x380] sm:$0xff]  ;;  %v7084_v46 = vld [vmem:[%s9762_s5 + $0x388] sm:$0xff] }
  0x31   :  { %10073 = vst [vmem:[#allocation81_spill] sm:$0xff] %v7074_v34  ;;  %10074 = vst [vmem:[#allocation82_spill] sm:$0xff] %v7079_v35  ;;  %v7089_v47 = vld [vmem:[%s9762_s5 + $0x390] sm:$0xff]  ;;  %v7094_v36 = vld [vmem:[%s9762_s5 + $0x398] sm:$0xff] }
  0x32   :  { %10075 = vst [vmem:[#allocation83_spill] sm:$0xff] %v7084_v46  ;;  %10076 = vst [vmem:[#allocation84_spill] sm:$0xff] %v7089_v47  ;;  %v7099_v34 = vld [vmem:[%s9762_s5 + $0x3a0] sm:$0xff]  ;;  %v7104_v35 = vld [vmem:[%s9762_s5 + $0x3a8] sm:$0xff] }
  0x33   :  { %10077 = vst [vmem:[#allocation85_spill] sm:$0xff] %v7094_v36  ;;  %10078 = vst [vmem:[#allocation86_spill] sm:$0xff] %v7099_v34  ;;  %v7109_v46 = vld [vmem:[%s9762_s5 + $0x3b0] sm:$0xff]  ;;  %v7114_v47 = vld [vmem:[%s9762_s5 + $0x3b8] sm:$0xff] }
  0x34   :  { %10079 = vst [vmem:[#allocation87_spill] sm:$0xff] %v7104_v35  ;;  %10080 = vst [vmem:[#allocation88_spill] sm:$0xff] %v7109_v46  ;;  %v7119_v36 = vld [vmem:[%s9762_s5 + $0x3c0] sm:$0xff]  ;;  %v7124_v34 = vld [vmem:[%s9762_s5 + $0x3c8] sm:$0xff] }
  0x35   :  { %10081 = vst [vmem:[#allocation89_spill] sm:$0xff] %v7114_v47  ;;  %10082 = vst [vmem:[#allocation90_spill] sm:$0xff] %v7119_v36  ;;  %v7129_v35 = vld [vmem:[%s9762_s5 + $0x3d0] sm:$0xff]  ;;  %v7134_v46 = vld [vmem:[%s9762_s5 + $0x3d8] sm:$0xff] }
  0x36   :  { %10083 = vst [vmem:[#allocation91_spill] sm:$0xff] %v7124_v34  ;;  %10084 = vst [vmem:[#allocation92_spill] sm:$0xff] %v7129_v35  ;;  %v7139_v47 = vld [vmem:[%s9762_s5 + $0x3e0] sm:$0xff]  ;;  %v7144_v36 = vld [vmem:[%s9762_s5 + $0x3e8] sm:$0xff] }
  0x37   :  { %10085 = vst [vmem:[#allocation93_spill] sm:$0xff] %v7134_v46  ;;  %10086 = vst [vmem:[#allocation94_spill] sm:$0xff] %v7139_v47  ;;  %v7149_v34 = vld [vmem:[%s9762_s5 + $0x3f0] sm:$0xff]  ;;  %v7154_v35 = vld [vmem:[%s9762_s5 + $0x3f8] sm:$0xff] }
  0x38   :  { %10087 = vst [vmem:[#allocation95_spill] sm:$0xff] %v7144_v36  ;;  %10088 = vst [vmem:[#allocation96_spill] sm:$0xff] %v7149_v34  ;;  %v7159_v46 = vld [vmem:[%s9762_s5 + $0x400] sm:$0xff]  ;;  %v7164_v47 = vld [vmem:[%s9762_s5 + $0x408] sm:$0xff] }
  0x39   :  { %10089 = vst [vmem:[#allocation97_spill] sm:$0xff] %v7154_v35  ;;  %10090 = vst [vmem:[#allocation98_spill] sm:$0xff] %v7159_v46  ;;  %v7169_v36 = vld [vmem:[%s9762_s5 + $0x410] sm:$0xff]  ;;  %v7174_v34 = vld [vmem:[%s9762_s5 + $0x418] sm:$0xff] }
  0x3a   :  { %10091 = vst [vmem:[#allocation99_spill] sm:$0xff] %v7164_v47  ;;  %10092 = vst [vmem:[#allocation100_spill] sm:$0xff] %v7169_v36  ;;  %v7179_v35 = vld [vmem:[%s9762_s5 + $0x420] sm:$0xff]  ;;  %v7184_v46 = vld [vmem:[%s9762_s5 + $0x428] sm:$0xff] }
  0x3b   :  { %10093 = vst [vmem:[#allocation101_spill] sm:$0xff] %v7174_v34  ;;  %10094 = vst [vmem:[#allocation102_spill] sm:$0xff] %v7179_v35  ;;  %v7189_v47 = vld [vmem:[%s9762_s5 + $0x430] sm:$0xff]  ;;  %v7194_v36 = vld [vmem:[%s9762_s5 + $0x438] sm:$0xff] }
  0x3c   :  { %10095 = vst [vmem:[#allocation103_spill] sm:$0xff] %v7184_v46  ;;  %10096 = vst [vmem:[#allocation104_spill] sm:$0xff] %v7189_v47  ;;  %v7199_v34 = vld [vmem:[%s9762_s5 + $0x440] sm:$0xff]  ;;  %v7204_v35 = vld [vmem:[%s9762_s5 + $0x448] sm:$0xff] }
  0x3d   :  { %10097 = vst [vmem:[#allocation105_spill] sm:$0xff] %v7194_v36  ;;  %10098 = vst [vmem:[#allocation106_spill] sm:$0xff] %v7199_v34  ;;  %v7209_v46 = vld [vmem:[%s9762_s5 + $0x450] sm:$0xff]  ;;  %v7214_v47 = vld [vmem:[%s9762_s5 + $0x458] sm:$0xff] }
  0x3e   :  { %10099 = vst [vmem:[#allocation107_spill] sm:$0xff] %v7204_v35  ;;  %10100 = vst [vmem:[#allocation108_spill] sm:$0xff] %v7209_v46  ;;  %v7219_v36 = vld [vmem:[%s9762_s5 + $0x460] sm:$0xff]  ;;  %v7224_v34 = vld [vmem:[%s9762_s5 + $0x468] sm:$0xff] }
  0x3f   :  { %10101 = vst [vmem:[#allocation109_spill] sm:$0xff] %v7214_v47  ;;  %10102 = vst [vmem:[#allocation110_spill] sm:$0xff] %v7219_v36  ;;  %v7229_v35 = vld [vmem:[%s9762_s5 + $0x470] sm:$0xff]  ;;  %v7234_v46 = vld [vmem:[%s9762_s5 + $0x478] sm:$0xff] }
  0x40   :  { %10103 = vst [vmem:[#allocation111_spill] sm:$0xff] %v7224_v34  ;;  %10104 = vst [vmem:[#allocation112_spill] sm:$0xff] %v7229_v35 }
  0x41   :  { %10105 = vst [vmem:[#allocation113_spill] sm:$0xff] %v7234_v46 }
  0x42   :  { %352 = vsyncadd [#allocation7], 18432  ;;  %v7239_v47 = vld [vmem:[%s9763_s6] sm:$0xff]  ;;  %v7244_v36 = vld [vmem:[%s9763_s6 + $0x8] sm:$0xff] }
  0x43   :  { %10106 = vst [vmem:[#allocation114_spill] sm:$0xff] %v7239_v47  ;;  %10107 = vst [vmem:[#allocation115_spill] sm:$0xff] %v7244_v36  ;;  %v7249_v34 = vld [vmem:[%s9763_s6 + $0x10] sm:$0xff]  ;;  %v7254_v35 = vld [vmem:[%s9763_s6 + $0x18] sm:$0xff] }
  0x44   :  { %10108 = vst [vmem:[#allocation116_spill] sm:$0xff] %v7249_v34  ;;  %10109 = vst [vmem:[#allocation117_spill] sm:$0xff] %v7254_v35  ;;  %v7259_v46 = vld [vmem:[%s9763_s6 + $0x20] sm:$0xff]  ;;  %v7264_v47 = vld [vmem:[%s9763_s6 + $0x28] sm:$0xff] }
  0x45   :  { %10110 = vst [vmem:[#allocation118_spill] sm:$0xff] %v7259_v46  ;;  %10111 = vst [vmem:[#allocation119_spill] sm:$0xff] %v7264_v47  ;;  %v7269_v36 = vld [vmem:[%s9763_s6 + $0x30] sm:$0xff]  ;;  %v7274_v34 = vld [vmem:[%s9763_s6 + $0x38] sm:$0xff] }
  0x46   :  { %10112 = vst [vmem:[#allocation120_spill] sm:$0xff] %v7269_v36  ;;  %10113 = vst [vmem:[#allocation121_spill] sm:$0xff] %v7274_v34  ;;  %v7279_v35 = vld [vmem:[%s9763_s6 + $0x40] sm:$0xff]  ;;  %v7284_v46 = vld [vmem:[%s9763_s6 + $0x48] sm:$0xff] }
  0x47   :  { %10114 = vst [vmem:[#allocation122_spill] sm:$0xff] %v7279_v35  ;;  %10115 = vst [vmem:[#allocation123_spill] sm:$0xff] %v7284_v46  ;;  %v7289_v47 = vld [vmem:[%s9763_s6 + $0x50] sm:$0xff]  ;;  %v7294_v36 = vld [vmem:[%s9763_s6 + $0x58] sm:$0xff] }
  0x48   :  { %10116 = vst [vmem:[#allocation124_spill] sm:$0xff] %v7289_v47  ;;  %10117 = vst [vmem:[#allocation125_spill] sm:$0xff] %v7294_v36  ;;  %v7299_v34 = vld [vmem:[%s9763_s6 + $0x60] sm:$0xff]  ;;  %v7304_v35 = vld [vmem:[%s9763_s6 + $0x68] sm:$0xff] }
  0x49   :  { %10118 = vst [vmem:[#allocation126_spill] sm:$0xff] %v7299_v34  ;;  %10119 = vst [vmem:[#allocation127_spill] sm:$0xff] %v7304_v35  ;;  %v7309_v46 = vld [vmem:[%s9763_s6 + $0x70] sm:$0xff]  ;;  %v7314_v47 = vld [vmem:[%s9763_s6 + $0x78] sm:$0xff] }
  0x4a   :  { %10120 = vst [vmem:[#allocation128_spill] sm:$0xff] %v7309_v46  ;;  %10121 = vst [vmem:[#allocation129_spill] sm:$0xff] %v7314_v47  ;;  %v7319_v36 = vld [vmem:[%s9763_s6 + $0x80] sm:$0xff]  ;;  %v7324_v34 = vld [vmem:[%s9763_s6 + $0x88] sm:$0xff] }
  0x4b   :  { %10122 = vst [vmem:[#allocation130_spill] sm:$0xff] %v7319_v36  ;;  %10123 = vst [vmem:[#allocation131_spill] sm:$0xff] %v7324_v34  ;;  %v7329_v35 = vld [vmem:[%s9763_s6 + $0x90] sm:$0xff]  ;;  %v7334_v46 = vld [vmem:[%s9763_s6 + $0x98] sm:$0xff] }
  0x4c   :  { %10124 = vst [vmem:[#allocation132_spill] sm:$0xff] %v7329_v35  ;;  %10125 = vst [vmem:[#allocation133_spill] sm:$0xff] %v7334_v46  ;;  %v7339_v47 = vld [vmem:[%s9763_s6 + $0xa0] sm:$0xff]  ;;  %v7344_v36 = vld [vmem:[%s9763_s6 + $0xa8] sm:$0xff] }
  0x4d   :  { %10126 = vst [vmem:[#allocation134_spill] sm:$0xff] %v7339_v47  ;;  %10127 = vst [vmem:[#allocation135_spill] sm:$0xff] %v7344_v36  ;;  %v7349_v34 = vld [vmem:[%s9763_s6 + $0xb0] sm:$0xff]  ;;  %v7354_v35 = vld [vmem:[%s9763_s6 + $0xb8] sm:$0xff] }
  0x4e   :  { %10128 = vst [vmem:[#allocation136_spill] sm:$0xff] %v7349_v34  ;;  %10129 = vst [vmem:[#allocation137_spill] sm:$0xff] %v7354_v35  ;;  %v7359_v46 = vld [vmem:[%s9763_s6 + $0xc0] sm:$0xff]  ;;  %v7364_v47 = vld [vmem:[%s9763_s6 + $0xc8] sm:$0xff] }
  0x4f   :  { %10130 = vst [vmem:[#allocation138_spill] sm:$0xff] %v7359_v46  ;;  %10131 = vst [vmem:[#allocation139_spill] sm:$0xff] %v7364_v47  ;;  %v7369_v36 = vld [vmem:[%s9763_s6 + $0xd0] sm:$0xff]  ;;  %v7374_v34 = vld [vmem:[%s9763_s6 + $0xd8] sm:$0xff] }
  0x50   :  { %10132 = vst [vmem:[#allocation140_spill] sm:$0xff] %v7369_v36  ;;  %10133 = vst [vmem:[#allocation141_spill] sm:$0xff] %v7374_v34  ;;  %v7379_v35 = vld [vmem:[%s9763_s6 + $0xe0] sm:$0xff]  ;;  %v7384_v46 = vld [vmem:[%s9763_s6 + $0xe8] sm:$0xff] }
  0x51   :  { %10134 = vst [vmem:[#allocation142_spill] sm:$0xff] %v7379_v35  ;;  %10135 = vst [vmem:[#allocation143_spill] sm:$0xff] %v7384_v46  ;;  %v7389_v47 = vld [vmem:[%s9763_s6 + $0xf0] sm:$0xff]  ;;  %v7394_v36 = vld [vmem:[%s9763_s6 + $0xf8] sm:$0xff] }
  0x52   :  { %10136 = vst [vmem:[#allocation144_spill] sm:$0xff] %v7389_v47  ;;  %10137 = vst [vmem:[#allocation145_spill] sm:$0xff] %v7394_v36  ;;  %v7399_v34 = vld [vmem:[%s9763_s6 + $0x100] sm:$0xff]  ;;  %v7404_v35 = vld [vmem:[%s9763_s6 + $0x108] sm:$0xff] }
  0x53   :  { %10138 = vst [vmem:[#allocation146_spill] sm:$0xff] %v7399_v34  ;;  %10139 = vst [vmem:[#allocation147_spill] sm:$0xff] %v7404_v35  ;;  %v7409_v46 = vld [vmem:[%s9763_s6 + $0x110] sm:$0xff]  ;;  %v7414_v47 = vld [vmem:[%s9763_s6 + $0x118] sm:$0xff] }
  0x54   :  { %10140 = vst [vmem:[#allocation148_spill] sm:$0xff] %v7409_v46  ;;  %10141 = vst [vmem:[#allocation149_spill] sm:$0xff] %v7414_v47  ;;  %v7419_v36 = vld [vmem:[%s9763_s6 + $0x120] sm:$0xff]  ;;  %v7424_v34 = vld [vmem:[%s9763_s6 + $0x128] sm:$0xff] }
  0x55   :  { %10142 = vst [vmem:[#allocation150_spill] sm:$0xff] %v7419_v36  ;;  %10143 = vst [vmem:[#allocation151_spill] sm:$0xff] %v7424_v34  ;;  %v7429_v35 = vld [vmem:[%s9763_s6 + $0x130] sm:$0xff]  ;;  %v7434_v46 = vld [vmem:[%s9763_s6 + $0x138] sm:$0xff] }
  0x56   :  { %10144 = vst [vmem:[#allocation152_spill] sm:$0xff] %v7429_v35  ;;  %10145 = vst [vmem:[#allocation153_spill] sm:$0xff] %v7434_v46  ;;  %v7439_v47 = vld [vmem:[%s9763_s6 + $0x140] sm:$0xff]  ;;  %v7444_v36 = vld [vmem:[%s9763_s6 + $0x148] sm:$0xff] }
  0x57   :  { %10146 = vst [vmem:[#allocation154_spill] sm:$0xff] %v7439_v47  ;;  %10147 = vst [vmem:[#allocation155_spill] sm:$0xff] %v7444_v36  ;;  %v7449_v34 = vld [vmem:[%s9763_s6 + $0x150] sm:$0xff]  ;;  %v7454_v35 = vld [vmem:[%s9763_s6 + $0x158] sm:$0xff] }
  0x58   :  { %10148 = vst [vmem:[#allocation156_spill] sm:$0xff] %v7449_v34  ;;  %10149 = vst [vmem:[#allocation157_spill] sm:$0xff] %v7454_v35  ;;  %v7459_v46 = vld [vmem:[%s9763_s6 + $0x160] sm:$0xff]  ;;  %v7464_v47 = vld [vmem:[%s9763_s6 + $0x168] sm:$0xff] }
  0x59   :  { %10150 = vst [vmem:[#allocation158_spill] sm:$0xff] %v7459_v46  ;;  %10151 = vst [vmem:[#allocation159_spill] sm:$0xff] %v7464_v47  ;;  %v7469_v36 = vld [vmem:[%s9763_s6 + $0x170] sm:$0xff]  ;;  %v7474_v34 = vld [vmem:[%s9763_s6 + $0x178] sm:$0xff] }
  0x5a   :  { %10152 = vst [vmem:[#allocation160_spill] sm:$0xff] %v7469_v36  ;;  %10153 = vst [vmem:[#allocation161_spill] sm:$0xff] %v7474_v34  ;;  %v7479_v35 = vld [vmem:[%s9763_s6 + $0x180] sm:$0xff]  ;;  %v7484_v46 = vld [vmem:[%s9763_s6 + $0x188] sm:$0xff] }
  0x5b   :  { %10154 = vst [vmem:[#allocation162_spill] sm:$0xff] %v7479_v35  ;;  %10155 = vst [vmem:[#allocation163_spill] sm:$0xff] %v7484_v46  ;;  %v7489_v47 = vld [vmem:[%s9763_s6 + $0x190] sm:$0xff]  ;;  %v7494_v36 = vld [vmem:[%s9763_s6 + $0x198] sm:$0xff] }
  0x5c   :  { %10156 = vst [vmem:[#allocation164_spill] sm:$0xff] %v7489_v47  ;;  %10157 = vst [vmem:[#allocation165_spill] sm:$0xff] %v7494_v36  ;;  %v7499_v34 = vld [vmem:[%s9763_s6 + $0x1a0] sm:$0xff]  ;;  %v7504_v35 = vld [vmem:[%s9763_s6 + $0x1a8] sm:$0xff] }
  0x5d   :  { %10158 = vst [vmem:[#allocation166_spill] sm:$0xff] %v7499_v34  ;;  %10159 = vst [vmem:[#allocation167_spill] sm:$0xff] %v7504_v35  ;;  %v7509_v46 = vld [vmem:[%s9763_s6 + $0x1b0] sm:$0xff]  ;;  %v7514_v47 = vld [vmem:[%s9763_s6 + $0x1b8] sm:$0xff] }
  0x5e   :  { %10160 = vst [vmem:[#allocation168_spill] sm:$0xff] %v7509_v46  ;;  %10161 = vst [vmem:[#allocation169_spill] sm:$0xff] %v7514_v47  ;;  %v7519_v36 = vld [vmem:[%s9763_s6 + $0x1c0] sm:$0xff]  ;;  %v7524_v34 = vld [vmem:[%s9763_s6 + $0x1c8] sm:$0xff] }
  0x5f   :  { %10162 = vst [vmem:[#allocation170_spill] sm:$0xff] %v7519_v36  ;;  %10163 = vst [vmem:[#allocation171_spill] sm:$0xff] %v7524_v34  ;;  %v7529_v35 = vld [vmem:[%s9763_s6 + $0x1d0] sm:$0xff]  ;;  %v7534_v46 = vld [vmem:[%s9763_s6 + $0x1d8] sm:$0xff] }
  0x60   :  { %10164 = vst [vmem:[#allocation172_spill] sm:$0xff] %v7529_v35  ;;  %10165 = vst [vmem:[#allocation173_spill] sm:$0xff] %v7534_v46  ;;  %v7539_v47 = vld [vmem:[%s9763_s6 + $0x1e0] sm:$0xff]  ;;  %v7544_v36 = vld [vmem:[%s9763_s6 + $0x1e8] sm:$0xff] }
  0x61   :  { %10166 = vst [vmem:[#allocation174_spill] sm:$0xff] %v7539_v47  ;;  %10167 = vst [vmem:[#allocation175_spill] sm:$0xff] %v7544_v36  ;;  %v7549_v34 = vld [vmem:[%s9763_s6 + $0x1f0] sm:$0xff]  ;;  %v7554_v35 = vld [vmem:[%s9763_s6 + $0x1f8] sm:$0xff] }
  0x62   :  { %10168 = vst [vmem:[#allocation176_spill] sm:$0xff] %v7549_v34  ;;  %10169 = vst [vmem:[#allocation177_spill] sm:$0xff] %v7554_v35  ;;  %v7559_v46 = vld [vmem:[%s9763_s6 + $0x200] sm:$0xff]  ;;  %v7564_v47 = vld [vmem:[%s9763_s6 + $0x208] sm:$0xff] }
  0x63   :  { %10170 = vst [vmem:[#allocation178_spill] sm:$0xff] %v7559_v46  ;;  %10171 = vst [vmem:[#allocation179_spill] sm:$0xff] %v7564_v47  ;;  %v7569_v36 = vld [vmem:[%s9763_s6 + $0x210] sm:$0xff]  ;;  %v7574_v34 = vld [vmem:[%s9763_s6 + $0x218] sm:$0xff] }
  0x64   :  { %10172 = vst [vmem:[#allocation180_spill] sm:$0xff] %v7569_v36  ;;  %10173 = vst [vmem:[#allocation181_spill] sm:$0xff] %v7574_v34  ;;  %v7579_v35 = vld [vmem:[%s9763_s6 + $0x220] sm:$0xff]  ;;  %v7584_v46 = vld [vmem:[%s9763_s6 + $0x228] sm:$0xff] }
  0x65   :  { %10174 = vst [vmem:[#allocation182_spill] sm:$0xff] %v7579_v35  ;;  %10175 = vst [vmem:[#allocation183_spill] sm:$0xff] %v7584_v46  ;;  %v7589_v47 = vld [vmem:[%s9763_s6 + $0x230] sm:$0xff]  ;;  %v7594_v36 = vld [vmem:[%s9763_s6 + $0x238] sm:$0xff] }
  0x66   :  { %10176 = vst [vmem:[#allocation184_spill] sm:$0xff] %v7589_v47  ;;  %10177 = vst [vmem:[#allocation185_spill] sm:$0xff] %v7594_v36  ;;  %v7599_v34 = vld [vmem:[%s9763_s6 + $0x240] sm:$0xff]  ;;  %v7604_v35 = vld [vmem:[%s9763_s6 + $0x248] sm:$0xff] }
  0x67   :  { %10178 = vst [vmem:[#allocation186_spill] sm:$0xff] %v7599_v34  ;;  %10179 = vst [vmem:[#allocation187_spill] sm:$0xff] %v7604_v35  ;;  %v7609_v46 = vld [vmem:[%s9763_s6 + $0x250] sm:$0xff]  ;;  %v7614_v47 = vld [vmem:[%s9763_s6 + $0x258] sm:$0xff] }
  0x68   :  { %10180 = vst [vmem:[#allocation188_spill] sm:$0xff] %v7609_v46  ;;  %10181 = vst [vmem:[#allocation189_spill] sm:$0xff] %v7614_v47  ;;  %v7619_v36 = vld [vmem:[%s9763_s6 + $0x260] sm:$0xff]  ;;  %v7624_v34 = vld [vmem:[%s9763_s6 + $0x268] sm:$0xff] }
  0x69   :  { %10182 = vst [vmem:[#allocation190_spill] sm:$0xff] %v7619_v36  ;;  %10183 = vst [vmem:[#allocation191_spill] sm:$0xff] %v7624_v34  ;;  %v7629_v35 = vld [vmem:[%s9763_s6 + $0x270] sm:$0xff]  ;;  %v7634_v46 = vld [vmem:[%s9763_s6 + $0x278] sm:$0xff] }
  0x6a   :  { %10184 = vst [vmem:[#allocation192_spill] sm:$0xff] %v7629_v35  ;;  %10185 = vst [vmem:[#allocation193_spill] sm:$0xff] %v7634_v46 }
  0x6b   :  { %554 = vsyncadd [#allocation7 + $0x1], 10240  ;;  %v6307_v36 = vld [vmem:[%s9758_s1] sm:$0x1f]   ;;  %vm883_vm0 = vcmask 1044480   ;;  %vm786_vm1 = vcmask 80896  }
  0x6c   :  { %v6308_v34 = vld [vmem:[%s9757_s0] sm:$0xff]   ;;  %v6309_v35 = vld [vmem:[%s9757_s0 + $0x8] sm:$0xff]   ;;  %6304 = vmatprep.subr.msk.bf16.mxu0 %vm883_vm0, %v6307_v36  ;;  %v885_v47 = vsel %vm883_vm0, %v6307_v36, 0  ;;  %v6310_v46 = vld [vmem:[%s9757_s0 + $0x10] sm:$0xff]  }
  0x6d   :  { %6240 = vmatprep.mubr.msk.bf16.mxu0 %vm786_vm1, %v6308_v34  ;;  %6239 = vmatpush3.bf16.msra.mxu0 %v885_v47  ;;  %v6311_v37 = vld [vmem:[%s9757_s0 + $0x18] sm:$0xff]   ;;  %v6312_v16 = vld [vmem:[%s9757_s0 + $0x20] sm:$0xff]   ;;  %v6313_v34 = vld [vmem:[%s9757_s0 + $0x28] sm:$0xff]  }
  0x6e   :  { %v6315_v36 = vld [vmem:[%s9757_s0 + $0x38] sm:$0xff]  }
  0x6f   :  { %v6319_v47 = vld [vmem:[%s9757_s0 + $0x58] sm:$0xff]  }
  0x70   :  { %6241 = vmatmul.mubr.msk.bf16.vlgmr.msra.gmra.mxu0 %vm786_vm1, %v6309_v35  ;;  %v6314_v35 = vld [vmem:[%s9757_s0 + $0x30] sm:$0xff]  }
  0x71   :  { %6244 = vmatprep.mubr.msk.bf16.mxu0 %vm786_vm1, %v6310_v46  ;;  %v6318_v46 = vld [vmem:[%s9757_s0 + $0x50] sm:$0xff]  }
  0x78   :  { %6245 = vmatmul.mubr.msk.bf16.gmra.mxu0 %vm786_vm1, %v6311_v37  ;;  %v6317_v37 = vld [vmem:[%s9757_s0 + $0x48] sm:$0xff]  }
  0x79   :  { %6248 = vmatprep.mubr.msk.bf16.mxu0 %vm786_vm1, %v6312_v16  ;;  %v6316_v16 = vld [vmem:[%s9757_s0 + $0x40] sm:$0xff]  }
  0x80   :  { %6249 = vmatmul.mubr.msk.bf16.gmra.mxu0 %vm786_vm1, %v6313_v34  ;;  %v6320_v34 = vld [vmem:[%s9757_s0 + $0x60] sm:$0xff]  }
  0x81   :  { %6252 = vmatprep.mubr.msk.bf16.mxu0 %vm786_vm1, %v6314_v35  ;;  %v6321_v35 = vld [vmem:[%s9757_s0 + $0x68] sm:$0xff]  }
  0x88   :  { %6253 = vmatmul.mubr.msk.bf16.gmra.mxu0 %vm786_vm1, %v6315_v36  ;;  %v6322_v36 = vld [vmem:[%s9757_s0 + $0x70] sm:$0xff]  }
  0x89   :  { %6256 = vmatprep.mubr.msk.bf16.mxu0 %vm786_vm1, %v6316_v16  ;;  %v6323_v16 = vld [vmem:[%s9757_s0 + $0x78] sm:$0xff]  }
  0x90   :  { %6257 = vmatmul.mubr.msk.bf16.gmra.mxu0 %vm786_vm1, %v6317_v37  ;;  %v6324_v37 = vld [vmem:[%s9757_s0 + $0x80] sm:$0xff]  }
  0x91   :  { %6260 = vmatprep.mubr.msk.bf16.mxu0 %vm786_vm1, %v6318_v46  ;;  %v6325_v46 = vld [vmem:[%s9757_s0 + $0x88] sm:$0xff]  }
  0x98   :  { %6261 = vmatmul.mubr.msk.bf16.gmra.mxu0 %vm786_vm1, %v6319_v47  ;;  %v6326_v47 = vld [vmem:[%s9757_s0 + $0x90] sm:$0xff]  }
  0x99   :  { %6264 = vmatprep.mubr.msk.bf16.mxu0 %vm786_vm1, %v6320_v34  ;;  %v6327_v34 = vld [vmem:[%s9757_s0 + $0x98] sm:$0xff]  }
  0xa0   :  { %6265 = vmatmul.mubr.msk.bf16.gmra.mxu0 %vm786_vm1, %v6321_v35  ;;  %v6328_v35 = vld [vmem:[%s9757_s0 + $0xa0] sm:$0xff]  }
  0xa1   :  { %6268 = vmatprep.mubr.msk.bf16.mxu0 %vm786_vm1, %v6322_v36  ;;  %v6329_v36 = vld [vmem:[%s9757_s0 + $0xa8] sm:$0xff]  }
  0xa8   :  { %6269 = vmatmul.mubr.msk.bf16.gmra.mxu0 %vm786_vm1, %v6323_v16  ;;  %v6330_v16 = vld [vmem:[%s9757_s0 + $0xb0] sm:$0xff]  }
  0xa9   :  { %6272 = vmatprep.mubr.msk.bf16.mxu0 %vm786_vm1, %v6324_v37  ;;  %v6331_v37 = vld [vmem:[%s9757_s0 + $0xb8] sm:$0xff]  }
  0xb0   :  { %6273 = vmatmul.mubr.msk.bf16.gmra.mxu0 %vm786_vm1, %v6325_v46  ;;  %v6332_v46 = vld [vmem:[%s9757_s0 + $0xc0] sm:$0xff]  }
  0xb1   :  { %6276 = vmatprep.mubr.msk.bf16.mxu0 %vm786_vm1, %v6326_v47  ;;  %v6333_v47 = vld [vmem:[%s9757_s0 + $0xc8] sm:$0xff]  }
  0xb8   :  { %6277 = vmatmul.mubr.msk.bf16.gmra.mxu0 %vm786_vm1, %v6327_v34  ;;  %v6334_v34 = vld [vmem:[%s9757_s0 + $0xd0] sm:$0xff]  }
  0xb9   :  { %6280 = vmatprep.mubr.msk.bf16.mxu0 %vm786_vm1, %v6328_v35  ;;  %v6335_v35 = vld [vmem:[%s9757_s0 + $0xd8] sm:$0xff]  }
  0xc0   :  { %6281 = vmatmul.mubr.msk.bf16.gmra.mxu0 %vm786_vm1, %v6329_v36  ;;  %v6336_v36 = vld [vmem:[%s9757_s0 + $0xe0] sm:$0xff]  }
  0xc1   :  { %6284 = vmatprep.mubr.msk.bf16.mxu0 %vm786_vm1, %v6330_v16  ;;  %v6337_v16 = vld [vmem:[%s9757_s0 + $0xe8] sm:$0xff]  }
  0xc8   :  { %6285 = vmatmul.mubr.msk.bf16.gmra.mxu0 %vm786_vm1, %v6331_v37  ;;  %v6338_v37 = vld [vmem:[%s9757_s0 + $0xf0] sm:$0xff]  }
  0xc9   :  { %6288 = vmatprep.mubr.msk.bf16.mxu0 %vm786_vm1, %v6332_v46  ;;  %v6339_v46 = vld [vmem:[%s9757_s0 + $0xf8] sm:$0xff]  }
  0xd0   :  { %6289 = vmatmul.mubr.msk.bf16.gmra.mxu0 %vm786_vm1, %v6333_v47 }
  0xd1   :  { %6292 = vmatprep.mubr.msk.bf16.mxu0 %vm786_vm1, %v6334_v34 }
  0xd8   :  { %6293 = vmatmul.mubr.msk.bf16.gmra.mxu0 %vm786_vm1, %v6335_v35 }
  0xd9   :  { %6296 = vmatprep.mubr.msk.bf16.mxu0 %vm786_vm1, %v6336_v36 }
  0xe0   :  { %6297 = vmatmul.mubr.msk.bf16.gmra.mxu0 %vm786_vm1, %v6337_v16 }
  0xe1   :  { %6300 = vmatprep.mubr.msk.bf16.mxu0 %vm786_vm1, %v6338_v37 }
  0xe8   :  { %6301 = vmatmul.mubr.msk.bf16.gmra.mxu0 %vm786_vm1, %v6339_v46 }
 0x130   :  { %v6242_v47 = vpop.f32.mrf.mxu0 }
 0x131   :  { %v1178_v34 = vmax.f32 %v6242_v47, 0.0 }
 0x132   :  { %v921_v35 = vpop.f32.mrf.mxu0 }
 0x133   :  { %1242 = vst [vmem:[#allocation2 + $0x10] sm:$0xff] %v1178_v34  ;;  %v6063_v36 = vpack.c.bf16 %v1178_v34, %v1178_v34  ;;  %v1176_v17 = vmax.f32 %v921_v35, 0.0 }
 0x134   :  { %v6243_v38 = vpop.f32.mrf.mxu0 }
 0x135   :  { %1346 = vst [vmem:[#allocation3 + $0x48] sm:$0xf] %v6063_v36  ;;  %1633 = vst [vmem:[#allocation3 + $0x3c] sm:$0xf] %v6063_v36  ;;  %v6061_v39 = vpack.c.bf16 %v1176_v17, %v1176_v17  ;;  %v1179_v16 = vmax.f32 %v6243_v38, 0.0 }
 0x136   :  { %1240 = vst [vmem:[#allocation2] sm:$0xff] %v1176_v17  ;;  %v924_v18 = vpop.f32.mrf.mxu0 }
 0x137   :  { %1344 = vst [vmem:[#allocation3] sm:$0xf] %v6061_v39  ;;  %1243 = vst [vmem:[#allocation2 + $0x18] sm:$0xff] %v1179_v16  ;;  %v6064_v37 = vpack.c.bf16 %v1179_v16, %v1179_v16  ;;  %v1177_v19 = vmax.f32 %v924_v18, 0.0 }
 0x138   :  { %v6246_v40 = vpop.f32.mrf.mxu0 }
 0x139   :  { %1347 = vst [vmem:[#allocation3 + $0x6c] sm:$0xf] %v6064_v37  ;;  %1634 = vst [vmem:[#allocation3 + $0x60] sm:$0xf] %v6064_v37  ;;  %v6062_v46 = vpack.c.bf16 %v1177_v19, %v1177_v19  ;;  %v1182_v47 = vmax.f32 %v6246_v40, 0.0 }
 0x13a   :  { %1241 = vst [vmem:[#allocation2 + $0x8] sm:$0xff] %v1177_v19  ;;  %v937_v41 = vpop.f32.mrf.mxu0 }
 0x13b   :  { %1345 = vst [vmem:[#allocation3 + $0x24] sm:$0xf] %v6062_v46  ;;  %1632 = vst [vmem:[#allocation3 + $0x18] sm:$0xf] %v6062_v46  ;;  %v6067_v34 = vpack.c.bf16 %v1182_v47, %v1182_v47  ;;  %v1180_v35 = vmax.f32 %v937_v41, 0.0 }
 0x13c   :  { %1246 = vst [vmem:[#allocation2 + $0x30] sm:$0xff] %v1182_v47  ;;  %v6247_v36 = vpop.f32.mrf.mxu0 }
 0x13d   :  { %1350 = vst [vmem:[#allocation3 + $0xd8] sm:$0xf] %v6067_v34  ;;  %1637 = vst [vmem:[#allocation3 + $0xcc] sm:$0xf] %v6067_v34  ;;  %v6065_v17 = vpack.c.bf16 %v1180_v35, %v1180_v35  ;;  %v1183_v38 = vmax.f32 %v6247_v36, 0.0 }
 0x13e   :  { %1244 = vst [vmem:[#allocation2 + $0x20] sm:$0xff] %v1180_v35  ;;  %v1402_v39 = vld [vmem:[#allocation2 + $0x11] sm:$0xff]  ;;  %v940_v18 = vpop.f32.mrf.mxu0 }
 0x13f   :  { %v6079_v16 = vpack.c.bf16 %v1402_v39, %v1402_v39  ;;  %1348 = vst [vmem:[#allocation3 + $0x90] sm:$0xf] %v6065_v17  ;;  %1635 = vst [vmem:[#allocation3 + $0x84] sm:$0xf] %v6065_v17  ;;  %v6068_v19 = vpack.c.bf16 %v1183_v38, %v1183_v38  ;;  %v1181_v40 = vmax.f32 %v940_v18, 0.0 }
 0x140   :  { %1247 = vst [vmem:[#allocation2 + $0x38] sm:$0xff] %v1183_v38  ;;  %v6250_v46 = vpop.f32.mrf.mxu0 }
 0x141   :  { %v1400_v37 = vld [vmem:[#allocation2 + $0x1] sm:$0xff]  ;;  %v1401_v20 = vld [vmem:[#allocation2 + $0x9] sm:$0xff]  ;;  %1442 = vst [vmem:[#allocation3 + $0x50] sm:$0xf] %v6079_v16  ;;  %1729 = vst [vmem:[#allocation3 + $0x44] sm:$0xf] %v6079_v16  ;;  %v6066_v34 = vpack.c.bf16 %v1181_v40, %v1181_v40 }
 0x142   :  { %v6077_v41 = vpack.c.bf16 %v1400_v37, %v1400_v37  ;;  %v6078_v47 = vpack.c.bf16 %v1401_v20, %v1401_v20  ;;  %1351 = vst [vmem:[#allocation3 + $0xfc] sm:$0xf] %v6068_v19  ;;  %1638 = vst [vmem:[#allocation3 + $0xf0] sm:$0xf] %v6068_v19  ;;  %v1186_v35 = vmax.f32 %v6250_v46, 0.0  ;;  %v953_v36 = vpop.f32.mrf.mxu0 }
 0x143   :  { %1245 = vst [vmem:[#allocation2 + $0x28] sm:$0xff] %v1181_v40  ;;  %1349 = vst [vmem:[#allocation3 + $0xb4] sm:$0xf] %v6066_v34  ;;  %v1184_v38 = vmax.f32 %v953_v36, 0.0 }
 0x144   :  { %1440 = vst [vmem:[#allocation3 + $0x8] sm:$0xf] %v6077_v41  ;;  %1441 = vst [vmem:[#allocation3 + $0x2c] sm:$0xf] %v6078_v47  ;;  %v6071_v17 = vpack.c.bf16 %v1186_v35, %v1186_v35  ;;  %v6251_v18 = vpop.f32.mrf.mxu0 }
 0x145   :  { %1728 = vst [vmem:[#allocation3 + $0x20] sm:$0xf] %v6078_v47  ;;  %1636 = vst [vmem:[#allocation3 + $0xa8] sm:$0xf] %v6066_v34  ;;  %v1403_v39 = vld [vmem:[#allocation2 + $0x19] sm:$0xff]  ;;  %v6069_v20 = vpack.c.bf16 %v1184_v38, %v1184_v38  ;;  %v1187_v16 = vmax.f32 %v6251_v18, 0.0 }
 0x146   :  { %v6080_v21 = vpack.c.bf16 %v1403_v39, %v1403_v39  ;;  %1394 = vst [vmem:[#allocation3 + $0x4c] sm:$0xf] %v6071_v17  ;;  %1681 = vst [vmem:[#allocation3 + $0x40] sm:$0xf] %v6071_v17  ;;  %v956_v37 = vpop.f32.mrf.mxu0 }
 0x147   :  { %1248 = vst [vmem:[#allocation2 + $0x40] sm:$0xff] %v1184_v38  ;;  %v1406_v19 = vld [vmem:[#allocation2 + $0x31] sm:$0xff]  ;;  %1392 = vst [vmem:[#allocation3 + $0x4] sm:$0xf] %v6069_v20  ;;  %v6072_v46 = vpack.c.bf16 %v1187_v16, %v1187_v16  ;;  %v1185_v41 = vmax.f32 %v956_v37, 0.0 }
 0x148   :  { %1443 = vst [vmem:[#allocation3 + $0x74] sm:$0xf] %v6080_v21  ;;  %1730 = vst [vmem:[#allocation3 + $0x68] sm:$0xf] %v6080_v21  ;;  %v6083_v40 = vpack.c.bf16 %v1406_v19, %v1406_v19  ;;  %v6254_v35 = vpop.f32.mrf.mxu0 }
 0x149   :  { %1639 = vst [vmem:[#allocation3 + $0x114] sm:$0xf] %v6069_v20  ;;  %1395 = vst [vmem:[#allocation3 + $0x70] sm:$0xf] %v6072_v46  ;;  %v6070_v17 = vpack.c.bf16 %v1185_v41, %v1185_v41  ;;  %v1190_v38 = vmax.f32 %v6254_v35, 0.0 }
 0x14a   :  { %v1404_v47 = vld [vmem:[#allocation2 + $0x21] sm:$0xff]  ;;  %v1405_v34 = vld [vmem:[#allocation2 + $0x29] sm:$0xff]  ;;  %1446 = vst [vmem:[#allocation3 + $0xe0] sm:$0xf] %v6083_v40  ;;  %1733 = vst [vmem:[#allocation3 + $0xd4] sm:$0xf] %v6083_v40  ;;  %v969_v18 = vpop.f32.mrf.mxu0 }
 0x14b   :  { %v6081_v36 = vpack.c.bf16 %v1404_v47, %v1404_v47  ;;  %v6082_v39 = vpack.c.bf16 %v1405_v34, %v1405_v34  ;;  %1682 = vst [vmem:[#allocation3 + $0x64] sm:$0xf] %v6072_v46  ;;  %1249 = vst [vmem:[#allocation2 + $0x48] sm:$0xff] %v1185_v41  ;;  %v6075_v21 = vpack.c.bf16 %v1190_v38, %v1190_v38  ;;  %v1188_v20 = vmax.f32 %v969_v18, 0.0 }
 0x14c   :  { %1393 = vst [vmem:[#allocation3 + $0x28] sm:$0xf] %v6070_v17  ;;  %1680 = vst [vmem:[#allocation3 + $0x1c] sm:$0xf] %v6070_v17  ;;  %v6255_v19 = vpop.f32.mrf.mxu0 }
 0x14d   :  { %1444 = vst [vmem:[#allocation3 + $0x98] sm:$0xf] %v6081_v36  ;;  %1445 = vst [vmem:[#allocation3 + $0xbc] sm:$0xf] %v6082_v39  ;;  %v6073_v40 = vpack.c.bf16 %v1188_v20, %v1188_v20  ;;  %v1191_v47 = vmax.f32 %v6255_v19, 0.0 }
 0x14e   :  { %1731 = vst [vmem:[#allocation3 + $0x8c] sm:$0xf] %v6081_v36  ;;  %1732 = vst [vmem:[#allocation3 + $0xb0] sm:$0xf] %v6082_v39  ;;  %v1407_v16 = vld [vmem:[#allocation2 + $0x39] sm:$0xff]  ;;  %v972_v46 = vpop.f32.mrf.mxu0 }
 0x14f   :  { %v6084_v37 = vpack.c.bf16 %v1407_v16, %v1407_v16  ;;  %1398 = vst [vmem:[#allocation3 + $0xdc] sm:$0xf] %v6075_v21  ;;  %1685 = vst [vmem:[#allocation3 + $0xd0] sm:$0xf] %v6075_v21  ;;  %v6076_v41 = vpack.c.bf16 %v1191_v47, %v1191_v47  ;;  %v1189_v34 = vmax.f32 %v972_v46, 0.0 }
 0x150   :  { %1396 = vst [vmem:[#allocation3 + $0x94] sm:$0xf] %v6073_v40  ;;  %1683 = vst [vmem:[#allocation3 + $0x88] sm:$0xf] %v6073_v40  ;;  %v6258_v36 = vpop.f32.mrf.mxu0 }
 0x151   :  { %1447 = vst [vmem:[#allocation3 + $0x104] sm:$0xf] %v6084_v37  ;;  %1734 = vst [vmem:[#allocation3 + $0xf8] sm:$0xf] %v6084_v37  ;;  %v6074_v17 = vpack.c.bf16 %v1189_v34, %v1189_v34  ;;  %v1194_v38 = vmax.f32 %v6258_v36, 0.0 }
 0x152   :  { %v1695_v35 = vld [vmem:[#allocation2 + $0x41] sm:$0xff]  ;;  %1399 = vst [vmem:[#allocation3 + $0x100] sm:$0xf] %v6076_v41  ;;  %1686 = vst [vmem:[#allocation3 + $0xf4] sm:$0xf] %v6076_v41  ;;  %v985_v18 = vpop.f32.mrf.mxu0 }
 0x153   :  { %v6132_v39 = vpack.c.bf16 %v1695_v35, %v1695_v35  ;;  %1397 = vst [vmem:[#allocation3 + $0xb8] sm:$0xf] %v6074_v17  ;;  %1684 = vst [vmem:[#allocation3 + $0xac] sm:$0xf] %v6074_v17  ;;  %v6087_v21 = vpack.c.bf16 %v1194_v38, %v1194_v38  ;;  %v1192_v20 = vmax.f32 %v985_v18, 0.0 }
 0x154   :  { %1258 = vst [vmem:[#allocation2 + $0x90] sm:$0xff] %v1194_v38  ;;  %v6259_v16 = vpop.f32.mrf.mxu0 }
 0x155   :  { %1735 = vst [vmem:[#allocation3 + $0x11c] sm:$0xf] %v6132_v39  ;;  %1490 = vst [vmem:[#allocation3 + $0x54] sm:$0xf] %v6087_v21  ;;  %v6085_v19 = vpack.c.bf16 %v1192_v20, %v1192_v20  ;;  %v1195_v37 = vmax.f32 %v6259_v16, 0.0 }
 0x156   :  { %1256 = vst [vmem:[#allocation2 + $0x80] sm:$0xff] %v1192_v20  ;;  %v988_v40 = vpop.f32.mrf.mxu0 }
 0x157   :  { %1488 = vst [vmem:[#allocation3 + $0xc] sm:$0xf] %v6085_v19  ;;  %1687 = vst [vmem:[#allocation3 + $0x118] sm:$0xf] %v6085_v19  ;;  %v6088_v47 = vpack.c.bf16 %v1195_v37, %v1195_v37  ;;  %v1193_v46 = vmax.f32 %v988_v40, 0.0 }
 0x158   :  { %1259 = vst [vmem:[#allocation2 + $0x98] sm:$0xff] %v1195_v37  ;;  %v6262_v41 = vpop.f32.mrf.mxu0 }
 0x159   :  { %1491 = vst [vmem:[#allocation3 + $0x78] sm:$0xf] %v6088_v47  ;;  %1257 = vst [vmem:[#allocation2 + $0x88] sm:$0xff] %v1193_v46  ;;  %v6086_v34 = vpack.c.bf16 %v1193_v46, %v1193_v46  ;;  %v1198_v35 = vmax.f32 %v6262_v41, 0.0 }
 0x15a   :  { %v1001_v36 = vpop.f32.mrf.mxu0 }
 0x15b   :  { %1489 = vst [vmem:[#allocation3 + $0x30] sm:$0xf] %v6086_v34  ;;  %1262 = vst [vmem:[#allocation2 + $0xb0] sm:$0xff] %v1198_v35  ;;  %v6091_v39 = vpack.c.bf16 %v1198_v35, %v1198_v35  ;;  %v1196_v17 = vmax.f32 %v1001_v36, 0.0 }
 0x15c   :  { %v6263_v38 = vpop.f32.mrf.mxu0 }
 0x15d   :  { %1494 = vst [vmem:[#allocation3 + $0xe4] sm:$0xf] %v6091_v39  ;;  %1260 = vst [vmem:[#allocation2 + $0xa0] sm:$0xff] %v1196_v17  ;;  %v6089_v18 = vpack.c.bf16 %v1196_v17, %v1196_v17  ;;  %v1199_v21 = vmax.f32 %v6263_v38, 0.0 }
 0x15e   :  { %v1004_v16 = vpop.f32.mrf.mxu0 }
 0x15f   :  { %v1546_v20 = vld [vmem:[#allocation2 + $0x91] sm:$0xff]  ;;  %1492 = vst [vmem:[#allocation3 + $0x9c] sm:$0xf] %v6089_v18  ;;  %1263 = vst [vmem:[#allocation2 + $0xb8] sm:$0xff] %v1199_v21  ;;  %v6092_v37 = vpack.c.bf16 %v1199_v21, %v1199_v21  ;;  %v1197_v40 = vmax.f32 %v1004_v16, 0.0 }
 0x160   :  { %v6103_v19 = vpack.c.bf16 %v1546_v20, %v1546_v20  ;;  %v1544_v47 = vld [vmem:[#allocation2 + $0x81] sm:$0xff]  ;;  %v1545_v46 = vld [vmem:[#allocation2 + $0x89] sm:$0xff]  ;;  %v6266_v41 = vpop.f32.mrf.mxu0 }
 0x161   :  { %v6101_v34 = vpack.c.bf16 %v1544_v47, %v1544_v47  ;;  %v6102_v42 = vpack.c.bf16 %v1545_v46, %v1545_v46  ;;  %1495 = vst [vmem:[#allocation3 + $0x108] sm:$0xf] %v6092_v37  ;;  %1261 = vst [vmem:[#allocation2 + $0xa8] sm:$0xff] %v1197_v40  ;;  %v6090_v35 = vpack.c.bf16 %v1197_v40, %v1197_v40  ;;  %v1202_v36 = vmax.f32 %v6266_v41, 0.0 }
 0x162   :  { %1586 = vst [vmem:[#allocation3 + $0x5c] sm:$0xf] %v6103_v19  ;;  %v1017_v39 = vpop.f32.mrf.mxu0 }
 0x163   :  { %1584 = vst [vmem:[#allocation3 + $0x14] sm:$0xf] %v6101_v34  ;;  %1585 = vst [vmem:[#allocation3 + $0x38] sm:$0xf] %v6102_v42  ;;  %v6095_v17 = vpack.c.bf16 %v1202_v36, %v1202_v36  ;;  %v1200_v38 = vmax.f32 %v1017_v39, 0.0 }
 0x164   :  { %1493 = vst [vmem:[#allocation3 + $0xc0] sm:$0xf] %v6090_v35  ;;  %v1547_v18 = vld [vmem:[#allocation2 + $0x99] sm:$0xff]  ;;  %v6267_v20 = vpop.f32.mrf.mxu0 }
 0x165   :  { %v6104_v21 = vpack.c.bf16 %v1547_v18, %v1547_v18  ;;  %1538 = vst [vmem:[#allocation3 + $0x58] sm:$0xf] %v6095_v17  ;;  %1264 = vst [vmem:[#allocation2 + $0xc0] sm:$0xff] %v1200_v38  ;;  %v6093_v16 = vpack.c.bf16 %v1200_v38, %v1200_v38  ;;  %v1203_v43 = vmax.f32 %v6267_v20, 0.0 }
 0x166   :  { %v1550_v19 = vld [vmem:[#allocation2 + $0xb1] sm:$0xff]  ;;  %v1020_v47 = vpop.f32.mrf.mxu0 }
 0x167   :  { %1587 = vst [vmem:[#allocation3 + $0x80] sm:$0xf] %v6104_v21  ;;  %v6107_v37 = vpack.c.bf16 %v1550_v19, %v1550_v19  ;;  %1536 = vst [vmem:[#allocation3 + $0x10] sm:$0xf] %v6093_v16  ;;  %v6096_v40 = vpack.c.bf16 %v1203_v43, %v1203_v43  ;;  %v1201_v46 = vmax.f32 %v1020_v47, 0.0 }
 0x168   :  { %v1548_v41 = vld [vmem:[#allocation2 + $0xa1] sm:$0xff]  ;;  %v1549_v34 = vld [vmem:[#allocation2 + $0xa9] sm:$0xff]  ;;  %v6270_v42 = vpop.f32.mrf.mxu0 }
 0x169   :  { %1590 = vst [vmem:[#allocation3 + $0xec] sm:$0xf] %v6107_v37  ;;  %v6105_v35 = vpack.c.bf16 %v1548_v41, %v1548_v41  ;;  %v6106_v36 = vpack.c.bf16 %v1549_v34, %v1549_v34  ;;  %1539 = vst [vmem:[#allocation3 + $0x7c] sm:$0xf] %v6096_v40  ;;  %v6094_v39 = vpack.c.bf16 %v1201_v46, %v1201_v46  ;;  %v1206_v18 = vmax.f32 %v6270_v42, 0.0 }
 0x16a   :  { %v1033_v17 = vpop.f32.mrf.mxu0 }
 0x16b   :  { %1588 = vst [vmem:[#allocation3 + $0xa4] sm:$0xf] %v6105_v35  ;;  %1589 = vst [vmem:[#allocation3 + $0xc8] sm:$0xf] %v6106_v36  ;;  %v6099_v38 = vpack.c.bf16 %v1206_v18, %v1206_v18  ;;  %v1204_v20 = vmax.f32 %v1033_v17, 0.0 }
 0x16c   :  { %1537 = vst [vmem:[#allocation3 + $0x34] sm:$0xf] %v6094_v39  ;;  %v1551_v21 = vld [vmem:[#allocation2 + $0xb9] sm:$0xff]  ;;  %v6271_v19 = vpop.f32.mrf.mxu0 }
 0x16d   :  { %v6108_v16 = vpack.c.bf16 %v1551_v21, %v1551_v21  ;;  %1542 = vst [vmem:[#allocation3 + $0xe8] sm:$0xf] %v6099_v38  ;;  %v6097_v43 = vpack.c.bf16 %v1204_v20, %v1204_v20  ;;  %v1207_v47 = vmax.f32 %v6271_v19, 0.0 }
 0x16e   :  { %v1036_v22 = vpop.f32.mrf.mxu0 }
 0x16f   :  { %1591 = vst [vmem:[#allocation3 + $0x110] sm:$0xf] %v6108_v16  ;;  %1540 = vst [vmem:[#allocation3 + $0xa0] sm:$0xf] %v6097_v43  ;;  %v6100_v37 = vpack.c.bf16 %v1207_v47, %v1207_v47  ;;  %v1205_v41 = vmax.f32 %v1036_v22, 0.0 }
 0x170   :  { %v6274_v40 = vpop.f32.mrf.mxu0 }
 0x171   :  { %1543 = vst [vmem:[#allocation3 + $0x10c] sm:$0xf] %v6100_v37  ;;  %v6098_v46 = vpack.c.bf16 %v1205_v41, %v1205_v41  ;;  %v1210_v34 = vmax.f32 %v6274_v40, 0.0 }
 0x172   :  { %v1049_v42 = vpop.f32.mrf.mxu0 }
 0x173   :  { %1541 = vst [vmem:[#allocation3 + $0xc4] sm:$0xf] %v6098_v46  ;;  %1274 = vst [vmem:[#allocation2 + $0x110] sm:$0xff] %v1210_v34  ;;  %v6135_v35 = vpack.c.bf16 %v1210_v34, %v1210_v34  ;;  %v1208_v36 = vmax.f32 %v1049_v42, 0.0 }
 0x174   :  { %v6275_v39 = vpop.f32.mrf.mxu0 }
 0x175   :  { %1778 = vst [vmem:[#allocation3 + $0x168] sm:$0xf] %v6135_v35  ;;  %2065 = vst [vmem:[#allocation3 + $0x15c] sm:$0xf] %v6135_v35  ;;  %v6133_v18 = vpack.c.bf16 %v1208_v36, %v1208_v36  ;;  %v1211_v17 = vmax.f32 %v6275_v39, 0.0 }
 0x176   :  { %1272 = vst [vmem:[#allocation2 + $0x100] sm:$0xff] %v1208_v36  ;;  %v1052_v38 = vpop.f32.mrf.mxu0 }
 0x177   :  { %1776 = vst [vmem:[#allocation3 + $0x120] sm:$0xf] %v6133_v18  ;;  %1275 = vst [vmem:[#allocation2 + $0x118] sm:$0xff] %v1211_v17  ;;  %v6136_v20 = vpack.c.bf16 %v1211_v17, %v1211_v17  ;;  %v1209_v22 = vmax.f32 %v1052_v38, 0.0 }
 0x178   :  { %v6278_v21 = vpop.f32.mrf.mxu0 }
 0x179   :  { %1779 = vst [vmem:[#allocation3 + $0x18c] sm:$0xf] %v6136_v20  ;;  %2066 = vst [vmem:[#allocation3 + $0x180] sm:$0xf] %v6136_v20  ;;  %v6134_v19 = vpack.c.bf16 %v1209_v22, %v1209_v22  ;;  %v1214_v16 = vmax.f32 %v6278_v21, 0.0 }
 0x17a   :  { %1273 = vst [vmem:[#allocation2 + $0x108] sm:$0xff] %v1209_v22  ;;  %v1065_v43 = vpop.f32.mrf.mxu0 }
 0x17b   :  { %1777 = vst [vmem:[#allocation3 + $0x144] sm:$0xf] %v6134_v19  ;;  %2064 = vst [vmem:[#allocation3 + $0x138] sm:$0xf] %v6134_v19  ;;  %v6139_v47 = vpack.c.bf16 %v1214_v16, %v1214_v16  ;;  %v1212_v37 = vmax.f32 %v1065_v43, 0.0 }
 0x17c   :  { %1278 = vst [vmem:[#allocation2 + $0x130] sm:$0xff] %v1214_v16  ;;  %v6279_v41 = vpop.f32.mrf.mxu0 }
 0x17d   :  { %1782 = vst [vmem:[#allocation3 + $0x1f8] sm:$0xf] %v6139_v47  ;;  %2069 = vst [vmem:[#allocation3 + $0x1ec] sm:$0xf] %v6139_v47  ;;  %v6137_v40 = vpack.c.bf16 %v1212_v37, %v1212_v37  ;;  %v1215_v46 = vmax.f32 %v6279_v41, 0.0 }
 0x17e   :  { %1276 = vst [vmem:[#allocation2 + $0x120] sm:$0xff] %v1212_v37  ;;  %v1834_v34 = vld [vmem:[#allocation2 + $0x111] sm:$0xff]  ;;  %v1068_v42 = vpop.f32.mrf.mxu0 }
 0x17f   :  { %v6151_v35 = vpack.c.bf16 %v1834_v34, %v1834_v34  ;;  %1780 = vst [vmem:[#allocation3 + $0x1b0] sm:$0xf] %v6137_v40  ;;  %2067 = vst [vmem:[#allocation3 + $0x1a4] sm:$0xf] %v6137_v40  ;;  %v6140_v36 = vpack.c.bf16 %v1215_v46, %v1215_v46  ;;  %v1213_v39 = vmax.f32 %v1068_v42, 0.0 }
 0x180   :  { %1279 = vst [vmem:[#allocation2 + $0x138] sm:$0xff] %v1215_v46  ;;  %v6282_v38 = vpop.f32.mrf.mxu0 }
 0x181   :  { %v1832_v18 = vld [vmem:[#allocation2 + $0x101] sm:$0xff]  ;;  %v1833_v17 = vld [vmem:[#allocation2 + $0x109] sm:$0xff]  ;;  %1874 = vst [vmem:[#allocation3 + $0x170] sm:$0xf] %v6151_v35  ;;  %2161 = vst [vmem:[#allocation3 + $0x164] sm:$0xf] %v6151_v35  ;;  %v6138_v21 = vpack.c.bf16 %v1213_v39, %v1213_v39 }
 0x182   :  { %v6149_v20 = vpack.c.bf16 %v1832_v18, %v1832_v18  ;;  %v6150_v22 = vpack.c.bf16 %v1833_v17, %v1833_v17  ;;  %1783 = vst [vmem:[#allocation3 + $0x21c] sm:$0xf] %v6140_v36  ;;  %2070 = vst [vmem:[#allocation3 + $0x210] sm:$0xf] %v6140_v36  ;;  %v1218_v19 = vmax.f32 %v6282_v38, 0.0  ;;  %v1081_v16 = vpop.f32.mrf.mxu0 }
 0x183   :  { %1277 = vst [vmem:[#allocation2 + $0x128] sm:$0xff] %v1213_v39  ;;  %1781 = vst [vmem:[#allocation3 + $0x1d4] sm:$0xf] %v6138_v21  ;;  %v1216_v47 = vmax.f32 %v1081_v16, 0.0 }
 0x184   :  { %1872 = vst [vmem:[#allocation3 + $0x128] sm:$0xf] %v6149_v20  ;;  %1873 = vst [vmem:[#allocation3 + $0x14c] sm:$0xf] %v6150_v22  ;;  %v6143_v43 = vpack.c.bf16 %v1218_v19, %v1218_v19  ;;  %v6283_v41 = vpop.f32.mrf.mxu0 }
 0x185   :  { %2160 = vst [vmem:[#allocation3 + $0x140] sm:$0xf] %v6150_v22  ;;  %2068 = vst [vmem:[#allocation3 + $0x1c8] sm:$0xf] %v6138_v21  ;;  %v1835_v37 = vld [vmem:[#allocation2 + $0x119] sm:$0xff]  ;;  %v6141_v46 = vpack.c.bf16 %v1216_v47, %v1216_v47  ;;  %v1219_v34 = vmax.f32 %v6283_v41, 0.0 }
 0x186   :  { %v6152_v40 = vpack.c.bf16 %v1835_v37, %v1835_v37  ;;  %1826 = vst [vmem:[#allocation3 + $0x16c] sm:$0xf] %v6143_v43  ;;  %2113 = vst [vmem:[#allocation3 + $0x160] sm:$0xf] %v6143_v43  ;;  %v1084_v35 = vpop.f32.mrf.mxu0 }
 0x187   :  { %1280 = vst [vmem:[#allocation2 + $0x140] sm:$0xff] %v1216_v47  ;;  %v1838_v42 = vld [vmem:[#allocation2 + $0x131] sm:$0xff]  ;;  %1824 = vst [vmem:[#allocation3 + $0x124] sm:$0xf] %v6141_v46  ;;  %v6144_v39 = vpack.c.bf16 %v1219_v34, %v1219_v34  ;;  %v1217_v18 = vmax.f32 %v1084_v35, 0.0 }
 0x188   :  { %1875 = vst [vmem:[#allocation3 + $0x194] sm:$0xf] %v6152_v40  ;;  %2162 = vst [vmem:[#allocation3 + $0x188] sm:$0xf] %v6152_v40  ;;  %v6155_v36 = vpack.c.bf16 %v1838_v42, %v1838_v42  ;;  %v6286_v20 = vpop.f32.mrf.mxu0 }
 0x189   :  { %2071 = vst [vmem:[#allocation3 + $0x234] sm:$0xf] %v6141_v46  ;;  %1827 = vst [vmem:[#allocation3 + $0x190] sm:$0xf] %v6144_v39  ;;  %v6142_v19 = vpack.c.bf16 %v1217_v18, %v1217_v18  ;;  %v1222_v16 = vmax.f32 %v6286_v20, 0.0 }
 0x18a   :  { %v1836_v17 = vld [vmem:[#allocation2 + $0x121] sm:$0xff]  ;;  %v1837_v38 = vld [vmem:[#allocation2 + $0x129] sm:$0xff]  ;;  %1878 = vst [vmem:[#allocation3 + $0x200] sm:$0xf] %v6155_v36  ;;  %2165 = vst [vmem:[#allocation3 + $0x1f4] sm:$0xf] %v6155_v36  ;;  %v1097_v43 = vpop.f32.mrf.mxu0 }
 0x18b   :  { %v6153_v22 = vpack.c.bf16 %v1836_v17, %v1836_v17  ;;  %v6154_v21 = vpack.c.bf16 %v1837_v38, %v1837_v38  ;;  %2114 = vst [vmem:[#allocation3 + $0x184] sm:$0xf] %v6144_v39  ;;  %1281 = vst [vmem:[#allocation2 + $0x148] sm:$0xff] %v1217_v18  ;;  %v6147_v47 = vpack.c.bf16 %v1222_v16, %v1222_v16  ;;  %v1220_v37 = vmax.f32 %v1097_v43, 0.0 }
 0x18c   :  { %1825 = vst [vmem:[#allocation3 + $0x148] sm:$0xf] %v6142_v19  ;;  %2112 = vst [vmem:[#allocation3 + $0x13c] sm:$0xf] %v6142_v19  ;;  %v6287_v40 = vpop.f32.mrf.mxu0 }
 0x18d   :  { %1876 = vst [vmem:[#allocation3 + $0x1b8] sm:$0xf] %v6153_v22  ;;  %1877 = vst [vmem:[#allocation3 + $0x1dc] sm:$0xf] %v6154_v21  ;;  %v6145_v34 = vpack.c.bf16 %v1220_v37, %v1220_v37  ;;  %v1223_v42 = vmax.f32 %v6287_v40, 0.0 }
 0x18e   :  { %2163 = vst [vmem:[#allocation3 + $0x1ac] sm:$0xf] %v6153_v22  ;;  %2164 = vst [vmem:[#allocation3 + $0x1d0] sm:$0xf] %v6154_v21  ;;  %v1839_v41 = vld [vmem:[#allocation2 + $0x139] sm:$0xff]  ;;  %v1100_v35 = vpop.f32.mrf.mxu0 }
 0x18f   :  { %v6156_v46 = vpack.c.bf16 %v1839_v41, %v1839_v41  ;;  %1830 = vst [vmem:[#allocation3 + $0x1fc] sm:$0xf] %v6147_v47  ;;  %2117 = vst [vmem:[#allocation3 + $0x1f0] sm:$0xf] %v6147_v47  ;;  %v6148_v36 = vpack.c.bf16 %v1223_v42, %v1223_v42  ;;  %v1221_v39 = vmax.f32 %v1100_v35, 0.0 }
 0x190   :  { %1828 = vst [vmem:[#allocation3 + $0x1b4] sm:$0xf] %v6145_v34  ;;  %2115 = vst [vmem:[#allocation3 + $0x1a8] sm:$0xf] %v6145_v34  ;;  %v6290_v17 = vpop.f32.mrf.mxu0 }
 0x191   :  { %1879 = vst [vmem:[#allocation3 + $0x224] sm:$0xf] %v6156_v46  ;;  %2166 = vst [vmem:[#allocation3 + $0x218] sm:$0xf] %v6156_v46  ;;  %v6146_v20 = vpack.c.bf16 %v1221_v39, %v1221_v39  ;;  %v1226_v22 = vmax.f32 %v6290_v17, 0.0 }
 0x192   :  { %v2127_v18 = vld [vmem:[#allocation2 + $0x141] sm:$0xff]  ;;  %1831 = vst [vmem:[#allocation3 + $0x220] sm:$0xf] %v6148_v36  ;;  %2118 = vst [vmem:[#allocation3 + $0x214] sm:$0xf] %v6148_v36  ;;  %v1113_v21 = vpop.f32.mrf.mxu0 }
 0x193   :  { %v6204_v38 = vpack.c.bf16 %v2127_v18, %v2127_v18  ;;  %1829 = vst [vmem:[#allocation3 + $0x1d8] sm:$0xf] %v6146_v20  ;;  %2116 = vst [vmem:[#allocation3 + $0x1cc] sm:$0xf] %v6146_v20  ;;  %v6159_v19 = vpack.c.bf16 %v1226_v22, %v1226_v22  ;;  %v1224_v16 = vmax.f32 %v1113_v21, 0.0 }
 0x194   :  { %1290 = vst [vmem:[#allocation2 + $0x190] sm:$0xff] %v1226_v22  ;;  %v6291_v43 = vpop.f32.mrf.mxu0 }
 0x195   :  { %2167 = vst [vmem:[#allocation3 + $0x23c] sm:$0xf] %v6204_v38  ;;  %1922 = vst [vmem:[#allocation3 + $0x174] sm:$0xf] %v6159_v19  ;;  %v6157_v47 = vpack.c.bf16 %v1224_v16, %v1224_v16  ;;  %v1227_v37 = vmax.f32 %v6291_v43, 0.0 }
 0x196   :  { %1288 = vst [vmem:[#allocation2 + $0x180] sm:$0xff] %v1224_v16  ;;  %v1116_v41 = vpop.f32.mrf.mxu0 }
 0x197   :  { %1920 = vst [vmem:[#allocation3 + $0x12c] sm:$0xf] %v6157_v47  ;;  %2119 = vst [vmem:[#allocation3 + $0x238] sm:$0xf] %v6157_v47  ;;  %v6160_v40 = vpack.c.bf16 %v1227_v37, %v1227_v37  ;;  %v1225_v46 = vmax.f32 %v1116_v41, 0.0 }
 0x198   :  { %1291 = vst [vmem:[#allocation2 + $0x198] sm:$0xff] %v1227_v37  ;;  %v6294_v34 = vpop.f32.mrf.mxu0 }
 0x199   :  { %1923 = vst [vmem:[#allocation3 + $0x198] sm:$0xf] %v6160_v40  ;;  %1289 = vst [vmem:[#allocation2 + $0x188] sm:$0xff] %v1225_v46  ;;  %v6158_v42 = vpack.c.bf16 %v1225_v46, %v1225_v46  ;;  %v1230_v35 = vmax.f32 %v6294_v34, 0.0 }
 0x19a   :  { %v1129_v36 = vpop.f32.mrf.mxu0 }
 0x19b   :  { %1921 = vst [vmem:[#allocation3 + $0x150] sm:$0xf] %v6158_v42  ;;  %1294 = vst [vmem:[#allocation2 + $0x1b0] sm:$0xff] %v1230_v35  ;;  %v6163_v39 = vpack.c.bf16 %v1230_v35, %v1230_v35  ;;  %v1228_v18 = vmax.f32 %v1129_v36, 0.0 }
 0x19c   :  { %v6295_v17 = vpop.f32.mrf.mxu0 }
 0x19d   :  { %1926 = vst [vmem:[#allocation3 + $0x204] sm:$0xf] %v6163_v39  ;;  %1292 = vst [vmem:[#allocation2 + $0x1a0] sm:$0xff] %v1228_v18  ;;  %v6161_v38 = vpack.c.bf16 %v1228_v18, %v1228_v18  ;;  %v1231_v20 = vmax.f32 %v6295_v17, 0.0 }
 0x19e   :  { %v1132_v21 = vpop.f32.mrf.mxu0 }
 0x19f   :  { %v1978_v22 = vld [vmem:[#allocation2 + $0x191] sm:$0xff]  ;;  %1924 = vst [vmem:[#allocation3 + $0x1bc] sm:$0xf] %v6161_v38  ;;  %1295 = vst [vmem:[#allocation2 + $0x1b8] sm:$0xff] %v1231_v20  ;;  %v6164_v16 = vpack.c.bf16 %v1231_v20, %v1231_v20  ;;  %v1229_v43 = vmax.f32 %v1132_v21, 0.0 }
 0x1a0   :  { %v6175_v19 = vpack.c.bf16 %v1978_v22, %v1978_v22  ;;  %v1976_v47 = vld [vmem:[#allocation2 + $0x181] sm:$0xff]  ;;  %v1977_v37 = vld [vmem:[#allocation2 + $0x189] sm:$0xff]  ;;  %v6298_v41 = vpop.f32.mrf.mxu0 }
 0x1a1   :  { %v6173_v40 = vpack.c.bf16 %v1976_v47, %v1976_v47  ;;  %v6174_v46 = vpack.c.bf16 %v1977_v37, %v1977_v37  ;;  %1927 = vst [vmem:[#allocation3 + $0x228] sm:$0xf] %v6164_v16  ;;  %1293 = vst [vmem:[#allocation2 + $0x1a8] sm:$0xff] %v1229_v43  ;;  %v6162_v34 = vpack.c.bf16 %v1229_v43, %v1229_v43  ;;  %v1234_v42 = vmax.f32 %v6298_v41, 0.0 }
 0x1a2   :  { %2018 = vst [vmem:[#allocation3 + $0x17c] sm:$0xf] %v6175_v19  ;;  %v1145_v35 = vpop.f32.mrf.mxu0 }
 0x1a3   :  { %2016 = vst [vmem:[#allocation3 + $0x134] sm:$0xf] %v6173_v40  ;;  %2017 = vst [vmem:[#allocation3 + $0x158] sm:$0xf] %v6174_v46  ;;  %v6167_v36 = vpack.c.bf16 %v1234_v42, %v1234_v42  ;;  %v1232_v39 = vmax.f32 %v1145_v35, 0.0 }
 0x1a4   :  { %1925 = vst [vmem:[#allocation3 + $0x1e0] sm:$0xf] %v6162_v34  ;;  %v1979_v18 = vld [vmem:[#allocation2 + $0x199] sm:$0xff]  ;;  %v6299_v17 = vpop.f32.mrf.mxu0 }
 0x1a5   :  { %v6176_v38 = vpack.c.bf16 %v1979_v18, %v1979_v18  ;;  %1970 = vst [vmem:[#allocation3 + $0x178] sm:$0xf] %v6167_v36  ;;  %1296 = vst [vmem:[#allocation2 + $0x1c0] sm:$0xff] %v1232_v39  ;;  %v6165_v20 = vpack.c.bf16 %v1232_v39, %v1232_v39  ;;  %v1235_v22 = vmax.f32 %v6299_v17, 0.0 }
 0x1a6   :  { %v1982_v21 = vld [vmem:[#allocation2 + $0x1b1] sm:$0xff]  ;;  %v1148_v19 = vpop.f32.mrf.mxu0 }
 0x1a7   :  { %2019 = vst [vmem:[#allocation3 + $0x1a0] sm:$0xf] %v6176_v38  ;;  %v6179_v16 = vpack.c.bf16 %v1982_v21, %v1982_v21  ;;  %1968 = vst [vmem:[#allocation3 + $0x130] sm:$0xf] %v6165_v20  ;;  %v6168_v43 = vpack.c.bf16 %v1235_v22, %v1235_v22  ;;  %v1233_v47 = vmax.f32 %v1148_v19, 0.0 }
 0x1a8   :  { %v1980_v37 = vld [vmem:[#allocation2 + $0x1a1] sm:$0xff]  ;;  %v1981_v41 = vld [vmem:[#allocation2 + $0x1a9] sm:$0xff]  ;;  %v6302_v40 = vpop.f32.mrf.mxu0 }
 0x1a9   :  { %2022 = vst [vmem:[#allocation3 + $0x20c] sm:$0xf] %v6179_v16  ;;  %v6177_v46 = vpack.c.bf16 %v1980_v37, %v1980_v37  ;;  %v6178_v34 = vpack.c.bf16 %v1981_v41, %v1981_v41  ;;  %1971 = vst [vmem:[#allocation3 + $0x19c] sm:$0xf] %v6168_v43  ;;  %v6166_v42 = vpack.c.bf16 %v1233_v47, %v1233_v47  ;;  %v1238_v35 = vmax.f32 %v6302_v40, 0.0 }
 0x1aa   :  { %v1161_v36 = vpop.f32.mrf.mxu0  ;;  %v5929_v47 = vcombine.high %v6589_v14, %v6594_v15  ;;  %v5928_v41 = vcombine.low %v6589_v14, %v6594_v15  ;;  %v5927_v40 = vcombine.high %v6579_v12, %v6584_v13 }
 0x1ab   :  { %2020 = vst [vmem:[#allocation3 + $0x1c4] sm:$0xf] %v6177_v46  ;;  %2021 = vst [vmem:[#allocation3 + $0x1e8] sm:$0xf] %v6178_v34  ;;  %v6171_v39 = vpack.c.bf16 %v1238_v35, %v1238_v35  ;;  %v1236_v18 = vmax.f32 %v1161_v36, 0.0 }
 0x1ac   :  { %1969 = vst [vmem:[#allocation3 + $0x154] sm:$0xf] %v6166_v42  ;;  %v1983_v17 = vld [vmem:[#allocation2 + $0x1b9] sm:$0xff]  ;;  %v6303_v38 = vpop.f32.mrf.mxu0 }
 0x1ad   :  { %v6180_v20 = vpack.c.bf16 %v1983_v17, %v1983_v17  ;;  %1974 = vst [vmem:[#allocation3 + $0x208] sm:$0xf] %v6171_v39  ;;  %v6169_v22 = vpack.c.bf16 %v1236_v18, %v1236_v18  ;;  %v1239_v21 = vmax.f32 %v6303_v38, 0.0 }
 0x1ae   :  { %v1164_v19 = vpop.f32.mrf.mxu0 }
 0x1af   :  { %2023 = vst [vmem:[#allocation3 + $0x230] sm:$0xf] %v6180_v20  ;;  %1972 = vst [vmem:[#allocation3 + $0x1c0] sm:$0xf] %v6169_v22  ;;  %v6172_v16 = vpack.c.bf16 %v1239_v21, %v1239_v21  ;;  %v1237_v37 = vmax.f32 %v1164_v19, 0.0 }
 0x1b1   :  { %1975 = vst [vmem:[#allocation3 + $0x22c] sm:$0xf] %v6172_v16  ;;  %v6170_v43 = vpack.c.bf16 %v1237_v37, %v1237_v37 }
 0x1b3   :  { %1973 = vst [vmem:[#allocation3 + $0x1e4] sm:$0xf] %v6170_v43 }
 0x1b4   :  { %6468 = dma.done.wait [#allocation7], 18432 }
 0x1b5   :  { %6469 = vsyncadd [#allocation7], 4294948864  ;;  %3484 = vmatprep.subr.bf16.mxu1 %v5929_v47  ;;  %v5926_v46 = vcombine.low %v6579_v12, %v6584_v13  ;;  %v5925_v34 = vcombine.high %v6569_v10, %v6574_v11  ;;  %v5924_v42 = vcombine.low %v6569_v10, %v6574_v11  ;;  %v5923_v14 = vcombine.high %v6559_v8, %v6564_v9  ;;  %v6342_v36 = vld [vmem:[#allocation3 + $0x4] ss:$36 sps:$4 sm:$0xff]   ;;  %v10192_v22 = vld [vmem:[#allocation62_spill] sm:$0xff] }
 0x1b6   :  { %3485 = vmatpush1.bf16.msra.mxu1 %v5928_v41  ;;  %v5993_v15 = vcombine.high %v6909_v62, %v6914_v63  ;;  %v5992_v35 = vcombine.low %v6909_v62, %v6914_v63  ;;  %v5991_v12 = vcombine.high %v6899_v60, %v6904_v61  ;;  %3516 = vmatprep.mubr.bf16.mxu1 %v6342_v36  ;;  %v10188_v18 = vld [vmem:[#allocation64_spill] sm:$0xff]  ;;  %v10190_v20 = vld [vmem:[#allocation19_spill] sm:$0xff]  ;;  %v10193_v16 = vld [vmem:[#allocation18_spill] sm:$0xff] }
 0x1b7   :  { %3486 = vmatprep.subr.bf16.mxu1 %v5927_v40  ;;  %v5922_v10 = vcombine.low %v6559_v8, %v6564_v9  ;;  %v5990_v11 = vcombine.low %v6899_v60, %v6904_v61  ;;  %v5921_v13 = vcombine.high %v6549_v6, %v6554_v7  ;;  %v5989_v62 = vcombine.high %v6889_v58, %v6894_v59  ;;  %v6366_v61 = vld [vmem:[#allocation3 + $0x14] ss:$36 sps:$4 sm:$0xff]   ;;  %v10196_v41 = vld [vmem:[#allocation60_spill] sm:$0xff] }
 0x1b8   :  { %3710 = vmatprep.subr.bf16.mxu0 %v5993_v15  ;;  %v5920_v63 = vcombine.low %v6549_v6, %v6554_v7  ;;  %v5988_v8 = vcombine.low %v6889_v58, %v6894_v59  ;;  %v5919_v9 = vcombine.high %v6539_v4, %v6544_v5  ;;  %v5987_v60 = vcombine.high %v6879_v56, %v6884_v57  ;;  %v10194_v37 = vld [vmem:[#allocation17_spill] sm:$0xff]  ;;  %v10200_v36 = vld [vmem:[#allocation58_spill] sm:$0xff] }
 0x1b9   :  { %3711 = vmatpush1.bf16.msra.mxu0 %v5992_v35  ;;  %v5918_v39 = vcombine.low %v6539_v4, %v6544_v5  ;;  %v5986_v6 = vcombine.low %v6879_v56, %v6884_v57  ;;  %v5917_v7 = vcombine.high %v6529_v2, %v6534_v3  ;;  %v5985_v58 = vcombine.high %v6869_v54, %v6874_v55  ;;  %v10195_v47 = vld [vmem:[#allocation61_spill] sm:$0xff]  ;;  %v10199_v35 = vld [vmem:[#allocation59_spill] sm:$0xff] }
 0x1ba   :  { %3487 = vmatpush1.bf16.msra.mxu1 %v5926_v46  ;;  %3712 = vmatprep.subr.bf16.mxu0 %v5991_v12  ;;  %v5916_v59 = vcombine.low %v6529_v2, %v6534_v3  ;;  %v5984_v4 = vcombine.low %v6869_v54, %v6874_v55  ;;  %v5915_v5 = vcombine.high %v6519_v0, %v6524_v1 }
 0x1bb   :  { %3488 = vmatprep.subr.bf16.mxu1 %v5925_v34  ;;  %3742 = vmatprep.mubr.bf16.mxu0 %v6366_v61  ;;  %v5983_v56 = vcombine.high %v6859_v52, %v6864_v53  ;;  %v5914_v57 = vcombine.low %v6519_v0, %v6524_v1  ;;  %v5982_v2 = vcombine.low %v6859_v52, %v6864_v53  ;;  %v6340_v61 = vld [vmem:[#allocation3] ss:$36 sps:$4 sm:$0xff]  }
 0x1bc   :  { %v5945_v3 = vcombine.high %v6669_v30, %v6674_v31  ;;  %v5981_v54 = vcombine.high %v6849_v50, %v6854_v51  ;;  %v5944_v55 = vcombine.low %v6669_v30, %v6674_v31  ;;  %v5980_v0 = vcombine.low %v6849_v50, %v6854_v51 }
 0x1bd   :  { %3713 = vmatpush1.bf16.msra.mxu0 %v5990_v11  ;;  %v5943_v1 = vcombine.high %v6659_v28, %v6664_v29  ;;  %v5979_v52 = vcombine.high %v6839_v48, %v6844_v49  ;;  %v5942_v53 = vcombine.low %v6659_v28, %v6664_v29  ;;  %v5978_v30 = vcombine.low %v6839_v48, %v6844_v49 }
 0x1be   :  { %3489 = vmatpush1.bf16.msra.mxu1 %v5924_v42  ;;  %3714 = vmatprep.subr.bf16.mxu0 %v5989_v62  ;;  %v5941_v31 = vcombine.high %v6649_v26, %v6654_v27  ;;  %v6009_v50 = vcombine.high %v6989_v44, %v6994_v45  ;;  %v5940_v51 = vcombine.low %v6649_v26, %v6654_v27  ;;  %v10186_v27 = vld [vmem:[#allocation21_spill] sm:$0xff]  ;;  %v10197_v42 = vld [vmem:[#allocation16_spill] sm:$0xff] }
 0x1bf   :  { %3490 = vmatprep.subr.bf16.mxu1 %v5923_v14  ;;  %v6008_v28 = vcombine.low %v6989_v44, %v6994_v45  ;;  %v5939_v29 = vcombine.high %v6639_v24, %v6644_v25  ;;  %v6007_v48 = vcombine.high %v6979_v32, %v6984_v33  ;;  %v5938_v49 = vcombine.low %v6639_v24, %v6644_v25  ;;  %v10187_v45 = vld [vmem:[#allocation65_spill] sm:$0xff]  ;;  %v10189_v25 = vld [vmem:[#allocation20_spill] sm:$0xff]  ;;  %v10198_v14 = vld [vmem:[#allocation15_spill] sm:$0xff] }
 0x1c0   :  { %v6006_v26 = vcombine.low %v6979_v32, %v6984_v33  ;;  %v5937_v44 = vcombine.high %v10186_v27, %v6634_v23  ;;  %v6005_v17 = vcombine.high %v10188_v18, %v10187_v45  ;;  %v5936_v38 = vcombine.low %v10186_v27, %v6634_v23  ;;  %v10191_v33 = vld [vmem:[#allocation63_spill] sm:$0xff]  ;;  %v10202_v62 = vld [vmem:[#allocation36_spill] sm:$0xff] }
 0x1c1   :  { %3715 = vmatpush1.bf16.msra.mxu0 %v5988_v8  ;;  %v6004_v24 = vcombine.low %v10188_v18, %v10187_v45  ;;  %v5935_v32 = vcombine.high %v10190_v20, %v10189_v25  ;;  %v6003_v21 = vcombine.high %v10192_v22, %v10191_v33  ;;  %v5934_v19 = vcombine.low %v10190_v20, %v10189_v25  ;;  %v10203_v8 = vld [vmem:[#allocation57_spill] sm:$0xff]  ;;  %v10215_v27 = vld [vmem:[#allocation111_spill] sm:$0xff] }
 0x1c2   :  { %3491 = vmatpush1.bf16.msra.mxu1 %v5922_v10  ;;  %3716 = vmatprep.subr.bf16.mxu0 %v5987_v60  ;;  %v6002_v23 = vcombine.low %v10192_v22, %v10191_v33  ;;  %v5933_v43 = vcombine.high %v10194_v37, %v10193_v16  ;;  %v6001_v40 = vcombine.high %v10196_v41, %v10195_v47  ;;  %v6348_v20 = vld [vmem:[#allocation3 + $0x90] ss:$36 sps:$4 sm:$0xff]  }
 0x1c3   :  { %3492 = vmatprep.subr.bf16.mxu1 %v5921_v13  ;;  %v5932_v46 = vcombine.low %v10194_v37, %v10193_v16  ;;  %v6000_v34 = vcombine.low %v10196_v41, %v10195_v47  ;;  %v5931_v15 = vcombine.high %v10198_v14, %v10197_v42  ;;  %v5999_v12 = vcombine.high %v10200_v36, %v10199_v35  ;;  %v10201_v13 = vld [vmem:[#allocation37_spill] sm:$0xff]  ;;  %v10220_v33 = vld [vmem:[#allocation108_spill] sm:$0xff]  ;;  %v10222_v16 = vld [vmem:[#allocation26_spill] sm:$0xff] }
 0x1c4   :  { %v5930_v10 = vcombine.low %v10198_v14, %v10197_v42  ;;  %v5998_v11 = vcombine.low %v10200_v36, %v10199_v35  ;;  %v6376_v47 = vld [vmem:[#allocation3 + $0xa4] ss:$36 sps:$4 sm:$0xff]   ;;  %v10225_v14 = vld [vmem:[#allocation25_spill] sm:$0xff] }
 0x1c5   :  { %3717 = vmatpush1.bf16.msra.mxu0 %v5986_v6  ;;  %v6343_v6 = vld [vmem:[#allocation3 + $0x4c] ss:$36 sps:$4 sm:$0xff]  }
 0x1c6   :  { %3493 = vmatpush1.bf16.msra.mxu1 %v5920_v63  ;;  %3718 = vmatprep.subr.bf16.mxu0 %v5985_v58  ;;  %v5961_v63 = vcombine.high %v10202_v62, %v10201_v13  ;;  %v10206_v58 = vld [vmem:[#allocation34_spill] sm:$0xff] }
 0x1c7   :  { %3494 = vmatprep.subr.bf16.mxu1 %v5919_v9  ;;  %v10204_v9 = vld [vmem:[#allocation56_spill] sm:$0xff] }
 0x1c8   :  { %v5997_v60 = vcombine.high %v10204_v9, %v10203_v8 }
 0x1c9   :  { %3719 = vmatpush1.bf16.msra.mxu0 %v5984_v4  ;;  %v5996_v4 = vcombine.low %v10204_v9, %v10203_v8  ;;  %v10229_v8 = vld [vmem:[#allocation23_spill] sm:$0xff]  ;;  %v10230_v9 = vld [vmem:[#allocation22_spill] sm:$0xff] }
 0x1ca   :  { %3495 = vmatpush1.bf16.msra.mxu1 %v5918_v39  ;;  %3720 = vmatprep.subr.bf16.mxu0 %v5983_v56  ;;  %v5960_v39 = vcombine.low %v10202_v62, %v10201_v13  ;;  %v10208_v56 = vld [vmem:[#allocation54_spill] sm:$0xff] }
 0x1cb   :  { %3496 = vmatprep.subr.bf16.mxu1 %v5917_v7  ;;  %v10205_v7 = vld [vmem:[#allocation35_spill] sm:$0xff] }
 0x1cd   :  { %3721 = vmatpush1.bf16.msra.mxu0 %v5982_v2  ;;  %v5958_v2 = vcombine.low %v10206_v58, %v10205_v7 }
 0x1ce   :  { %3497 = vmatpush1.bf16.msra.mxu1 %v5916_v59  ;;  %3722 = vmatprep.subr.bf16.mxu0 %v5981_v54  ;;  %v5959_v59 = vcombine.high %v10206_v58, %v10205_v7  ;;  %v10210_v54 = vld [vmem:[#allocation32_spill] sm:$0xff]  ;;  %v10231_v7 = vld [vmem:[#allocation103_spill] sm:$0xff]  ;;  %v10232_v58 = vld [vmem:[#allocation102_spill] sm:$0xff] }
 0x1cf   :  { %3498 = vmatprep.subr.bf16.mxu1 %v5915_v5  ;;  %v10207_v5 = vld [vmem:[#allocation55_spill] sm:$0xff] }
 0x1d1   :  { %3723 = vmatpush1.bf16.msra.mxu0 %v5980_v0  ;;  %v5994_v0 = vcombine.low %v10208_v56, %v10207_v5 }
 0x1d2   :  { %3499 = vmatpush1.bf16.msra.mxu1 %v5914_v57  ;;  %3724 = vmatprep.subr.bf16.mxu0 %v5979_v52  ;;  %v5995_v57 = vcombine.high %v10208_v56, %v10207_v5  ;;  %v10212_v52 = vld [vmem:[#allocation112_spill] sm:$0xff]  ;;  %v10233_v5 = vld [vmem:[#allocation53_spill] sm:$0xff] }
 0x1d3   :  { %3500 = vmatprep.subr.bf16.mxu1 %v5945_v3  ;;  %v10209_v3 = vld [vmem:[#allocation33_spill] sm:$0xff]  ;;  %v10234_v56 = vld [vmem:[#allocation52_spill] sm:$0xff] }
 0x1d5   :  { %3725 = vmatpush1.bf16.msra.mxu0 %v5978_v30  ;;  %v6345_v30 = vld [vmem:[#allocation3 + $0x48] ss:$36 sps:$4 sm:$0xff]  }
 0x1d6   :  { %3501 = vmatpush2.bf16.msra.mxu1 %v5944_v55  ;;  %3726 = vmatprep.subr.bf16.mxu0 %v6009_v50  ;;  %v5957_v55 = vcombine.high %v10210_v54, %v10209_v3  ;;  %v6346_v50 = vld [vmem:[#allocation3 + $0x94] ss:$36 sps:$4 sm:$0xff]  }
 0x1d7   :  { %3502 = vmatprep.subr.bf16.mxu1 %v5943_v1  ;;  %v10211_v1 = vld [vmem:[#allocation113_spill] sm:$0xff] }
 0x1d9   :  { %3727 = vmatpush2.bf16.msra.mxu0 %v6008_v28  ;;  %v10214_v28 = vld [vmem:[#allocation30_spill] sm:$0xff] }
 0x1da   :  { %3503 = vmatpush2.bf16.msra.mxu1 %v5942_v53  ;;  %3728 = vmatprep.subr.bf16.mxu0 %v6007_v48  ;;  %v6057_v53 = vcombine.high %v10212_v52, %v10211_v1  ;;  %v6364_v48 = vld [vmem:[#allocation3 + $0x10] ss:$36 sps:$4 sm:$0xff]  }
 0x1db   :  { %3504 = vmatprep.subr.bf16.mxu1 %v5941_v31  ;;  %v5956_v31 = vcombine.low %v10210_v54, %v10209_v3  ;;  %v6354_v3 = vld [vmem:[#allocation3 + $0x120] ss:$36 sps:$4 sm:$0xff]   ;;  %v10235_v54 = vld [vmem:[#allocation101_spill] sm:$0xff] }
 0x1dd   :  { %3729 = vmatpush2.bf16.msra.mxu0 %v6006_v26  ;;  %v6370_v26 = vld [vmem:[#allocation3 + $0x5c] ss:$36 sps:$4 sm:$0xff]  }
 0x1de   :  { %3505 = vmatpush2.bf16.msra.mxu1 %v5940_v51  ;;  %3730 = vmatprep.subr.bf16.mxu0 %v6005_v17  ;;  %v10213_v51 = vld [vmem:[#allocation31_spill] sm:$0xff]  ;;  %v10217_v17 = vld [vmem:[#allocation29_spill] sm:$0xff] }
 0x1df   :  { %3506 = vmatprep.subr.bf16.mxu1 %v5939_v29  ;;  %v5955_v29 = vcombine.high %v10214_v28, %v10213_v51  ;;  %v5954_v18 = vcombine.low %v10214_v28, %v10213_v51  ;;  %v6388_v51 = vld [vmem:[#allocation3 + $0x134] ss:$36 sps:$4 sm:$0xff]  }
 0x1e1   :  { %3731 = vmatpush2.bf16.msra.mxu0 %v6004_v24 }
 0x1e2   :  { %3507 = vmatpush2.bf16.msra.mxu1 %v5938_v49  ;;  %3732 = vmatprep.subr.bf16.mxu0 %v6003_v21  ;;  %v6056_v49 = vcombine.low %v10212_v52, %v10211_v1  ;;  %v5976_v1 = vcombine.low %v10234_v56, %v10233_v5  ;;  %v6355_v52 = vld [vmem:[#allocation3 + $0x16c] ss:$36 sps:$4 sm:$0xff]  }
 0x1e3   :  { %3508 = vmatprep.subr.bf16.mxu1 %v5937_v44  ;;  %v10216_v44 = vld [vmem:[#allocation110_spill] sm:$0xff] }
 0x1e4   :  { %v6055_v45 = vcombine.high %v10216_v44, %v10215_v27  ;;  %v6054_v25 = vcombine.low %v10216_v44, %v10215_v27  ;;  %v10241_v27 = vld [vmem:[#allocation49_spill] sm:$0xff]  ;;  %v10242_v44 = vld [vmem:[#allocation48_spill] sm:$0xff] }
 0x1e5   :  { %3733 = vmatpush2.bf16.msra.mxu0 %v6002_v23  ;;  %v10221_v23 = vld [vmem:[#allocation27_spill] sm:$0xff] }
 0x1e6   :  { %3509 = vmatpush2.bf16.msra.mxu1 %v5936_v38  ;;  %3734 = vmatprep.subr.bf16.mxu0 %v6001_v40  ;;  %v10218_v38 = vld [vmem:[#allocation28_spill] sm:$0xff]  ;;  %v5951_v37 = vcombine.high %v10222_v16, %v10221_v23  ;;  %v10223_v40 = vld [vmem:[#allocation107_spill] sm:$0xff]  ;;  %v5950_v42 = vcombine.low %v10222_v16, %v10221_v23 }
 0x1e7   :  { %3510 = vmatprep.subr.bf16.mxu1 %v5935_v32  ;;  %v5953_v24 = vcombine.high %v10218_v38, %v10217_v17  ;;  %v10219_v32 = vld [vmem:[#allocation109_spill] sm:$0xff]  ;;  %v5952_v21 = vcombine.low %v10218_v38, %v10217_v17  ;;  %v6357_v17 = vld [vmem:[#allocation3 + $0x168] ss:$36 sps:$4 sm:$0xff]   ;;  %v5972_v38 = vcombine.low %v10242_v44, %v10241_v27 }
 0x1e8   :  { %v6053_v22 = vcombine.high %v10220_v33, %v10219_v32  ;;  %v6052_v41 = vcombine.low %v10220_v33, %v10219_v32  ;;  %v6390_v33 = vld [vmem:[#allocation3 + $0x130] ss:$36 sps:$4 sm:$0xff]  }
 0x1e9   :  { %3735 = vmatpush2.bf16.msra.mxu0 %v6000_v34  ;;  %v10246_v23 = vld [vmem:[#allocation44_spill] sm:$0xff] }
 0x1ea   :  { %3511 = vmatpush2.bf16.msra.mxu1 %v5934_v19  ;;  %3736 = vmatprep.subr.bf16.mxu0 %v5999_v12  ;;  %v6349_v19 = vld [vmem:[#allocation3 + $0xdc] ss:$36 sps:$4 sm:$0xff]  }
 0x1eb   :  { %3512 = vmatprep.subr.bf16.mxu1 %v5933_v43  ;;  %v6372_v43 = vld [vmem:[#allocation3 + $0x58] ss:$36 sps:$4 sm:$0xff]  }
 0x1ec   :  { %v6351_v12 = vld [vmem:[#allocation3 + $0xd8] ss:$36 sps:$4 sm:$0xff]  }
 0x1ed   :  { %3737 = vmatpush2.bf16.msra.mxu0 %v5998_v11  ;;  %v10228_v11 = vld [vmem:[#allocation104_spill] sm:$0xff] }
 0x1ee   :  { %3513 = vmatpush2.bf16.msra.mxu1 %v5932_v46  ;;  %3738 = vmatprep.subr.bf16.mxu0 %v5997_v60  ;;  %v10224_v46 = vld [vmem:[#allocation106_spill] sm:$0xff]  ;;  %v5947_v60 = vcombine.high %v10230_v9, %v10229_v8 }
 0x1ef   :  { %3514 = vmatprep.subr.bf16.mxu1 %v5931_v15  ;;  %v6051_v34 = vcombine.high %v10224_v46, %v10223_v40  ;;  %v10226_v15 = vld [vmem:[#allocation24_spill] sm:$0xff]  ;;  %v6050_v36 = vcombine.low %v10224_v46, %v10223_v40  ;;  %v10248_v40 = vld [vmem:[#allocation42_spill] sm:$0xff] }
 0x1f0   :  { %v5949_v35 = vcombine.high %v10226_v15, %v10225_v14  ;;  %v5948_v62 = vcombine.low %v10226_v15, %v10225_v14  ;;  %v10249_v15 = vld [vmem:[#allocation41_spill] sm:$0xff] }
 0x1f1   :  { %3739 = vmatpush2.bf16.msra.mxu0 %v5996_v4  ;;  %v5946_v4 = vcombine.low %v10230_v9, %v10229_v8  ;;  %v6402_v8 = vld [vmem:[#allocation3 + $0x1c0] ss:$36 sps:$4 sm:$0xff]   ;;  %v6406_v9 = vld [vmem:[#allocation3 + $0x20c] ss:$36 sps:$4 sm:$0xff]  }
 0x1f2   :  { %3515 = vmatpush2.bf16.msra.mxu1 %v5930_v10  ;;  %3740 = vmatprep.subr.bf16.mxu0 %v5995_v57  ;;  %v10227_v10 = vld [vmem:[#allocation105_spill] sm:$0xff]  ;;  %v5977_v57 = vcombine.high %v10234_v56, %v10233_v5  ;;  %v10256_v5 = vld [vmem:[#allocation78_spill] sm:$0xff] }
 0x1f3   :  { %3597 = vmatprep.subr.bf16.mxu1 %v5961_v63  ;;  %v6049_v13 = vcombine.high %v10228_v11, %v10227_v10  ;;  %v6352_v63 = vld [vmem:[#allocation3 + $0x124] ss:$36 sps:$4 sm:$0xff]  }
 0x1f5   :  { %3517 = vmatmul.mubr.bf16.vlgmr.msra.gmra.mxu1 %v6340_v61  ;;  %3741 = vmatpush2.bf16.msra.mxu0 %v5994_v0  ;;  %v6378_v61 = vld [vmem:[#allocation3 + $0xa0] ss:$36 sps:$4 sm:$0xff]  }
 0x1f6   :  { %3598 = vmatpush1.bf16.msra.mxu1 %v5960_v39  ;;  %3526 = vmatprep.mubr.bf16.mxu1 %v6343_v6  ;;  %v6382_v39 = vld [vmem:[#allocation3 + $0xec] ss:$36 sps:$4 sm:$0xff]   ;;  %v6048_v6 = vcombine.low %v10228_v11, %v10227_v10 }
 0x1f7   :  { %3599 = vmatprep.subr.bf16.mxu1 %v5959_v59  ;;  %3936 = vmatprep.subr.bf16.mxu0 %v6057_v53  ;;  %v6047_v59 = vcombine.high %v10232_v58, %v10231_v7  ;;  %v10237_v53 = vld [vmem:[#allocation51_spill] sm:$0xff]  ;;  %v6369_v11 = vld [vmem:[#allocation3 + $0xc] ss:$36 sps:$4 sm:$0xff]  }
 0x1f8   :  { %3743 = vmatmul.mubr.bf16.vlgmr.msra.gmra.mxu0 %v6364_v48  ;;  %v10240_v48 = vld [vmem:[#allocation98_spill] sm:$0xff] }
 0x1f9   :  { %3937 = vmatpush1.bf16.msra.mxu0 %v6056_v49  ;;  %3752 = vmatprep.mubr.bf16.mxu0 %v6370_v26 }
 0x1fa   :  { %3600 = vmatpush1.bf16.msra.mxu1 %v5958_v2  ;;  %3938 = vmatprep.subr.bf16.mxu0 %v6055_v45  ;;  %v6046_v2 = vcombine.low %v10232_v58, %v10231_v7  ;;  %v5973_v45 = vcombine.high %v10242_v44, %v10241_v27  ;;  %v6367_v7 = vld [vmem:[#allocation3 + $0x8] ss:$36 sps:$4 sm:$0xff]  }
 0x1fb   :  { %3601 = vmatprep.subr.bf16.mxu1 %v5957_v55  ;;  %v10236_v55 = vld [vmem:[#allocation100_spill] sm:$0xff] }
 0x1fc   :  { %v6045_v0 = vcombine.high %v10236_v55, %v10235_v54  ;;  %v6044_v28 = vcombine.low %v10236_v55, %v10235_v54  ;;  %v10258_v54 = vld [vmem:[#allocation76_spill] sm:$0xff] }
 0x1fd   :  { %3527 = vmatmul.mubr.bf16.gmra.mxu1 %v6345_v30  ;;  %3939 = vmatpush1.bf16.msra.mxu0 %v6054_v25  ;;  %v10238_v30 = vld [vmem:[#allocation50_spill] sm:$0xff]  ;;  %v10243_v25 = vld [vmem:[#allocation47_spill] sm:$0xff] }
 0x1fe   :  { %3602 = vmatpush1.bf16.msra.mxu1 %v5956_v31  ;;  %3536 = vmatprep.mubr.bf16.mxu1 %v6346_v50  ;;  %v5975_v31 = vcombine.high %v10238_v30, %v10237_v53  ;;  %v6384_v50 = vld [vmem:[#allocation3 + $0xe8] ss:$36 sps:$4 sm:$0xff]   ;;  %v5974_v26 = vcombine.low %v10238_v30, %v10237_v53  ;;  %v6379_v53 = vld [vmem:[#allocation3 + $0x9c] ss:$36 sps:$4 sm:$0xff]  }
 0x1ff   :  { %3603 = vmatprep.subr.bf16.mxu1 %v5955_v29  ;;  %3940 = vmatprep.subr.bf16.mxu0 %v6053_v22  ;;  %v10239_v29 = vld [vmem:[#allocation99_spill] sm:$0xff] }
 0x200   :  { %3753 = vmatmul.mubr.bf16.gmra.mxu0 %v6372_v43  ;;  %v6043_v49 = vcombine.high %v10240_v48, %v10239_v29  ;;  %v6394_v22 = vld [vmem:[#allocation3 + $0x17c] ss:$36 sps:$4 sm:$0xff]   ;;  %v6385_v44 = vld [vmem:[#allocation3 + $0xe4] ss:$36 sps:$4 sm:$0xff]  }
 0x201   :  { %3762 = vmatprep.mubr.bf16.mxu0 %v6376_v47  ;;  %3941 = vmatpush1.bf16.msra.mxu0 %v6052_v41  ;;  %v6361_v47 = vld [vmem:[#allocation3 + $0x1fc] ss:$36 sps:$4 sm:$0xff]  }
 0x202   :  { %3604 = vmatpush1.bf16.msra.mxu1 %v5954_v18  ;;  %3942 = vmatprep.subr.bf16.mxu0 %v6051_v34  ;;  %v6042_v18 = vcombine.low %v10240_v48, %v10239_v29  ;;  %v10247_v41 = vld [vmem:[#allocation43_spill] sm:$0xff]  ;;  %v6396_v34 = vld [vmem:[#allocation3 + $0x178] ss:$36 sps:$4 sm:$0xff]   ;;  %v10262_v48 = vld [vmem:[#allocation72_spill] sm:$0xff] }
 0x203   :  { %3605 = vmatprep.subr.bf16.mxu1 %v5953_v24  ;;  %v6358_v24 = vld [vmem:[#allocation3 + $0x1b4] ss:$36 sps:$4 sm:$0xff]   ;;  %v5967_v46 = vcombine.high %v10248_v40, %v10247_v41  ;;  %v5966_v14 = vcombine.low %v10248_v40, %v10247_v41  ;;  %v10259_v30 = vld [vmem:[#allocation75_spill] sm:$0xff]  ;;  %v10270_v41 = vld [vmem:[#allocation96_spill] sm:$0xff] }
 0x204   :  { %v10261_v29 = vld [vmem:[#allocation73_spill] sm:$0xff] }
 0x205   :  { %3537 = vmatmul.mubr.bf16.gmra.mxu1 %v6348_v20  ;;  %3943 = vmatpush1.bf16.msra.mxu0 %v6050_v36  ;;  %v10244_v20 = vld [vmem:[#allocation46_spill] sm:$0xff]  ;;  %v6016_v27 = vcombine.low %v10262_v48, %v10261_v29 }
 0x206   :  { %3606 = vmatpush1.bf16.msra.mxu1 %v5952_v21  ;;  %3546 = vmatprep.mubr.bf16.mxu1 %v6349_v19  ;;  %v5971_v32 = vcombine.high %v10244_v20, %v10243_v25  ;;  %v5970_v21 = vcombine.low %v10244_v20, %v10243_v25  ;;  %v10245_v19 = vld [vmem:[#allocation45_spill] sm:$0xff]  ;;  %v10266_v20 = vld [vmem:[#allocation68_spill] sm:$0xff] }
 0x207   :  { %3607 = vmatprep.subr.bf16.mxu1 %v5951_v37  ;;  %3944 = vmatprep.subr.bf16.mxu0 %v6049_v13  ;;  %v5969_v16 = vcombine.high %v10246_v23, %v10245_v19  ;;  %v6360_v37 = vld [vmem:[#allocation3 + $0x1b0] ss:$36 sps:$4 sm:$0xff]   ;;  %v5968_v43 = vcombine.low %v10246_v23, %v10245_v19  ;;  %v10251_v13 = vld [vmem:[#allocation39_spill] sm:$0xff]  ;;  %v10268_v23 = vld [vmem:[#allocation66_spill] sm:$0xff] }
 0x208   :  { %3763 = vmatmul.mubr.bf16.gmra.mxu0 %v6378_v61  ;;  %v10253_v61 = vld [vmem:[#allocation81_spill] sm:$0xff]  ;;  %v10267_v19 = vld [vmem:[#allocation67_spill] sm:$0xff] }
 0x209   :  { %3772 = vmatprep.mubr.bf16.mxu0 %v6382_v39  ;;  %3945 = vmatpush1.bf16.msra.mxu0 %v6048_v6  ;;  %v10254_v39 = vld [vmem:[#allocation80_spill] sm:$0xff]  ;;  %v10265_v25 = vld [vmem:[#allocation69_spill] sm:$0xff] }
 0x20a   :  { %3608 = vmatpush1.bf16.msra.mxu1 %v5950_v42  ;;  %3946 = vmatprep.subr.bf16.mxu0 %v6047_v59  ;;  %v6400_v42 = vld [vmem:[#allocation3 + $0x1c4] ss:$36 sps:$4 sm:$0xff]   ;;  %v6025_v6 = vcombine.high %v10254_v39, %v10253_v61  ;;  %v6024_v58 = vcombine.low %v10254_v39, %v10253_v61  ;;  %v6373_v59 = vld [vmem:[#allocation3 + $0x54] ss:$36 sps:$4 sm:$0xff]  }
 0x20b   :  { %3609 = vmatprep.subr.bf16.mxu1 %v5949_v35  ;;  %v10250_v35 = vld [vmem:[#allocation40_spill] sm:$0xff]  ;;  %v6428_v39 = vld [vmem:[#allocation3 + $0x140] ss:$36 sps:$4 sm:$0xff]  }
 0x20c   :  { %v5965_v36 = vcombine.high %v10250_v35, %v10249_v15  ;;  %v5964_v10 = vcombine.low %v10250_v35, %v10249_v15  ;;  %v10272_v15 = vld [vmem:[#allocation94_spill] sm:$0xff] }
 0x20d   :  { %3547 = vmatmul.mubr.bf16.gmra.mxu1 %v6351_v12  ;;  %3947 = vmatpush1.bf16.msra.mxu0 %v6046_v2  ;;  %v6363_v12 = vld [vmem:[#allocation3 + $0x1f8] ss:$36 sps:$4 sm:$0xff]  }
 0x20e   :  { %3610 = vmatpush1.bf16.msra.mxu1 %v5948_v62  ;;  %3556 = vmatprep.mubr.bf16.mxu1 %v6352_v63  ;;  %v10252_v62 = vld [vmem:[#allocation38_spill] sm:$0xff] }
 0x20f   :  { %3611 = vmatprep.subr.bf16.mxu1 %v5947_v60  ;;  %3948 = vmatprep.subr.bf16.mxu0 %v6045_v0  ;;  %v5963_v63 = vcombine.high %v10252_v62, %v10251_v13  ;;  %v5962_v60 = vcombine.low %v10252_v62, %v10251_v13  ;;  %v6474_v0 = vmov 0   ;;  %v6399_v62 = vld [vmem:[#allocation3 + $0x170] ss:$36 sps:$4 sm:$0xff]  }
 0x210   :  { %3773 = vmatmul.mubr.bf16.gmra.mxu0 %v6384_v50 }
 0x211   :  { %3782 = vmatprep.mubr.bf16.mxu0 %v6388_v51  ;;  %3949 = vmatpush1.bf16.msra.mxu0 %v6044_v28  ;;  %v6412_v51 = vld [vmem:[#allocation3 + $0x20] ss:$36 sps:$4 sm:$0xff]  }
 0x212   :  { %3612 = vmatpush1.bf16.msra.mxu1 %v5946_v4  ;;  %3950 = vmatprep.subr.bf16.mxu0 %v6043_v49  ;;  %v10255_v4 = vld [vmem:[#allocation79_spill] sm:$0xff]  ;;  %v6017_v49 = vcombine.high %v10262_v48, %v10261_v29  ;;  %v6436_v48 = vld [vmem:[#allocation3 + $0x1d0] ss:$36 sps:$4 sm:$0xff]  }
 0x213   :  { %3613 = vmatprep.subr.bf16.mxu1 %v5977_v57  ;;  %v6023_v56 = vcombine.high %v10256_v5, %v10255_v4  ;;  %v6408_v57 = vld [vmem:[#allocation3 + $0x208] ss:$36 sps:$4 sm:$0xff]   ;;  %v6022_v2 = vcombine.low %v10256_v5, %v10255_v4  ;;  %v6405_v4 = vld [vmem:[#allocation3 + $0x1b8] ss:$36 sps:$4 sm:$0xff]  }
 0x215   :  { %3557 = vmatmul.mubr.bf16.gmra.mxu1 %v6354_v3  ;;  %3951 = vmatpush1.bf16.msra.mxu0 %v6042_v18  ;;  %v10257_v3 = vld [vmem:[#allocation77_spill] sm:$0xff]  ;;  %v10264_v18 = vld [vmem:[#allocation70_spill] sm:$0xff] }
 0x216   :  { %3614 = vmatpush2.bf16.msra.mxu1 %v5976_v1  ;;  %3566 = vmatprep.mubr.bf16.mxu1 %v6355_v52  ;;  %v6021_v55 = vcombine.high %v10258_v54, %v10257_v3  ;;  %v6375_v1 = vld [vmem:[#allocation3 + $0x50] ss:$36 sps:$4 sm:$0xff]   ;;  %v6020_v52 = vcombine.low %v10258_v54, %v10257_v3  ;;  %v6432_v54 = vld [vmem:[#allocation3 + $0x188] ss:$36 sps:$4 sm:$0xff]  }
 0x217   :  { %3615 = vmatprep.subr.bf16.mxu1 %v5975_v31  ;;  %v10260_v31 = vld [vmem:[#allocation74_spill] sm:$0xff] }
 0x218   :  { %3783 = vmatmul.mubr.bf16.gmra.mxu0 %v6390_v33  ;;  %v6019_v50 = vcombine.high %v10260_v31, %v10259_v30  ;;  %v6018_v28 = vcombine.low %v10260_v31, %v10259_v30  ;;  %v6387_v33 = vld [vmem:[#allocation3 + $0xe0] ss:$36 sps:$4 sm:$0xff]  }
 0x219   :  { %3792 = vmatprep.mubr.bf16.mxu0 %v6394_v22  ;;  %v6012_v22 = vcombine.low %v10266_v20, %v10265_v25  ;;  %v6411_v30 = vld [vmem:[#allocation3 + $0x200] ss:$36 sps:$4 sm:$0xff]  }
 0x21a   :  { %3616 = vmatpush2.bf16.msra.mxu1 %v5974_v26  ;;  %v6381_v26 = vld [vmem:[#allocation3 + $0x98] ss:$36 sps:$4 sm:$0xff]  }
 0x21b   :  { %3617 = vmatprep.subr.bf16.mxu1 %v5973_v45  ;;  %v10263_v45 = vld [vmem:[#allocation71_spill] sm:$0xff] }
 0x21d   :  { %3567 = vmatmul.mubr.bf16.gmra.mxu1 %v6357_v17  ;;  %v6015_v17 = vcombine.high %v10264_v18, %v10263_v45 }
 0x21e   :  { %3618 = vmatpush2.bf16.msra.mxu1 %v5972_v38  ;;  %3576 = vmatprep.mubr.bf16.mxu1 %v6358_v24  ;;  %v6416_v38 = vld [vmem:[#allocation3 + $0x68] ss:$36 sps:$4 sm:$0xff]   ;;  %v6014_v24 = vcombine.low %v10264_v18, %v10263_v45  ;;  %v6419_v45 = vld [vmem:[#allocation3 + $0x60] ss:$36 sps:$4 sm:$0xff]  }
 0x21f   :  { %3619 = vmatprep.subr.bf16.mxu1 %v5971_v32  ;;  %v6013_v32 = vcombine.high %v10266_v20, %v10265_v25  ;;  %v6421_v18 = vld [vmem:[#allocation3 + $0xac] ss:$36 sps:$4 sm:$0xff]   ;;  %v6429_v25 = vld [vmem:[#allocation3 + $0x13c] ss:$36 sps:$4 sm:$0xff]   ;;  %v6433_v20 = vld [vmem:[#allocation3 + $0x184] ss:$36 sps:$4 sm:$0xff]  }
 0x220   :  { %3793 = vmatmul.mubr.bf16.gmra.mxu0 %v6396_v34 }
 0x221   :  { %3802 = vmatprep.mubr.bf16.mxu0 %v6400_v42  ;;  %v6397_v42 = vld [vmem:[#allocation3 + $0x174] ss:$36 sps:$4 sm:$0xff]  }
 0x222   :  { %3620 = vmatpush2.bf16.msra.mxu1 %v5970_v21  ;;  %v6391_v21 = vld [vmem:[#allocation3 + $0x12c] ss:$36 sps:$4 sm:$0xff]  }
 0x223   :  { %3621 = vmatprep.subr.bf16.mxu1 %v5969_v16  ;;  %v6011_v16 = vcombine.high %v10268_v23, %v10267_v19 }
 0x225   :  { %3577 = vmatmul.mubr.bf16.gmra.mxu1 %v6360_v37  ;;  %v6420_v37 = vld [vmem:[#allocation3 + $0xb0] ss:$36 sps:$4 sm:$0xff]  }
 0x226   :  { %3622 = vmatpush2.bf16.msra.mxu1 %v5968_v43  ;;  %3586 = vmatprep.mubr.bf16.mxu1 %v6361_v47  ;;  %v6010_v43 = vcombine.low %v10268_v23, %v10267_v19  ;;  %v10269_v47 = vld [vmem:[#allocation97_spill] sm:$0xff] }
 0x227   :  { %3623 = vmatprep.subr.bf16.mxu1 %v5967_v46  ;;  %v6041_v40 = vcombine.high %v10270_v41, %v10269_v47  ;;  %v6393_v46 = vld [vmem:[#allocation3 + $0x128] ss:$36 sps:$4 sm:$0xff]   ;;  %v6040_v34 = vcombine.low %v10270_v41, %v10269_v47  ;;  %v6443_v19 = vld [vmem:[#allocation3 + $0x210] ss:$36 sps:$4 sm:$0xff]  }
 0x228   :  { %3803 = vmatmul.mubr.bf16.gmra.mxu0 %v6402_v8  ;;  %v6403_v8 = vld [vmem:[#allocation3 + $0x1bc] ss:$36 sps:$4 sm:$0xff]  }
 0x229   :  { %3812 = vmatprep.mubr.bf16.mxu0 %v6406_v9  ;;  %v10275_v9 = vld [vmem:[#allocation91_spill] sm:$0xff] }
 0x22a   :  { %3624 = vmatpush2.bf16.msra.mxu1 %v5966_v14  ;;  %v10271_v14 = vld [vmem:[#allocation95_spill] sm:$0xff] }
 0x22b   :  { %3625 = vmatprep.subr.bf16.mxu1 %v5965_v36  ;;  %v6039_v35 = vcombine.high %v10272_v15, %v10271_v14  ;;  %v6424_v36 = vld [vmem:[#allocation3 + $0xf8] ss:$36 sps:$4 sm:$0xff]  }
 0x22d   :  { %3587 = vmatmul.mubr.bf16.gmra.mxu1 %v6363_v12  ;;  %v6038_v12 = vcombine.low %v10272_v15, %v10271_v14 }
 0x22e   :  { %3626 = vmatpush2.bf16.msra.mxu1 %v5964_v10  ;;  %3629 = vmatprep.mubr.bf16.mxu1 %v6369_v11  ;;  %v10273_v10 = vld [vmem:[#allocation93_spill] sm:$0xff]  ;;  %v10274_v11 = vld [vmem:[#allocation92_spill] sm:$0xff] }
 0x22f   :  { %3627 = vmatprep.subr.bf16.mxu1 %v5963_v63  ;;  %v6037_v13 = vcombine.high %v10274_v11, %v10273_v10  ;;  %v6036_v63 = vcombine.low %v10274_v11, %v10273_v10 }
 0x230   :  { %3813 = vmatmul.mubr.bf16.gmra.mxu0 %v6408_v57  ;;  %v10279_v57 = vld [vmem:[#allocation87_spill] sm:$0xff] }
 0x231   :  { %3968 = vmatprep.mubr.bf16.mxu0 %v6474_v0 }
 0x232   :  { %3628 = vmatpush2.bf16.msra.mxu1 %v5962_v60  ;;  %v10276_v60 = vld [vmem:[#allocation90_spill] sm:$0xff] }
 0x233   :  { %3823 = vmatprep.subr.bf16.mxu1 %v6025_v6  ;;  %v6035_v61 = vcombine.high %v10276_v60, %v10275_v9  ;;  %v6034_v6 = vcombine.low %v10276_v60, %v10275_v9 }
 0x235   :  { %3630 = vmatmul.mubr.bf16.vlgmr.msra.gmra.mxu1 %v6367_v7  ;;  %v10277_v7 = vld [vmem:[#allocation89_spill] sm:$0xff] }
 0x236   :  { %3824 = vmatpush1.bf16.msra.mxu1 %v6024_v58  ;;  %3639 = vmatprep.mubr.bf16.mxu1 %v6373_v59  ;;  %v10278_v58 = vld [vmem:[#allocation88_spill] sm:$0xff] }
 0x237   :  { %3825 = vmatprep.subr.bf16.mxu1 %v6023_v56  ;;  %v6033_v59 = vcombine.high %v10278_v58, %v10277_v7  ;;  %v6032_v5 = vcombine.low %v10278_v58, %v10277_v7  ;;  %v6409_v56 = vld [vmem:[#allocation3 + $0x204] ss:$36 sps:$4 sm:$0xff]  }
 0x238   :  { %3969 = vmatmul.mubr.bf16.vlgmr.msra.gmra.mxu0 %v6412_v51  ;;  %v10283_v51 = vld [vmem:[#allocation83_spill] sm:$0xff] }
 0x239   :  { %3978 = vmatprep.mubr.bf16.mxu0 %v6474_v0 }
 0x23a   :  { %3826 = vmatpush1.bf16.msra.mxu1 %v6022_v2  ;;  %v10280_v2 = vld [vmem:[#allocation86_spill] sm:$0xff] }
 0x23b   :  { %3827 = vmatprep.subr.bf16.mxu1 %v6021_v55  ;;  %v6031_v3 = vcombine.high %v10280_v2, %v10279_v57  ;;  %v6030_v55 = vcombine.low %v10280_v2, %v10279_v57 }
 0x23d   :  { %3640 = vmatmul.mubr.bf16.gmra.mxu1 %v6375_v1  ;;  %v10281_v1 = vld [vmem:[#allocation85_spill] sm:$0xff] }
 0x23e   :  { %3828 = vmatpush1.bf16.msra.mxu1 %v6020_v52  ;;  %3649 = vmatprep.mubr.bf16.mxu1 %v6379_v53  ;;  %v10282_v52 = vld [vmem:[#allocation84_spill] sm:$0xff] }
 0x23f   :  { %3829 = vmatprep.subr.bf16.mxu1 %v6019_v50  ;;  %v6029_v53 = vcombine.high %v10282_v52, %v10281_v1  ;;  %v6028_v31 = vcombine.low %v10282_v52, %v10281_v1  ;;  %v6415_v50 = vld [vmem:[#allocation3 + $0x1c] ss:$36 sps:$4 sm:$0xff]  }
 0x240   :  { %3979 = vmatmul.mubr.bf16.gmra.mxu0 %v6416_v38  ;;  %v6425_v38 = vld [vmem:[#allocation3 + $0xf4] ss:$36 sps:$4 sm:$0xff]  }
 0x241   :  { %3988 = vmatprep.mubr.bf16.mxu0 %v6474_v0 }
 0x242   :  { %3830 = vmatpush1.bf16.msra.mxu1 %v6018_v28  ;;  %v10284_v28 = vld [vmem:[#allocation82_spill] sm:$0xff] }
 0x243   :  { %3831 = vmatprep.subr.bf16.mxu1 %v6017_v49  ;;  %v6027_v29 = vcombine.high %v10284_v28, %v10283_v51  ;;  %v6026_v49 = vcombine.low %v10284_v28, %v10283_v51 }
 0x245   :  { %3650 = vmatmul.mubr.bf16.gmra.mxu1 %v6381_v26  ;;  %v6413_v26 = vld [vmem:[#allocation3 + $0x18] ss:$36 sps:$4 sm:$0xff]  }
 0x246   :  { %3832 = vmatpush1.bf16.msra.mxu1 %v6016_v27  ;;  %3659 = vmatprep.mubr.bf16.mxu1 %v6385_v44  ;;  %v6417_v27 = vld [vmem:[#allocation3 + $0x64] ss:$36 sps:$4 sm:$0xff]   ;;  %v6440_v44 = vld [vmem:[#allocation3 + $0x218] ss:$36 sps:$4 sm:$0xff]  }
 0x247   :  { %3833 = vmatprep.subr.bf16.mxu1 %v6015_v17  ;;  %v6423_v17 = vld [vmem:[#allocation3 + $0xa8] ss:$36 sps:$4 sm:$0xff]  }
 0x248   :  { %3989 = vmatmul.mubr.bf16.gmra.mxu0 %v6420_v37 }
 0x249   :  { %3998 = vmatprep.mubr.bf16.mxu0 %v6474_v0 }
 0x24a   :  { %3834 = vmatpush1.bf16.msra.mxu1 %v6014_v24  ;;  %v6427_v24 = vld [vmem:[#allocation3 + $0xf0] ss:$36 sps:$4 sm:$0xff]  }
 0x24b   :  { %3835 = vmatprep.subr.bf16.mxu1 %v6013_v32  ;;  %v6435_v32 = vld [vmem:[#allocation3 + $0x180] ss:$36 sps:$4 sm:$0xff]  }
 0x24d   :  { %3660 = vmatmul.mubr.bf16.gmra.mxu1 %v6387_v33  ;;  %v6437_v33 = vld [vmem:[#allocation3 + $0x1cc] ss:$36 sps:$4 sm:$0xff]  }
 0x24e   :  { %3836 = vmatpush1.bf16.msra.mxu1 %v6012_v22  ;;  %3669 = vmatprep.mubr.bf16.mxu1 %v6391_v21  ;;  %v6439_v22 = vld [vmem:[#allocation3 + $0x1c8] ss:$36 sps:$4 sm:$0xff]   ;;  %v6441_v21 = vld [vmem:[#allocation3 + $0x214] ss:$36 sps:$4 sm:$0xff]  }
 0x24f   :  { %3837 = vmatprep.subr.bf16.mxu1 %v6011_v16 }
 0x250   :  { %3999 = vmatmul.mubr.bf16.gmra.mxu0 %v6424_v36 }
 0x251   :  { %4008 = vmatprep.mubr.bf16.mxu0 %v6474_v0 }
 0x252   :  { %3838 = vmatpush1.bf16.msra.mxu1 %v6010_v43 }
 0x253   :  { %3839 = vmatprep.subr.bf16.mxu1 %v6041_v40 }
 0x255   :  { %3670 = vmatmul.mubr.bf16.gmra.mxu1 %v6393_v46 }
 0x256   :  { %3840 = vmatpush2.bf16.msra.mxu1 %v6040_v34  ;;  %3679 = vmatprep.mubr.bf16.mxu1 %v6397_v42 }
 0x257   :  { %3841 = vmatprep.subr.bf16.mxu1 %v6039_v35 }
 0x258   :  { %4009 = vmatmul.mubr.bf16.gmra.mxu0 %v6428_v39 }
 0x259   :  { %4018 = vmatprep.mubr.bf16.mxu0 %v6474_v0 }
 0x25a   :  { %3842 = vmatpush2.bf16.msra.mxu1 %v6038_v12 }
 0x25b   :  { %3843 = vmatprep.subr.bf16.mxu1 %v6037_v13 }
 0x25d   :  { %3680 = vmatmul.mubr.bf16.gmra.mxu1 %v6399_v62 }
 0x25e   :  { %3844 = vmatpush2.bf16.msra.mxu1 %v6036_v63  ;;  %3689 = vmatprep.mubr.bf16.mxu1 %v6403_v8 }
 0x25f   :  { %3845 = vmatprep.subr.bf16.mxu1 %v6035_v61 }
 0x260   :  { %4019 = vmatmul.mubr.bf16.gmra.mxu0 %v6432_v54 }
 0x261   :  { %4028 = vmatprep.mubr.bf16.mxu0 %v6474_v0 }
 0x262   :  { %3846 = vmatpush2.bf16.msra.mxu1 %v6034_v6 }
 0x263   :  { %3847 = vmatprep.subr.bf16.mxu1 %v6033_v59 }
 0x265   :  { %3690 = vmatmul.mubr.bf16.gmra.mxu1 %v6405_v4 }
 0x266   :  { %3848 = vmatpush2.bf16.msra.mxu1 %v6032_v5  ;;  %3699 = vmatprep.mubr.bf16.mxu1 %v6409_v56 }
 0x267   :  { %3849 = vmatprep.subr.bf16.mxu1 %v6031_v3 }
 0x268   :  { %4029 = vmatmul.mubr.bf16.gmra.mxu0 %v6436_v48 }
 0x269   :  { %4038 = vmatprep.mubr.bf16.mxu0 %v6474_v0  ;;  %v6431_v0 = vld [vmem:[#allocation3 + $0x138] ss:$36 sps:$4 sm:$0xff]  }
 0x26a   :  { %3850 = vmatpush2.bf16.msra.mxu1 %v6030_v55 }
 0x26b   :  { %3851 = vmatprep.subr.bf16.mxu1 %v6029_v53 }
 0x26d   :  { %3700 = vmatmul.mubr.bf16.gmra.mxu1 %v6411_v30 }
 0x26e   :  { %3852 = vmatpush2.bf16.msra.mxu1 %v6028_v31  ;;  %3855 = vmatprep.mubr.bf16.mxu1 %v6415_v50 }
 0x26f   :  { %3853 = vmatprep.subr.bf16.mxu1 %v6027_v29 }
 0x270   :  { %4039 = vmatmul.mubr.bf16.gmra.mxu0 %v6440_v44 }
 0x272   :  { %3854 = vmatpush2.bf16.msra.mxu1 %v6026_v49 }
 0x275   :  { %3856 = vmatmul.mubr.bf16.vlgmr.msra.gmra.mxu1 %v6413_v26 }
 0x276   :  { %3865 = vmatprep.mubr.bf16.mxu1 %v6417_v27 }
 0x27d   :  { %3866 = vmatmul.mubr.bf16.gmra.mxu1 %v6419_v45 }
 0x27e   :  { %3875 = vmatprep.mubr.bf16.mxu1 %v6421_v18 }
 0x285   :  { %3876 = vmatmul.mubr.bf16.gmra.mxu1 %v6423_v17 }
 0x286   :  { %3885 = vmatprep.mubr.bf16.mxu1 %v6425_v38 }
 0x28d   :  { %3886 = vmatmul.mubr.bf16.gmra.mxu1 %v6427_v24 }
 0x28e   :  { %3895 = vmatprep.mubr.bf16.mxu1 %v6429_v25 }
 0x295   :  { %3896 = vmatmul.mubr.bf16.gmra.mxu1 %v6431_v0 }
 0x296   :  { %3905 = vmatprep.mubr.bf16.mxu1 %v6433_v20 }
 0x29d   :  { %3906 = vmatmul.mubr.bf16.gmra.mxu1 %v6435_v32 }
 0x29e   :  { %3915 = vmatprep.mubr.bf16.mxu1 %v6437_v33 }
 0x2a5   :  { %3916 = vmatmul.mubr.bf16.gmra.mxu1 %v6439_v22 }
 0x2a6   :  { %3925 = vmatprep.mubr.bf16.mxu1 %v6441_v21 }
 0x2ad   :  { %3926 = vmatmul.mubr.bf16.gmra.mxu1 %v6443_v19 }
 0x2b5   :  { %v3518_v23 = vpop.f32.mrf.mxu1 }
 0x2b7   :  { %v8063_v16 = vpop.f32.mrf.mxu1 }
 0x2b8   :  { %v3744_v40 = vpop.f32.mrf.mxu0 }
 0x2b9   :  { %v8065_v37 = vpop.f32.mrf.mxu1 }
 0x2ba   :  { %v3746_v34 = vpop.f32.mrf.mxu0 }
 0x2bb   :  { %v8067_v43 = vpop.f32.mrf.mxu1 }
 0x2bc   :  { %v8077_v14 = vpop.f32.mrf.mxu0 }
 0x2bd   :  { %v8069_v47 = vpop.f32.mrf.mxu1 }
 0x2be   :  { %v8081_v35 = vpop.f32.mrf.mxu0 }
 0x2bf   :  { %v8071_v41 = vpop.f32.mrf.mxu1 }
 0x2c0   :  { %v8085_v12 = vpop.f32.mrf.mxu0 }
 0x2c1   :  { %v8073_v46 = vpop.f32.mrf.mxu1 }
 0x2c2   :  { %v8089_v11 = vpop.f32.mrf.mxu0 }
 0x2c3   :  { %v8075_v42 = vpop.f32.mrf.mxu1 }
 0x2c4   :  { %v8093_v62 = vpop.f32.mrf.mxu0 }
 0x2c5   :  { %v8079_v15 = vpop.f32.mrf.mxu1 }
 0x2c6   :  { %v8097_v8 = vpop.f32.mrf.mxu0 }
 0x2c7   :  { %v8083_v36 = vpop.f32.mrf.mxu1 }
 0x2c8   :  { %v8101_v60 = vpop.f32.mrf.mxu0 }
 0x2c9   :  { %v8087_v10 = vpop.f32.mrf.mxu1 }
 0x2ca   :  { %v8105_v39 = vpop.f32.mrf.mxu0 }
 0x2cb   :  { %v8091_v13 = vpop.f32.mrf.mxu1 }
 0x2cc   :  { %v8109_v7 = vpop.f32.mrf.mxu0 }
 0x2cd   :  { %v8095_v63 = vpop.f32.mrf.mxu1 }
 0x2ce   :  { %v8113_v59 = vpop.f32.mrf.mxu0 }
 0x2cf   :  { %v8099_v9 = vpop.f32.mrf.mxu1 }
 0x2d0   :  { %v8117_v5 = vpop.f32.mrf.mxu0 }
 0x2d1   :  { %v8103_v61 = vpop.f32.mrf.mxu1 }
 0x2d2   :  { %v8121_v57 = vpop.f32.mrf.mxu0 }
 0x2d3   :  { %v8107_v6 = vpop.f32.mrf.mxu1 }
 0x2d4   :  { %v8125_v3 = vpop.f32.mrf.mxu0 }
 0x2d5   :  { %v8111_v58 = vpop.f32.mrf.mxu1 }
 0x2d6   :  { %v8129_v55 = vpop.f32.mrf.mxu0 }
 0x2d7   :  { %v8115_v4 = vpop.f32.mrf.mxu1 }
 0x2d8   :  { %v8133_v52 = vpop.f32.mrf.mxu0 }
 0x2d9   :  { %v8119_v56 = vpop.f32.mrf.mxu1 }
 0x2da   :  { %v8137_v30 = vpop.f32.mrf.mxu0 }
 0x2db   :  { %v8123_v2 = vpop.f32.mrf.mxu1 }
 0x2dc   :  { %v8141_v50 = vpop.f32.mrf.mxu0 }
 0x2dd   :  { %v8127_v54 = vpop.f32.mrf.mxu1 }
 0x2de   :  { %v8145_v28 = vpop.f32.mrf.mxu0 }
 0x2df   :  { %v8131_v1 = vpop.f32.mrf.mxu1 }
 0x2e0   :  { %v8149_v48 = vpop.f32.mrf.mxu0 }
 0x2e1   :  { %v8135_v53 = vpop.f32.mrf.mxu1 }
 0x2e2   :  { %v8153_v26 = vpop.f32.mrf.mxu0 }
 0x2e3   :  { %v8139_v31 = vpop.f32.mrf.mxu1 }
 0x2e4   :  { %v8157_v44 = vpop.f32.mrf.mxu0 }
 0x2e5   :  { %v8143_v51 = vpop.f32.mrf.mxu1 }
 0x2e6   :  { %v8161_v18 = vpop.f32.mrf.mxu0 }
 0x2e7   :  { %v8147_v29 = vpop.f32.mrf.mxu1 }
 0x2e8   :  { %v8165_v38 = vpop.f32.mrf.mxu0 }
 0x2e9   :  { %v8151_v49 = vpop.f32.mrf.mxu1 }
 0x2ea   :  { %10285 = vst [vmem:[#allocation21_spill] sm:$0xff] %v8151_v49  ;;  %v8169_v25 = vpop.f32.mrf.mxu0 }
 0x2eb   :  { %v8155_v27 = vpop.f32.mrf.mxu1  ;;  %10290 = vst [vmem:[#allocation63_spill] sm:$0xff] %v8169_v25 }
 0x2ec   :  { %10286 = vst [vmem:[#allocation65_spill] sm:$0xff] %v8155_v27  ;;  %v8173_v20 = vpop.f32.mrf.mxu0 }
 0x2ed   :  { %v8159_v45 = vpop.f32.mrf.mxu1  ;;  %10292 = vst [vmem:[#allocation18_spill] sm:$0xff] %v8173_v20 }
 0x2ee   :  { %10287 = vst [vmem:[#allocation64_spill] sm:$0xff] %v8159_v45  ;;  %v8175_v33 = vpop.f32.mrf.mxu0 }
 0x2ef   :  { %v8163_v17 = vpop.f32.mrf.mxu1  ;;  %10293 = vst [vmem:[#allocation17_spill] sm:$0xff] %v8175_v33 }
 0x2f0   :  { %10288 = vst [vmem:[#allocation20_spill] sm:$0xff] %v8163_v17  ;;  %v8177_v19 = vpop.f32.mrf.mxu0 }
 0x2f1   :  { %v8167_v24 = vpop.f32.mrf.mxu1  ;;  %10294 = vst [vmem:[#allocation61_spill] sm:$0xff] %v8177_v19 }
 0x2f2   :  { %10289 = vst [vmem:[#allocation19_spill] sm:$0xff] %v8167_v24  ;;  %v8182_v49 = vpop.f32.mrf.mxu0 }
 0x2f3   :  { %v8171_v0 = vpop.f32.mrf.mxu1 }
 0x2f4   :  { %10291 = vst [vmem:[#allocation62_spill] sm:$0xff] %v8171_v0  ;;  %v8187_v20 = vpop.f32.mrf.mxu0 }
 0x2f5   :  { %v3631_v32 = vpop.f32.mrf.mxu1  ;;  %10295 = vst [vmem:[#allocation60_spill] sm:$0xff] %v8187_v20 }
 0x2f6   :  { %v3632_v22 = vadd.f32 %v3631_v32, %v3518_v23  ;;  %v8193_v19 = vpop.f32.mrf.mxu0 }
 0x2f7   :  { %v3633_v21 = vpop.f32.mrf.mxu1  ;;  %10296 = vst [vmem:[#allocation16_spill] sm:$0xff] %v8193_v19 }
 0x2f8   :  { %v3634_v45 = vadd.f32 %v3633_v21, %v8063_v16  ;;  %v8180_v17 = vadd.f32 %v3744_v40, %v3632_v22 }
 0x2f9   :  { %v3635_v27 = vpop.f32.mrf.mxu1 }
 0x2fa   :  { %v3636_v24 = vadd.f32 %v3635_v27, %v8065_v37  ;;  %v8185_v25 = vadd.f32 %v3746_v34, %v3634_v45  ;;  %v8199_v37 = vpop.f32.mrf.mxu0 }
 0x2fb   :  { %v3637_v0 = vpop.f32.mrf.mxu1 }
 0x2fc   :  { %v3638_v33 = vadd.f32 %v3637_v0, %v8067_v43  ;;  %v8191_v23 = vadd.f32 %v8077_v14, %v3636_v24  ;;  %v8205_v45 = vpop.f32.mrf.mxu0 }
 0x2fd   :  { %v3641_v32 = vpop.f32.mrf.mxu1 }
 0x2fe   :  { %v3642_v16 = vadd.f32 %v3641_v32, %v8069_v47  ;;  %v8197_v40 = vadd.f32 %v8081_v35, %v3638_v33  ;;  %v8211_v0 = vpop.f32.mrf.mxu0 }
 0x2ff   :  { %v3643_v22 = vpop.f32.mrf.mxu1 }
 0x300   :  { %v3644_v34 = vadd.f32 %v3643_v22, %v8071_v41  ;;  %v8203_v27 = vadd.f32 %v8085_v12, %v3642_v16  ;;  %v8217_v21 = vpop.f32.mrf.mxu0 }
 0x301   :  { %v3645_v43 = vpop.f32.mrf.mxu1 }
 0x302   :  { %v3646_v14 = vadd.f32 %v3645_v43, %v8073_v46  ;;  %v8209_v24 = vadd.f32 %v8089_v11, %v3644_v34  ;;  %v8227_v34 = vpop.f32.mrf.mxu0 }
 0x303   :  { %v3647_v47 = vpop.f32.mrf.mxu1 }
 0x304   :  { %v3648_v35 = vadd.f32 %v3647_v47, %v8075_v42  ;;  %v8215_v33 = vadd.f32 %v8093_v62, %v3646_v14  ;;  %v8237_v47 = vpop.f32.mrf.mxu0 }
 0x305   :  { %v3651_v41 = vpop.f32.mrf.mxu1 }
 0x306   :  { %v3652_v12 = vadd.f32 %v3651_v41, %v8079_v15  ;;  %v8221_v32 = vadd.f32 %v8097_v8, %v3648_v35 }
 0x307   :  { %v3653_v46 = vpop.f32.mrf.mxu1 }
 0x308   :  { %v3654_v11 = vadd.f32 %v3653_v46, %v8083_v36  ;;  %v8225_v16 = vadd.f32 %v8101_v60, %v3652_v12  ;;  %v8247_v12 = vpop.f32.mrf.mxu0 }
 0x309   :  { %v3655_v22 = vpop.f32.mrf.mxu1 }
 0x30a   :  { %v3656_v42 = vadd.f32 %v3655_v22, %v8087_v10  ;;  %v8231_v62 = vadd.f32 %v8105_v39, %v3654_v11  ;;  %v8257_v22 = vpop.f32.mrf.mxu0 }
 0x30b   :  { %v3657_v43 = vpop.f32.mrf.mxu1 }
 0x30c   :  { %v3658_v15 = vadd.f32 %v3657_v43, %v8091_v13  ;;  %v8235_v8 = vadd.f32 %v8109_v7, %v3656_v42 }
 0x30d   :  { %v3661_v14 = vpop.f32.mrf.mxu1 }
 0x30e   :  { %v3662_v36 = vadd.f32 %v3661_v14, %v8095_v63  ;;  %v8241_v60 = vadd.f32 %v8113_v59, %v3658_v15  ;;  %v8267_v15 = vpop.f32.mrf.mxu0 }
 0x30f   :  { %v3663_v35 = vpop.f32.mrf.mxu1 }
 0x310   :  { %v3664_v10 = vadd.f32 %v3663_v35, %v8099_v9  ;;  %v8245_v39 = vadd.f32 %v8117_v5, %v3662_v36  ;;  %v8277_v35 = vpop.f32.mrf.mxu0 }
 0x311   :  { %v3665_v41 = vpop.f32.mrf.mxu1 }
 0x312   :  { %v3666_v13 = vadd.f32 %v3665_v41, %v8103_v61  ;;  %v8251_v7 = vadd.f32 %v8121_v57, %v3664_v10 }
 0x313   :  { %v3667_v46 = vpop.f32.mrf.mxu1 }
 0x314   :  { %v3668_v63 = vadd.f32 %v3667_v46, %v8107_v6  ;;  %v8255_v59 = vadd.f32 %v8125_v3, %v3666_v13  ;;  %v8287_v13 = vpop.f32.mrf.mxu0 }
 0x315   :  { %v3671_v11 = vpop.f32.mrf.mxu1 }
 0x316   :  { %v3672_v9 = vadd.f32 %v3671_v11, %v8111_v58  ;;  %v8261_v5 = vadd.f32 %v8129_v55, %v3668_v63  ;;  %v8297_v11 = vpop.f32.mrf.mxu0 }
 0x317   :  { %v3673_v42 = vpop.f32.mrf.mxu1 }
 0x318   :  { %v3674_v61 = vadd.f32 %v3673_v42, %v8115_v4  ;;  %v8265_v57 = vadd.f32 %v8133_v52, %v3672_v9 }
 0x319   :  { %v3675_v43 = vpop.f32.mrf.mxu1 }
 0x31a   :  { %v3676_v6 = vadd.f32 %v3675_v43, %v8119_v56  ;;  %v8271_v3 = vadd.f32 %v8137_v30, %v3674_v61  ;;  %v8307_v61 = vpop.f32.mrf.mxu0  ;;  %v4051_v43 = vlaneseq }
 0x31b   :  { %v3677_v14 = vpop.f32.mrf.mxu1 }
 0x31c   :  { %v3678_v58 = vadd.f32 %v3677_v14, %v8123_v2  ;;  %v8275_v55 = vadd.f32 %v8141_v50, %v3676_v6  ;;  %v10298_v6 = vld [vmem:[#allocation63_spill] sm:$0xff] }
 0x31d   :  { %v3681_v36 = vpop.f32.mrf.mxu1 }
 0x31e   :  { %v3682_v4 = vadd.f32 %v3681_v36, %v8127_v54  ;;  %v8281_v52 = vadd.f32 %v8145_v28, %v3678_v58 }
 0x31f   :  { %v3683_v10 = vpop.f32.mrf.mxu1 }
 0x320   :  { %v3684_v56 = vadd.f32 %v3683_v10, %v8131_v1  ;;  %v8285_v30 = vadd.f32 %v8149_v48, %v3682_v4 }
 0x321   :  { %v3685_v41 = vpop.f32.mrf.mxu1 }
 0x322   :  { %v3686_v2 = vadd.f32 %v3685_v41, %v8135_v53  ;;  %v8291_v50 = vadd.f32 %v8153_v26, %v3684_v56  ;;  %v4052_v41 = vshrl.u32 %v4051_v43, 7  ;;  %v4049_v43 = vld [vmem:[%s9759_s2] sm:$0x3] }
 0x323   :  { %v3687_v46 = vpop.f32.mrf.mxu1 }
 0x324   :  { %v3688_v54 = vadd.f32 %v3687_v46, %v8139_v31  ;;  %v8295_v28 = vadd.f32 %v8157_v44, %v3686_v2  ;;  %v10297_v31 = vld [vmem:[#allocation21_spill] sm:$0xff] }
 0x325   :  { %v3691_v63 = vpop.f32.mrf.mxu1  ;;  %v10302_v2 = vld [vmem:[#allocation17_spill] sm:$0xff] }
 0x326   :  { %v3692_v1 = vadd.f32 %v3691_v63, %v8143_v51  ;;  %v8301_v48 = vadd.f32 %v8161_v18, %v3688_v54  ;;  %v10299_v51 = vld [vmem:[#allocation65_spill] sm:$0xff]  ;;  %v10300_v18 = vld [vmem:[#allocation18_spill] sm:$0xff]  ;;  %v10303_v63 = vld [vmem:[#allocation20_spill] sm:$0xff] }
 0x327   :  { %v3693_v9 = vpop.f32.mrf.mxu1 }
 0x328   :  { %v3694_v53 = vadd.f32 %v3693_v9, %v8147_v29  ;;  %v8305_v26 = vadd.f32 %v8165_v38, %v3692_v1  ;;  %v8317_v29 = vpop.f32.mrf.mxu0  ;;  %v10301_v38 = vld [vmem:[#allocation64_spill] sm:$0xff]  ;;  %v10304_v9 = vld [vmem:[#allocation61_spill] sm:$0xff] }
 0x329   :  { %v3695_v42 = vpop.f32.mrf.mxu1 }
 0x32a   :  { %v3696_v44 = vadd.f32 %v3695_v42, %v10297_v31  ;;  %v8311_v14 = vadd.f32 %v10298_v6, %v3694_v53  ;;  %v8329_v31 = vpop.f32.mrf.mxu0 }
 0x32b   :  { %v3697_v58 = vpop.f32.mrf.mxu1 }
 0x32c   :  { %v3698_v36 = vadd.f32 %v3697_v58, %v10299_v51  ;;  %v8315_v4 = vadd.f32 %v10300_v18, %v3696_v44  ;;  %v4053_v44 = vsub.s32 0, %v4052_v41  ;;  %v4057_v51 = vsub.s32 1, %v4052_v41  ;;  %v4093_v18 = vld [vmem:[%s9760_s3] sm:$0x3] }
 0x32d   :  { %v3701_v10 = vpop.f32.mrf.mxu1 }
 0x32e   :  { %v3702_v56 = vadd.f32 %v3701_v10, %v10301_v38  ;;  %v8321_v46 = vadd.f32 %v10302_v2, %v3698_v36  ;;  %v8342_v10 = vpop.f32.mrf.mxu0  ;;  %v8357_v20 = vrot.slane %v4093_v18, %v4057_v51 }
 0x32f   :  { %v3703_v54 = vpop.f32.mrf.mxu1 }
 0x330   :  { %v3704_v1 = vadd.f32 %v3703_v54, %v10303_v63  ;;  %v8325_v53 = vadd.f32 %v10304_v9, %v3702_v56  ;;  %v8345_v56 = vrot.slane %v4049_v43, %v4053_v44  ;;  %v8348_v54 = vrot.slane %v4093_v18, %v4053_v44  ;;  %v8353_v9 = vpop.f32.mrf.mxu0 }
 0x331   :  { %v8327_v42 = vpop.f32.mrf.mxu1 }
 0x332   :  { %10305 = vst [vmem:[#allocation15_spill] sm:$0xff] %v8325_v53  ;;  %v8332_v6 = vadd.f32 %v8182_v49, %v3704_v1  ;;  %v8351_v1 = vrot.slane %v4049_v43, %v4057_v51 }
 0x333   :  { %v8334_v58 = vpop.f32.mrf.mxu1 }
 0x334   :  { %10306 = vst [vmem:[#allocation59_spill] sm:$0xff] %v8332_v6 }
 0x335   :  { %v3857_v36 = vpop.f32.mrf.mxu1 }
 0x336   :  { %v3858_v38 = vadd.f32 %v3857_v36, %v8180_v17 }
 0x337   :  { %v3859_v49 = vpop.f32.mrf.mxu1 }
 0x338   :  { %v3971_v2 = vadd.f32 %v8199_v37, %v3858_v38  ;;  %v3860_v63 = vadd.f32 %v3859_v49, %v8185_v25  ;;  %v8364_v49 = vpop.f32.mrf.mxu0 }
 0x339   :  { %v3861_v41 = vpop.f32.mrf.mxu1 }
 0x33a   :  { %v4061_v19 = vmul.f32 %v8345_v56, %v3971_v2  ;;  %v3973_v6 = vadd.f32 %v8205_v45, %v3860_v63  ;;  %v3862_v17 = vadd.f32 %v3861_v41, %v8191_v23 }
 0x33b   :  { %v3863_v36 = vpop.f32.mrf.mxu1 }
 0x33c   :  { %v4105_v37 = vadd.f32 %v8348_v54, %v4061_v19  ;;  %v4062_v44 = vmul.f32 %v8351_v1, %v3973_v6  ;;  %v3975_v25 = vadd.f32 %v8211_v0, %v3862_v17  ;;  %v3864_v43 = vadd.f32 %v3863_v36, %v8197_v40  ;;  %v8378_v17 = vpop.f32.mrf.mxu0 }
 0x33d   :  { %v3867_v38 = vpop.f32.mrf.mxu1 }
 0x33e   :  { %v8366_v53 = vmax.f32 %v4105_v37, 0.0  ;;  %v4106_v45 = vadd.f32 %v8357_v20, %v4062_v44  ;;  %v4063_v51 = vmul.f32 %v8345_v56, %v3975_v25  ;;  %v3977_v23 = vadd.f32 %v8217_v21, %v3864_v43 }
 0x33f   :  { %v3868_v18 = vadd.f32 %v3867_v38, %v8203_v27  ;;  %v3869_v19 = vpop.f32.mrf.mxu1 }
 0x340   :  { %v8372_v2 = vmax.f32 %v4106_v45, 0.0  ;;  %v4107_v0 = vadd.f32 %v8348_v54, %v4063_v51  ;;  %v4064_v40 = vmul.f32 %v8351_v1, %v3977_v23  ;;  %v3870_v6 = vadd.f32 %v3869_v19, %v8209_v24  ;;  %v8392_v23 = vpop.f32.mrf.mxu0 }
 0x341   :  { %v3981_v63 = vadd.f32 %v8227_v34, %v3868_v18  ;;  %v3871_v41 = vpop.f32.mrf.mxu1 }
 0x342   :  { %v8380_v36 = vmax.f32 %v4107_v0, 0.0  ;;  %v4108_v21 = vadd.f32 %v8357_v20, %v4064_v40  ;;  %v3983_v27 = vadd.f32 %v8237_v47, %v3870_v6  ;;  %v3872_v37 = vadd.f32 %v3871_v41, %v8215_v33 }
 0x343   :  { %v4065_v44 = vmul.f32 %v8345_v56, %v3981_v63  ;;  %v3873_v25 = vpop.f32.mrf.mxu1 }
 0x344   :  { %v8386_v43 = vmax.f32 %v4108_v21, 0.0  ;;  %v4066_v24 = vmul.f32 %v8351_v1, %v3983_v27  ;;  %v3985_v34 = vadd.f32 %v8247_v12, %v3872_v37  ;;  %v3874_v38 = vadd.f32 %v3873_v25, %v8221_v32  ;;  %v8406_v27 = vpop.f32.mrf.mxu0 }
 0x345   :  { %v4109_v45 = vadd.f32 %v8348_v54, %v4065_v44  ;;  %v3877_v51 = vpop.f32.mrf.mxu1 }
 0x346   :  { %v4110_v47 = vadd.f32 %v8357_v20, %v4066_v24  ;;  %v4067_v33 = vmul.f32 %v8345_v56, %v3985_v34  ;;  %v3987_v18 = vadd.f32 %v8257_v22, %v3874_v38  ;;  %v3878_v19 = vadd.f32 %v3877_v51, %v8225_v16 }
 0x347   :  { %v8398_v0 = vmax.f32 %v4109_v45, 0.0  ;;  %v3879_v40 = vpop.f32.mrf.mxu1 }
 0x348   :  { %v8400_v6 = vmax.f32 %v4110_v47, 0.0  ;;  %v4111_v32 = vadd.f32 %v8348_v54, %v4067_v33  ;;  %v4068_v12 = vmul.f32 %v8351_v1, %v3987_v18  ;;  %v3991_v63 = vadd.f32 %v8267_v15, %v3878_v19  ;;  %v8420_v47 = vpop.f32.mrf.mxu0 }
 0x349   :  { %v3880_v41 = vadd.f32 %v3879_v40, %v8231_v62  ;;  %v3881_v21 = vpop.f32.mrf.mxu1 }
 0x34a   :  { %v8408_v37 = vmax.f32 %v4111_v32, 0.0  ;;  %v4112_v16 = vadd.f32 %v8357_v20, %v4068_v12  ;;  %v4069_v22 = vmul.f32 %v8345_v56, %v3991_v63  ;;  %v3882_v44 = vadd.f32 %v3881_v21, %v8235_v8  ;;  %v4024_v21 = vpop.f32.mrf.mxu0 }
 0x34b   :  { %v3993_v25 = vadd.f32 %v8277_v35, %v3880_v41  ;;  %v3883_v24 = vpop.f32.mrf.mxu1 }
 0x34c   :  { %v8414_v34 = vmax.f32 %v4112_v16, 0.0  ;;  %v4113_v15 = vadd.f32 %v8348_v54, %v4069_v22  ;;  %v3995_v62 = vadd.f32 %v8287_v13, %v3882_v44  ;;  %v3884_v38 = vadd.f32 %v3883_v24, %v8241_v60 }
 0x34d   :  { %v4070_v45 = vmul.f32 %v8351_v1, %v3993_v25  ;;  %v3887_v51 = vpop.f32.mrf.mxu1 }
 0x34e   :  { %v8422_v33 = vmax.f32 %v4113_v15, 0.0  ;;  %v4071_v8 = vmul.f32 %v8345_v56, %v3995_v62  ;;  %v3997_v35 = vadd.f32 %v8297_v11, %v3884_v38  ;;  %v3888_v18 = vadd.f32 %v3887_v51, %v8245_v39 }
 0x34f   :  { %v4114_v19 = vadd.f32 %v8357_v20, %v4070_v45  ;;  %v3889_v40 = vpop.f32.mrf.mxu1  ;;  %v4026_v45 = vpop.f32.mrf.mxu0 }
 0x350   :  { %v4115_v13 = vadd.f32 %v8348_v54, %v4071_v8  ;;  %v4072_v60 = vmul.f32 %v8351_v1, %v3997_v35  ;;  %v4001_v32 = vadd.f32 %v8307_v61, %v3888_v18  ;;  %v3890_v12 = vadd.f32 %v3889_v40, %v8251_v7 }
 0x351   :  { %v8432_v63 = vmax.f32 %v4114_v19, 0.0  ;;  %v3891_v41 = vpop.f32.mrf.mxu1 }
 0x352   :  { %v8434_v16 = vmax.f32 %v4115_v13, 0.0  ;;  %v4116_v11 = vadd.f32 %v8357_v20, %v4072_v60  ;;  %v4073_v39 = vmul.f32 %v8345_v56, %v4001_v32  ;;  %v4003_v22 = vadd.f32 %v8317_v29, %v3890_v12  ;;  %v4030_v32 = vpop.f32.mrf.mxu0 }
 0x353   :  { %v3892_v44 = vadd.f32 %v3891_v41, %v8255_v59  ;;  %v3893_v25 = vpop.f32.mrf.mxu1 }
 0x354   :  { %v8440_v24 = vmax.f32 %v4116_v11, 0.0  ;;  %v4117_v61 = vadd.f32 %v8348_v54, %v4073_v39  ;;  %v4074_v7 = vmul.f32 %v8351_v1, %v4003_v22  ;;  %v3894_v15 = vadd.f32 %v3893_v25, %v8261_v5 }
 0x355   :  { %v4005_v62 = vadd.f32 %v8329_v31, %v3892_v44  ;;  %v3897_v38 = vpop.f32.mrf.mxu1 }
 0x356   :  { %v8446_v51 = vmax.f32 %v4117_v61, 0.0  ;;  %v4118_v8 = vadd.f32 %v8357_v20, %v4074_v7  ;;  %v4007_v29 = vadd.f32 %v8342_v10, %v3894_v15  ;;  %v3898_v59 = vadd.f32 %v3897_v38, %v8265_v57  ;;  %v4032_v7 = vpop.f32.mrf.mxu0 }
 0x357   :  { %v4075_v35 = vmul.f32 %v8345_v56, %v4005_v62  ;;  %v3899_v18 = vpop.f32.mrf.mxu1 }
 0x358   :  { %10307 = vst [vmem:[#allocation58_spill] sm:$0xff] %v8446_v51  ;;  %v8452_v19 = vmax.f32 %v4118_v8, 0.0  ;;  %v4076_v40 = vmul.f32 %v8351_v1, %v4007_v29  ;;  %v4011_v5 = vadd.f32 %v8353_v9, %v3898_v59  ;;  %v3900_v31 = vadd.f32 %v3899_v18, %v8271_v3 }
 0x359   :  { %v4119_v13 = vadd.f32 %v8348_v54, %v4075_v35  ;;  %v3901_v60 = vpop.f32.mrf.mxu1 }
 0x35a   :  { %10308 = vst [vmem:[#allocation37_spill] sm:$0xff] %v8452_v19  ;;  %v4120_v12 = vadd.f32 %v8357_v20, %v4076_v40  ;;  %v4077_v10 = vmul.f32 %v8345_v56, %v4011_v5  ;;  %v4013_v57 = vadd.f32 %v8364_v49, %v3900_v31  ;;  %v3902_v41 = vadd.f32 %v3901_v60, %v8275_v55  ;;  %v4034_v40 = vpop.f32.mrf.mxu0 }
 0x35b   :  { %v8462_v11 = vmax.f32 %v4119_v13, 0.0  ;;  %v3903_v39 = vpop.f32.mrf.mxu1 }
 0x35c   :  { %v8464_v22 = vmax.f32 %v4120_v12, 0.0  ;;  %v4121_v9 = vadd.f32 %v8348_v54, %v4077_v10  ;;  %v4078_v3 = vmul.f32 %v8351_v1, %v4013_v57  ;;  %v4015_v44 = vadd.f32 %v8378_v17, %v3902_v41 }
 0x35d   :  { %10309 = vst [vmem:[#allocation36_spill] sm:$0xff] %v8462_v11  ;;  %v3904_v25 = vadd.f32 %v3903_v39, %v8281_v52  ;;  %v3907_v61 = vpop.f32.mrf.mxu1  ;;  %v4036_v39 = vpop.f32.mrf.mxu0 }
 0x35e   :  { %10310 = vst [vmem:[#allocation57_spill] sm:$0xff] %v8464_v22  ;;  %v8470_v15 = vmax.f32 %v4121_v9, 0.0  ;;  %v4122_v49 = vadd.f32 %v8357_v20, %v4078_v3  ;;  %v4079_v55 = vmul.f32 %v8345_v56, %v4015_v44  ;;  %v3908_v62 = vadd.f32 %v3907_v61, %v8285_v30 }
 0x35f   :  { %v4017_v38 = vadd.f32 %v8392_v23, %v3904_v25  ;;  %v3909_v8 = vpop.f32.mrf.mxu1 }
 0x360   :  { %v8476_v29 = vmax.f32 %v4122_v49, 0.0  ;;  %v4123_v59 = vadd.f32 %v8348_v54, %v4079_v55  ;;  %v4021_v17 = vadd.f32 %v8406_v27, %v3908_v62  ;;  %v3910_v52 = vadd.f32 %v3909_v8, %v8291_v50 }
 0x361   :  { %v4080_v35 = vmul.f32 %v8351_v1, %v4017_v38  ;;  %v3911_v18 = vpop.f32.mrf.mxu1  ;;  %v4040_v38 = vpop.f32.mrf.mxu0 }
 0x362   :  { %v8482_v5 = vmax.f32 %v4123_v59, 0.0  ;;  %v4081_v31 = vmul.f32 %v8345_v56, %v4021_v17  ;;  %v4023_v30 = vadd.f32 %v8420_v47, %v3910_v52  ;;  %v3912_v23 = vadd.f32 %v3911_v18, %v8295_v28 }
 0x363   :  { %v4124_v13 = vadd.f32 %v8357_v20, %v4080_v35  ;;  %v3913_v60 = vpop.f32.mrf.mxu1 }
 0x364   :  { %v4125_v12 = vadd.f32 %v8348_v54, %v4081_v31  ;;  %v4082_v27 = vmul.f32 %v8351_v1, %v4023_v30  ;;  %v4025_v50 = vadd.f32 %v4024_v21, %v3912_v23  ;;  %v3914_v10 = vadd.f32 %v3913_v60, %v8301_v48  ;;  %v10312_v23 = vld [vmem:[#allocation62_spill] sm:$0xff]  ;;  %v4042_v60 = vpop.f32.mrf.mxu0 }
 0x365   :  { %v8491_v57 = vmax.f32 %v4124_v13, 0.0  ;;  %v3917_v41 = vpop.f32.mrf.mxu1  ;;  %v3708_v13 = vadd.f32 %v8334_v58, %v10312_v23 }
 0x366   :  { %v8493_v9 = vmax.f32 %v4125_v12, 0.0  ;;  %v4126_v47 = vadd.f32 %v8357_v20, %v4082_v27  ;;  %v4083_v28 = vmul.f32 %v8345_v56, %v4025_v50  ;;  %v4027_v3 = vadd.f32 %v4026_v45, %v3914_v10  ;;  %v10313_v50 = vld [vmem:[#allocation15_spill] sm:$0xff] }
 0x367   :  { %v3918_v44 = vadd.f32 %v3917_v41, %v8305_v26  ;;  %v3919_v25 = vpop.f32.mrf.mxu1  ;;  %v10311_v26 = vld [vmem:[#allocation19_spill] sm:$0xff] }
 0x368   :  { %v8498_v61 = vmax.f32 %v4126_v47, 0.0  ;;  %v4127_v21 = vadd.f32 %v8348_v54, %v4083_v28  ;;  %v4084_v48 = vmul.f32 %v8351_v1, %v4027_v3  ;;  %v3920_v49 = vadd.f32 %v3919_v25, %v8311_v14  ;;  %v4044_v25 = vpop.f32.mrf.mxu0 }
 0x369   :  { %v4031_v55 = vadd.f32 %v4030_v32, %v3918_v44  ;;  %v3921_v62 = vpop.f32.mrf.mxu1  ;;  %v3706_v52 = vadd.f32 %v8327_v42, %v10311_v26 }
 0x36a   :  { %v8503_v8 = vmax.f32 %v4127_v21, 0.0  ;;  %v4128_v59 = vadd.f32 %v8357_v20, %v4084_v48  ;;  %v4033_v17 = vadd.f32 %v4032_v7, %v3920_v49  ;;  %v3922_v45 = vadd.f32 %v3921_v62, %v8315_v4  ;;  %v10315_v21 = vld [vmem:[#allocation59_spill] sm:$0xff] }
 0x36b   :  { %v4085_v35 = vmul.f32 %v8345_v56, %v4031_v55  ;;  %v3923_v18 = vpop.f32.mrf.mxu1  ;;  %v10316_v55 = vld [vmem:[#allocation16_spill] sm:$0xff] }
 0x36c   :  { %v8510_v31 = vmax.f32 %v4128_v59, 0.0  ;;  %v4086_v14 = vmul.f32 %v8351_v1, %v4033_v17  ;;  %v4035_v32 = vadd.f32 %v4034_v40, %v3922_v45  ;;  %v3924_v30 = vadd.f32 %v3923_v18, %v8321_v46  ;;  %v10314_v40 = vld [vmem:[#allocation60_spill] sm:$0xff] }
 0x36d   :  { %v4129_v7 = vadd.f32 %v8348_v54, %v4085_v35  ;;  %v3927_v4 = vpop.f32.mrf.mxu1  ;;  %v3819_v28 = vadd.f32 %v10314_v40, %v3706_v52 }
 0x36e   :  { %v4130_v12 = vadd.f32 %v8357_v20, %v4086_v14  ;;  %v4087_v42 = vmul.f32 %v8345_v56, %v4035_v32  ;;  %v4037_v27 = vadd.f32 %v4036_v39, %v3924_v30  ;;  %v3928_v10 = vadd.f32 %v3927_v4, %v10313_v50  ;;  %v4046_v30 = vpop.f32.mrf.mxu0 }
 0x36f   :  { %v8520_v41 = vmax.f32 %v4129_v7, 0.0  ;;  %v3929_v47 = vpop.f32.mrf.mxu1  ;;  %v3821_v39 = vadd.f32 %v10316_v55, %v3708_v13 }
 0x370   :  { %v8523_v46 = vmax.f32 %v4130_v12, 0.0  ;;  %v4131_v58 = vadd.f32 %v8348_v54, %v4087_v42  ;;  %v4088_v3 = vmul.f32 %v8351_v1, %v4037_v27  ;;  %v4041_v44 = vadd.f32 %v4040_v38, %v3928_v10 }
 0x371   :  { %v3930_v48 = vadd.f32 %v3929_v47, %v10315_v21  ;;  %v3931_v49 = vpop.f32.mrf.mxu1  ;;  %v10319_v47 = vld [vmem:[#allocation116_spill] sm:$0xff] }
 0x372   :  { %v8529_v62 = vmax.f32 %v4131_v58, 0.0  ;;  %v4132_v59 = vadd.f32 %v8357_v20, %v4088_v3  ;;  %v4089_v17 = vmul.f32 %v8345_v56, %v4041_v44  ;;  %v3932_v45 = vadd.f32 %v3931_v49, %v3819_v28 }
 0x373   :  { %v4043_v26 = vadd.f32 %v4042_v60, %v3930_v48  ;;  %v3933_v52 = vpop.f32.mrf.mxu1  ;;  %v9948_v40 = vunpack.c.l.bf16 %v10319_v47  ;;  %v9946_v28 = vunpack.c.h.bf16 %v10319_v47 }
 0x374   :  { %v8533_v35 = vmax.f32 %v4132_v59, 0.0  ;;  %v4133_v18 = vadd.f32 %v8348_v54, %v4089_v17  ;;  %v4045_v38 = vadd.f32 %v4044_v25, %v3932_v45  ;;  %v3934_v14 = vadd.f32 %v3933_v52, %v3821_v39 }
 0x375   :  { %v4090_v32 = vmul.f32 %v8351_v1, %v4043_v26 }
 0x376   :  { %v8537_v23 = vmax.f32 %v4133_v18, 0.0  ;;  %v4091_v13 = vmul.f32 %v8345_v56, %v4045_v38  ;;  %v4047_v7 = vadd.f32 %v4046_v30, %v3934_v14  ;;  %v10320_v56 = vld [vmem:[#allocation114_spill] sm:$0xff] }
 0x377   :  { %v4134_v4 = vadd.f32 %v8357_v20, %v4090_v32  ;;  %v9964_v58 = vunpack.c.l.bf16 %v10320_v56  ;;  %v9960_v3 = vunpack.c.h.bf16 %v10320_v56 }
 0x378   :  { %v4135_v12 = vadd.f32 %v8348_v54, %v4091_v13  ;;  %v4092_v60 = vmul.f32 %v8351_v1, %v4047_v7 }
 0x379   :  { %v8543_v42 = vmax.f32 %v4134_v4, 0.0 }
 0x37a   :  { %v8545_v27 = vmax.f32 %v4135_v12, 0.0  ;;  %v4136_v50 = vadd.f32 %v8357_v20, %v4092_v60 }
 0x37c   :  { %10317 = vst [vmem:[#allocation56_spill] sm:$0xff] %v8545_v27  ;;  %v8548_v10 = vmax.f32 %v4136_v50, 0.0 }
 0x37e   :  { %10318 = vst [vmem:[#allocation35_spill] sm:$0xff] %v8548_v10 }
 0x37f   :  { %6470 = dma.done.wait [#allocation7 + $0x1], 10240 }
 0x380   :  { %6471 = vsyncadd [#allocation7 + $0x1], 4294957056  ;;  %v10321_v54 = vld [vmem:[#allocation117_spill] sm:$0xff]  ;;  %v10322_v25 = vld [vmem:[#allocation115_spill] sm:$0xff]  ;;  %v4249_v48 = vmul.f32 %v9948_v40, %v8398_v0  ;;  %v4250_v49 = vmul.f32 %v9946_v28, %v8400_v6  ;;  %v4245_v55 = vmul.f32 %v9964_v58, %v8366_v53  ;;  %v4246_v39 = vmul.f32 %v9960_v3, %v8372_v2  ;;  %s6475_s20 = smov [#allocation8]  }
 0x381   :  { %v9957_v1 = vunpack.c.l.bf16 %v10321_v54  ;;  %v9955_v44 = vunpack.c.h.bf16 %v10321_v54  ;;  %v9952_v21 = vunpack.c.l.bf16 %v10322_v25  ;;  %v9951_v20 = vunpack.c.h.bf16 %v10322_v25  ;;  %v10323_v38 = vld [vmem:[#allocation119_spill] sm:$0xff]  ;;  %v10324_v7 = vld [vmem:[#allocation118_spill] sm:$0xff]  ;;  %v10334_v27 = vld [vmem:[#allocation128_spill] sm:$0xff]  ;;  %s5596_s5 = sshll.u32 %s6475_s20, 4  ;;  %s5597_s5 = int_to_ptr.vmem [resolvable:$true] %s5596_s5 }
 0x382   :  { %v4267_v52 = vadd.f32 %v4250_v49, %v4249_v48  ;;  %v4261_v18 = vadd.f32 %v4246_v39, %v4245_v55  ;;  %v9945_v14 = vunpack.c.l.bf16 %v10323_v38  ;;  %v9944_v32 = vunpack.c.h.bf16 %v10323_v38  ;;  %v10325_v48 = vld [vmem:[#allocation121_spill] sm:$0xff]  ;;  %v10327_v28 = vld [vmem:[#allocation123_spill] sm:$0xff]  ;;  %p6453_p1 = scmp.lt.s32.totalorder %s5597_s5, %s5597_s5 }
 0x383   :  { %v4251_v59 = vmul.f32 %v9957_v1, %v8408_v37  ;;  %v4252_v17 = vmul.f32 %v9955_v44, %v8414_v34  ;;  %v4247_v45 = vmul.f32 %v9952_v21, %v8380_v36  ;;  %v4248_v26 = vmul.f32 %v9951_v20, %v8386_v43  ;;  %v10328_v20 = vld [vmem:[#allocation122_spill] sm:$0xff] }
 0x384   :  { %v9947_v4 = vunpack.c.l.bf16 %v10324_v7  ;;  %v9949_v12 = vunpack.c.h.bf16 %v10324_v7  ;;  %4268 = vadd.xlane.f32.xlu1 %v4267_v52  ;;  %4262 = vadd.xlane.f32.xlu0 %v4261_v18  ;;  %v4255_v60 = vmul.f32 %v9945_v14, %v8434_v16  ;;  %v4256_v50 = vmul.f32 %v9944_v32, %v8440_v24 }
 0x385   :  { %v4270_v30 = vadd.f32 %v4252_v17, %v4251_v59  ;;  %v4264_v13 = vadd.f32 %v4248_v26, %v4247_v45  ;;  %v9950_v49 = vunpack.c.l.bf16 %v10325_v48  ;;  %v9953_v55 = vunpack.c.h.bf16 %v10325_v48  ;;  %v10326_v17 = vld [vmem:[#allocation120_spill] sm:$0xff] }
 0x386   :  { %v4253_v39 = vmul.f32 %v9947_v4, %v8422_v33  ;;  %v4254_v59 = vmul.f32 %v9949_v12, %v8432_v63  ;;  %v9954_v45 = vunpack.c.l.bf16 %v10326_v17  ;;  %v9956_v26 = vunpack.c.h.bf16 %v10326_v17 }
 0x387   :  { %v4259_v52 = vmul.f32 %v9950_v49, %v8462_v11  ;;  %v4260_v18 = vmul.f32 %v9953_v55, %v8464_v22  ;;  %v4276_v32 = vadd.f32 %v4256_v50, %v4255_v60  ;;  %v9958_v4 = vunpack.c.l.bf16 %v10327_v28  ;;  %v10329_v50 = vld [vmem:[#allocation125_spill] sm:$0xff] }
 0x388   :  { %v4273_v14 = vadd.f32 %v4254_v59, %v4253_v39  ;;  %v9959_v40 = vunpack.c.h.bf16 %v10327_v28  ;;  %4271 = vadd.xlane.f32.xlu1 %v4270_v30  ;;  %4265 = vadd.xlane.f32.xlu0 %v4264_v13  ;;  %v4257_v12 = vmul.f32 %v9954_v45, %v8446_v51  ;;  %v4258_v49 = vmul.f32 %v9956_v26, %v8452_v19  ;;  %v10330_v45 = vld [vmem:[#allocation124_spill] sm:$0xff] }
 0x389   :  { %v9963_v21 = vunpack.c.l.bf16 %v10328_v20  ;;  %v9961_v55 = vunpack.c.h.bf16 %v10328_v20  ;;  %v4282_v60 = vadd.f32 %v4260_v18, %v4259_v52  ;;  %v9962_v39 = vunpack.c.l.bf16 %v10329_v50 }
 0x38a   :  { %v9965_v59 = vunpack.c.h.bf16 %v10329_v50  ;;  %v4324_v30 = vmul.f32 %v9958_v4, %v8380_v36  ;;  %v4325_v13 = vmul.f32 %v9959_v40, %v8386_v43  ;;  %v9967_v44 = vunpack.c.l.bf16 %v10330_v45 }
 0x38b   :  { %v9969_v26 = vunpack.c.h.bf16 %v10330_v45  ;;  %v4279_v1 = vadd.f32 %v4258_v49, %v4257_v12  ;;  %v4322_v52 = vmul.f32 %v9963_v21, %v8366_v53  ;;  %v4323_v18 = vmul.f32 %v9961_v55, %v8372_v2  ;;  %v10331_v12 = vld [vmem:[#allocation127_spill] sm:$0xff]  ;;  %v10332_v21 = vld [vmem:[#allocation126_spill] sm:$0xff] }
 0x38c   :  { %4277 = vadd.xlane.f32.xlu1 %v4276_v32  ;;  %4274 = vadd.xlane.f32.xlu0 %v4273_v14  ;;  %v4328_v4 = vmul.f32 %v9962_v39, %v8408_v37  ;;  %v4329_v40 = vmul.f32 %v9965_v59, %v8414_v34  ;;  %v4341_v3 = vadd.f32 %v4325_v13, %v4324_v30  ;;  %v9972_v49 = vunpack.c.l.bf16 %v10331_v12  ;;  %v10333_v13 = vld [vmem:[#allocation129_spill] sm:$0xff] }
 0x38d   :  { %v4326_v14 = vmul.f32 %v9967_v44, %v8398_v0  ;;  %v4327_v32 = vmul.f32 %v9969_v26, %v8400_v6  ;;  %v4338_v55 = vadd.f32 %v4323_v18, %v4322_v52  ;;  %v9971_v39 = vunpack.c.h.bf16 %v10331_v12 }
 0x38e   :  { %v9975_v58 = vunpack.c.l.bf16 %v10332_v21  ;;  %v9973_v59 = vunpack.c.h.bf16 %v10332_v21  ;;  %v4347_v30 = vadd.f32 %v4329_v40, %v4328_v4  ;;  %v9974_v48 = vunpack.c.l.bf16 %v10333_v13 }
 0x38f   :  { %v9978_v44 = vunpack.c.h.bf16 %v10333_v13  ;;  %v4344_v10 = vadd.f32 %v4327_v32, %v4326_v14  ;;  %v4332_v26 = vmul.f32 %v9972_v49, %v8434_v16  ;;  %v4333_v52 = vmul.f32 %v9971_v39, %v8440_v24  ;;  %v10335_v32 = vld [vmem:[#allocation131_spill] sm:$0xff] }
 0x390   :  { %4283 = vadd.xlane.f32.xlu1 %v4282_v60  ;;  %4280 = vadd.xlane.f32.xlu0 %v4279_v1  ;;  %v9982_v60 = vunpack.c.l.bf16 %v10334_v27  ;;  %v9985_v1 = vunpack.c.h.bf16 %v10334_v27  ;;  %v4330_v40 = vmul.f32 %v9975_v58, %v8422_v33  ;;  %v4331_v4 = vmul.f32 %v9973_v59, %v8432_v63  ;;  %v10336_v58 = vld [vmem:[#allocation130_spill] sm:$0xff] }
 0x391   :  { %v4336_v18 = vmul.f32 %v9974_v48, %v8462_v11  ;;  %v4385_v39 = vunpack.c.l.bf16 %v10335_v32  ;;  %v4386_v49 = vunpack.c.h.bf16 %v10335_v32  ;;  %v4353_v59 = vadd.f32 %v4333_v52, %v4332_v26 }
 0x392   :  { %v4335_v14 = vmul.f32 %v9985_v1, %v8452_v19  ;;  %v4350_v48 = vadd.f32 %v4331_v4, %v4330_v40  ;;  %v4383_v11 = vunpack.c.l.bf16 %v10336_v58  ;;  %v10338_v52 = vunpack.c.l.bf16 %v10320_v56 }
 0x393   :  { %v10339_v40 = vunpack.c.h.bf16 %v10320_v56  ;;  %v10342_v56 = vunpack.c.l.bf16 %v10321_v54  ;;  %vm4991_vm2 = vcmask 7168   ;;  %vm4993_vm3 = vcmask 15360  }
 0x394   :  { %4342 = vadd.xlane.f32.xlu1 %v4341_v3  ;;  %4339 = vadd.xlane.f32.xlu0 %v4338_v55  ;;  %v4337_v3 = vmul.f32 %v9978_v44, %v8464_v22  ;;  %v4334_v55 = vmul.f32 %v9982_v60, %v8446_v51  ;;  %v4384_v44 = vunpack.c.h.bf16 %v10336_v58  ;;  %v4401_v60 = vmul.f32 %v4385_v39, %v8380_v36 }
 0x395   :  { %v4402_v51 = vmul.f32 %v4386_v49, %v8386_v43  ;;  %v4399_v1 = vmul.f32 %v4383_v11, %v8366_v53  ;;  %v5025_v58 = vmul.f32 %v10338_v52, %v8470_v15  ;;  %v5026_v4 = vmul.f32 %v10339_v40, %v8476_v29 }
 0x396   :  { %v4359_v22 = vadd.f32 %v4337_v3, %v4336_v18  ;;  %v4356_v13 = vadd.f32 %v4335_v14, %v4334_v55  ;;  %v4400_v32 = vmul.f32 %v4384_v44, %v8372_v2  ;;  %v10340_v14 = vunpack.c.l.bf16 %v10328_v20 }
 0x397   :  { %v4418_v18 = vadd.f32 %v4402_v51, %v4401_v60  ;;  %v5041_v55 = vadd.f32 %v5026_v4, %v5025_v58  ;;  %v10341_v52 = vunpack.c.h.bf16 %v10328_v20  ;;  %v5031_v51 = vmul.f32 %v10342_v56, %v8503_v8 }
 0x398   :  { %4348 = vadd.xlane.f32.xlu1 %v4347_v30  ;;  %4345 = vadd.xlane.f32.xlu0 %v4344_v10  ;;  %v10337_v30 = vld [vmem:[#allocation132_spill] sm:$0xff]  ;;  %v10345_v58 = vunpack.c.h.bf16 %v10322_v25  ;;  %vm4995_vm4 = vcmask 23552   ;;  %vm4997_vm5 = vcmask 31744   ;;  %vm4999_vm6 = vcmask 39936  }
 0x399   :  { %v4387_v10 = vunpack.c.l.bf16 %v10337_v30  ;;  %v4388_v26 = vunpack.c.h.bf16 %v10337_v30  ;;  %v5078_v30 = vmul.f32 %v10340_v14, %v8470_v15  ;;  %v5079_v19 = vmul.f32 %v10341_v52, %v8476_v29 }
 0x39a   :  { %v5028_v20 = vmul.f32 %v10345_v58, %v8491_v57  ;;  %v5131_v14 = vmul.f32 %v4383_v11, %v8470_v15  ;;  %v5132_v52 = vmul.f32 %v4384_v44, %v8476_v29  ;;  %v10350_v44 = vunpack.c.h.bf16 %v10319_v47 }
 0x39b   :  { %v4404_v3 = vmul.f32 %v4388_v26, %v8400_v6  ;;  %v5094_v4 = vadd.f32 %v5079_v19, %v5078_v30  ;;  %v10349_v19 = vunpack.c.l.bf16 %v10319_v47  ;;  %vm5001_vm7 = vcmask 48128  }
 0x39c   :  { %4354 = vadd.xlane.f32.xlu1 %v4353_v59  ;;  %4351 = vadd.xlane.f32.xlu0 %v4350_v48  ;;  %v4415_v48 = vadd.f32 %v4400_v32, %v4399_v1  ;;  %v4403_v59 = vmul.f32 %v4387_v10, %v8398_v0  ;;  %v10344_v1 = vunpack.c.l.bf16 %v10322_v25  ;;  %v10348_v25 = vld [vmem:[#allocation138_spill] sm:$0xff]  ;;  %vm5003_vm8 = vcmask 56320  }
 0x39d   :  { %v4460_v56 = vunpack.c.l.bf16 %v10348_v25  ;;  %v5029_v11 = vmul.f32 %v10349_v19, %v8493_v9  ;;  %v4461_v30 = vunpack.c.h.bf16 %v10348_v25  ;;  %v10357_v25 = vunpack.c.h.bf16 %v10324_v7 }
 0x39e   :  { %v4421_v60 = vadd.f32 %v4404_v3, %v4403_v59  ;;  %v5027_v32 = vmul.f32 %v10344_v1, %v8482_v5  ;;  %v10347_v59 = vunpack.c.h.bf16 %v10327_v28  ;;  %vm5005_vm9 = vcmask 64512  }
 0x39f   :  { %v5184_v47 = vmul.f32 %v4460_v56, %v8470_v15  ;;  %vm5007_vm10 = vcmask 72704   ;;  %vm5567_vm11 = vcmask 1040384   ;;  %vm5577_vm12 = vcmask 74752  }
 0x3a0   :  { %4360 = vadd.xlane.f32.xlu1 %v4359_v22  ;;  %4357 = vadd.xlane.f32.xlu0 %v4356_v13  ;;  %v10343_v22 = vunpack.c.h.bf16 %v10321_v54  ;;  %v5044_v54 = vadd.f32 %v5028_v20, %v5027_v32  ;;  %v5081_v3 = vmul.f32 %v10347_v59, %v8491_v57  ;;  %v10352_v32 = vunpack.c.h.bf16 %v10330_v45 }
 0x3a1   :  { %v10356_v59 = vunpack.c.l.bf16 %v10324_v7 }
 0x3a2   :  { %v5032_v13 = vmul.f32 %v10343_v22, %v8510_v31  ;;  %v5083_v58 = vmul.f32 %v10352_v32, %v8498_v61 }
 0x3a4   :  { %4419 = vadd.xlane.f32.xlu1 %v4418_v18  ;;  %4416 = vadd.xlane.f32.xlu0 %v4415_v48  ;;  %v8714_v40 = vadd.f32 %v5032_v13, %v5031_v51  ;;  %v10346_v18 = vunpack.c.l.bf16 %v10327_v28  ;;  %v5147_v51 = vadd.f32 %v5132_v52, %v5131_v14  ;;  %v5133_v13 = vmul.f32 %v4385_v39, %v8482_v5  ;;  %v10353_v52 = vld [vmem:[#allocation139_spill] sm:$0xff] }
 0x3a5   :  { %v5134_v28 = vmul.f32 %v4386_v49, %v8491_v57  ;;  %v5185_v14 = vmul.f32 %v4461_v30, %v8476_v29  ;;  %v4462_v39 = vunpack.c.l.bf16 %v10353_v52  ;;  %v4463_v49 = vunpack.c.h.bf16 %v10353_v52 }
 0x3a6   :  { %v5080_v48 = vmul.f32 %v10346_v18, %v8482_v5 }
 0x3a7   :  { %v5186_v32 = vmul.f32 %v4462_v39, %v8482_v5  ;;  %v5187_v7 = vmul.f32 %v4463_v49, %v8491_v57 }
 0x3a8   :  { %5042 = vadd.xlane.f32.xlu1 %v5041_v55  ;;  %4422 = vadd.xlane.f32.xlu0 %v4421_v60  ;;  %v5030_v55 = vmul.f32 %v10350_v44, %v8498_v61  ;;  %v5097_v22 = vadd.f32 %v5081_v3, %v5080_v48  ;;  %v10351_v60 = vunpack.c.l.bf16 %v10330_v45  ;;  %v10355_v45 = vunpack.c.h.bf16 %v10332_v21 }
 0x3a9   :  { %v5033_v3 = vmul.f32 %v10356_v59, %v8520_v41  ;;  %v5136_v44 = vmul.f32 %v4388_v26, %v8498_v61 }
 0x3aa   :  { %v5082_v1 = vmul.f32 %v10351_v60, %v8493_v9  ;;  %v5047_v20 = vadd.f32 %v5030_v55, %v5029_v11  ;;  %v5087_v48 = vmul.f32 %v10355_v45, %v8523_v46  ;;  %v5135_v11 = vmul.f32 %v4387_v10, %v8493_v9  ;;  %v10358_v55 = vld [vmem:[#allocation147_spill] sm:$0xff] }
 0x3ab   :  { %v4476_v45 = vmul.f32 %v4460_v56, %v8366_v53 }
 0x3ac   :  { %5095 = vadd.xlane.f32.xlu1 %v5094_v4  ;;  %5045 = vadd.xlane.f32.xlu0 %v5044_v54  ;;  %v5150_v4 = vadd.f32 %v5134_v28, %v5133_v13  ;;  %v10354_v54 = vunpack.c.l.bf16 %v10332_v21  ;;  %v5100_v19 = vadd.f32 %v5083_v58, %v5082_v1  ;;  %v5200_v13 = vadd.f32 %v5185_v14, %v5184_v47  ;;  %v10359_v1 = vld [vmem:[#allocation146_spill] sm:$0xff] }
 0x3ad   :  { %v4540_v28 = vunpack.c.h.bf16 %v10358_v55  ;;  %v4537_v58 = vunpack.c.l.bf16 %v10359_v1  ;;  %v4538_v10 = vunpack.c.h.bf16 %v10359_v1  ;;  %v5153_v26 = vadd.f32 %v5136_v44, %v5135_v11  ;;  %v10362_v44 = vld [vmem:[#allocation154_spill] sm:$0xff] }
 0x3ae   :  { %v5086_v18 = vmul.f32 %v10354_v54, %v8520_v41  ;;  %v4478_v54 = vmul.f32 %v4462_v39, %v8380_v36  ;;  %v4614_v39 = vunpack.c.l.bf16 %v10362_v44 }
 0x3af   :  { %v5240_v14 = vmul.f32 %v4540_v28, %v8491_v57  ;;  %v5238_v52 = vmul.f32 %v4538_v10, %v8476_v29 }
 0x3b0   :  { %5148 = vadd.xlane.f32.xlu1 %v5147_v51  ;;  %5098 = vadd.xlane.f32.xlu0 %v5097_v22  ;;  %v5034_v51 = vmul.f32 %v10357_v25, %v8523_v46  ;;  %v4539_v22 = vunpack.c.l.bf16 %v10358_v55  ;;  %v8760_v21 = vadd.f32 %v5087_v48, %v5086_v18  ;;  %v4479_v18 = vmul.f32 %v4463_v49, %v8386_v43 }
 0x3b1   :  { %v10360_v25 = vunpack.c.l.bf16 %v10329_v50  ;;  %v4615_v49 = vunpack.c.h.bf16 %v10362_v44 }
 0x3b2   :  { %v8762_v60 = vadd.f32 %v5034_v51, %v5033_v3  ;;  %v5239_v47 = vmul.f32 %v4539_v22, %v8482_v5  ;;  %v4477_v3 = vmul.f32 %v4461_v30, %v8372_v2 }
 0x3b3   :  { %v5084_v51 = vmul.f32 %v10360_v25, %v8503_v8  ;;  %v10368_v25 = vunpack.c.h.bf16 %v10331_v12 }
 0x3b4   :  { %5048 = vadd.xlane.f32.xlu1 %v5047_v20  ;;  %5151 = vadd.xlane.f32.xlu0 %v5150_v4  ;;  %v5203_v20 = vadd.f32 %v5187_v7, %v5186_v32  ;;  %v5237_v4 = vmul.f32 %v4537_v58, %v8470_v15  ;;  %v5256_v48 = vadd.f32 %v5240_v14, %v5239_v47 }
 0x3b5   :  { %v4495_v32 = vadd.f32 %v4479_v18, %v4478_v54  ;;  %v4492_v7 = vadd.f32 %v4477_v3, %v4476_v45  ;;  %v10366_v54 = vld [vmem:[#allocation155_spill] sm:$0xff] }
 0x3b6   :  { %v5253_v59 = vadd.f32 %v5238_v52, %v5237_v4  ;;  %v5291_v4 = vmul.f32 %v4615_v49, %v8476_v29  ;;  %v4616_v18 = vunpack.c.l.bf16 %v10366_v54 }
 0x3b8   :  { %5201 = vadd.xlane.f32.xlu1 %v5200_v13  ;;  %5101 = vadd.xlane.f32.xlu0 %v5100_v19  ;;  %v10361_v19 = vunpack.c.h.bf16 %v10329_v50  ;;  %v10363_v13 = vld [vmem:[#allocation140_spill] sm:$0xff]  ;;  %v10365_v50 = vunpack.c.h.bf16 %v10323_v38 }
 0x3b9   :  { %v4464_v56 = vunpack.c.l.bf16 %v10363_v13  ;;  %v4465_v30 = vunpack.c.h.bf16 %v10363_v13 }
 0x3ba   :  { %v5085_v11 = vmul.f32 %v10361_v19, %v8510_v31  ;;  %v5036_v14 = vmul.f32 %v10365_v50, %v8533_v35  ;;  %v4553_v19 = vmul.f32 %v4537_v58, %v8366_v53 }
 0x3bb   :  { %v5188_v52 = vmul.f32 %v4464_v56, %v8493_v9  ;;  %v5189_v45 = vmul.f32 %v4465_v30, %v8498_v61 }
 0x3bc   :  { %5154 = vadd.xlane.f32.xlu1 %v5153_v26  ;;  %5204 = vadd.xlane.f32.xlu0 %v5203_v20  ;;  %v5103_v1 = vadd.f32 %v5085_v11, %v5084_v51  ;;  %v10364_v26 = vunpack.c.l.bf16 %v10323_v38  ;;  %v5290_v20 = vmul.f32 %v4614_v39, %v8470_v15  ;;  %v5089_v51 = vmul.f32 %v10368_v25, %v8533_v35  ;;  %v10369_v11 = vld [vmem:[#allocation133_spill] sm:$0xff] }
 0x3bd   :  { %v4389_v13 = vunpack.c.l.bf16 %v10369_v11 }
 0x3be   :  { %v5035_v47 = vmul.f32 %v10364_v26, %v8529_v62  ;;  %v9988_v26 = vunpack.c.h.bf16 %v10369_v11 }
 0x3bf   :  { %v5137_v58 = vmul.f32 %v4389_v13, %v8503_v8 }
 0x3c0   :  { %5257 = vadd.xlane.f32.xlu1 %v5256_v48  ;;  %5254 = vadd.xlane.f32.xlu0 %v5253_v59  ;;  %v4617_v48 = vunpack.c.h.bf16 %v10366_v54  ;;  %v8806_v38 = vadd.f32 %v5036_v14, %v5035_v47  ;;  %v10367_v59 = vunpack.c.l.bf16 %v10331_v12  ;;  %v5206_v47 = vadd.f32 %v5189_v45, %v5188_v52  ;;  %v10370_v54 = vld [vmem:[#allocation162_spill] sm:$0xff] }
 0x3c1   :  { %v5292_v14 = vmul.f32 %v4616_v18, %v8482_v5 }
 0x3c2   :  { %v5088_v3 = vmul.f32 %v10367_v59, %v8529_v62  ;;  %v5293_v12 = vmul.f32 %v4617_v48, %v8491_v57  ;;  %v10371_v59 = vld [vmem:[#allocation148_spill] sm:$0xff] }
 0x3c3   :  { %v4542_v25 = vunpack.c.h.bf16 %v10371_v59 }
 0x3c4   :  { %4496 = vadd.xlane.f32.xlu1 %v4495_v32  ;;  %4493 = vadd.xlane.f32.xlu0 %v4492_v7  ;;  %v5306_v32 = vadd.f32 %v5291_v4, %v5290_v20  ;;  %v4554_v7 = vmul.f32 %v4538_v10, %v8372_v2  ;;  %v8818_v50 = vadd.f32 %v5089_v51, %v5088_v3  ;;  %v4691_v20 = vunpack.c.l.bf16 %v10370_v54 }
 0x3c5   :  { %v5138_v10 = vmul.f32 %v9988_v26, %v8510_v31  ;;  %v4692_v4 = vunpack.c.h.bf16 %v10370_v54  ;;  %v5309_v45 = vadd.f32 %v5293_v12, %v5292_v14  ;;  %v4541_v3 = vunpack.c.l.bf16 %v10371_v59 }
 0x3c6   :  { %v4569_v52 = vadd.f32 %v4554_v7, %v4553_v19  ;;  %v5242_v19 = vmul.f32 %v4542_v25, %v8498_v61  ;;  %v4480_v12 = vmul.f32 %v4464_v56, %v8398_v0  ;;  %v4633_v59 = vmul.f32 %v4617_v48, %v8386_v43  ;;  %v10374_v48 = vld [vmem:[#allocation141_spill] sm:$0xff] }
 0x3c7   :  { %v5156_v51 = vadd.f32 %v5138_v10, %v5137_v58  ;;  %v5344_v55 = vmul.f32 %v4692_v4, %v8476_v29  ;;  %v4481_v58 = vmul.f32 %v4465_v30, %v8400_v6  ;;  %v4630_v56 = vmul.f32 %v4614_v39, %v8366_v53 }
 0x3c8   :  { %5104 = vadd.xlane.f32.xlu1 %v5103_v1  ;;  %5051 = vadd.xlane.f32.xlu0 %v8714_v40  ;;  %v4555_v1 = vmul.f32 %v4539_v22, %v8380_v36  ;;  %v4556_v40 = vmul.f32 %v4540_v28, %v8386_v43  ;;  %v5343_v22 = vmul.f32 %v4691_v20, %v8470_v15 }
 0x3c9   :  { %v5241_v28 = vmul.f32 %v4541_v3, %v8493_v9  ;;  %v4631_v30 = vmul.f32 %v4615_v49, %v8372_v2  ;;  %v10375_v49 = vld [vmem:[#allocation171_spill] sm:$0xff] }
 0x3ca   :  { %v4572_v26 = vadd.f32 %v4556_v40, %v4555_v1  ;;  %v5359_v14 = vadd.f32 %v5344_v55, %v5343_v22 }
 0x3cb   :  { %v5259_v10 = vadd.f32 %v5242_v19, %v5241_v28  ;;  %v4646_v55 = vadd.f32 %v4631_v30, %v4630_v56  ;;  %v4466_v28 = vunpack.c.l.bf16 %v10374_v48  ;;  %v4467_v19 = vunpack.c.h.bf16 %v10374_v48 }
 0x3cc   :  { %5307 = vadd.xlane.f32.xlu1 %v5306_v32  ;;  %5207 = vadd.xlane.f32.xlu0 %v5206_v47  ;;  %v10372_v32 = vld [vmem:[#allocation163_spill] sm:$0xff] }
 0x3cd   :  { %v4693_v7 = vunpack.c.l.bf16 %v10372_v32  ;;  %v4694_v47 = vunpack.c.h.bf16 %v10372_v32 }
 0x3cf   :  { %v5345_v1 = vmul.f32 %v4693_v7, %v8482_v5  ;;  %v5346_v40 = vmul.f32 %v4694_v47, %v8491_v57 }
 0x3d0   :  { %4570 = vadd.xlane.f32.xlu1 %v4569_v52  ;;  %5310 = vadd.xlane.f32.xlu0 %v5309_v45  ;;  %v4498_v52 = vadd.f32 %v4481_v58, %v4480_v12  ;;  %v4632_v45 = vmul.f32 %v4616_v18, %v8380_v36  ;;  %v9989_v12 = vunpack.c.h.bf16 %v10375_v49  ;;  %v5190_v58 = vmul.f32 %v4466_v28, %v8503_v8 }
 0x3d1   :  { %v5362_v32 = vadd.f32 %v5346_v40, %v5345_v1  ;;  %v10376_v1 = vld [vmem:[#allocation170_spill] sm:$0xff] }
 0x3d2   :  { %v4649_v18 = vadd.f32 %v4633_v59, %v4632_v45  ;;  %v4768_v40 = vunpack.c.l.bf16 %v10376_v1 }
 0x3d4   :  { %5157 = vadd.xlane.f32.xlu1 %v5156_v51  ;;  %4573 = vadd.xlane.f32.xlu0 %v4572_v26  ;;  %v10373_v26 = vld [vmem:[#allocation156_spill] sm:$0xff]  ;;  %v5396_v30 = vmul.f32 %v4768_v40, %v8470_v15 }
 0x3d5   :  { %v9992_v51 = vunpack.c.l.bf16 %v10373_v26  ;;  %v9991_v22 = vunpack.c.h.bf16 %v10373_v26 }
 0x3d7   :  { %v5294_v39 = vmul.f32 %v9992_v51, %v8493_v9  ;;  %v5295_v44 = vmul.f32 %v9991_v22, %v8498_v61 }
 0x3d8   :  { %5360 = vadd.xlane.f32.xlu1 %v5359_v14  ;;  %5260 = vadd.xlane.f32.xlu0 %v5259_v10  ;;  %v9990_v14 = vunpack.c.l.bf16 %v10375_v49  ;;  %v5191_v10 = vmul.f32 %v4467_v19, %v8510_v31 }
 0x3d9   :  { %v5312_v45 = vadd.f32 %v5295_v44, %v5294_v39  ;;  %v4558_v39 = vmul.f32 %v4542_v25, %v8400_v6  ;;  %v4405_v44 = vmul.f32 %v4389_v13, %v8408_v37  ;;  %v4708_v13 = vmul.f32 %v4692_v4, %v8372_v2 }
 0x3da   :  { %v5398_v59 = vmul.f32 %v9990_v14, %v8482_v5  ;;  %v5209_v56 = vadd.f32 %v5191_v10, %v5190_v58  ;;  %v4709_v58 = vmul.f32 %v4693_v7, %v8380_v36  ;;  %v4710_v10 = vmul.f32 %v4694_v47, %v8386_v43  ;;  %v10378_v14 = vld [vmem:[#allocation149_spill] sm:$0xff] }
 0x3db   :  { %v4544_v51 = vunpack.c.h.bf16 %v10378_v14 }
 0x3dc   :  { %4499 = vadd.xlane.f32.xlu1 %v4498_v52  ;;  %5363 = vadd.xlane.f32.xlu0 %v5362_v32  ;;  %v4769_v52 = vunpack.c.h.bf16 %v10376_v1  ;;  %v5399_v32 = vmul.f32 %v9989_v12, %v8491_v57  ;;  %v10377_v1 = vunpack.c.h.bf16 %v10369_v11  ;;  %v4707_v11 = vmul.f32 %v4691_v20, %v8366_v53 }
 0x3de   :  { %v4406_v12 = vmul.f32 %v10377_v1, %v8414_v34  ;;  %v4723_v4 = vadd.f32 %v4708_v13, %v4707_v11 }
 0x3e0   :  { %4650 = vadd.xlane.f32.xlu1 %v4649_v18  ;;  %4647 = vadd.xlane.f32.xlu0 %v4646_v55  ;;  %v5397_v18 = vmul.f32 %v4769_v52, %v8476_v29  ;;  %v4557_v55 = vmul.f32 %v4541_v3, %v8398_v0  ;;  %v4543_v3 = vunpack.c.l.bf16 %v10378_v14  ;;  %v4424_v25 = vadd.f32 %v4406_v12, %v4405_v44 }
 0x3e2   :  { %v4575_v22 = vadd.f32 %v4558_v39, %v4557_v55  ;;  %v5243_v12 = vmul.f32 %v4543_v3, %v8503_v8 }
 0x3e4   :  { %5107 = vadd.xlane.f32.xlu1 %v8760_v21  ;;  %5054 = vadd.xlane.f32.xlu0 %v8762_v60  ;;  %v5415_v21 = vadd.f32 %v5399_v32, %v5398_v59  ;;  %v5412_v60 = vadd.f32 %v5397_v18, %v5396_v30  ;;  %v4726_v59 = vadd.f32 %v4710_v10, %v4709_v58  ;;  %v10381_v18 = vld [vmem:[#allocation164_spill] sm:$0xff] }
 0x3e5   :  { %v5244_v32 = vmul.f32 %v4544_v51, %v8510_v31  ;;  %v9993_v54 = vunpack.c.l.bf16 %v10381_v18  ;;  %v4696_v44 = vunpack.c.h.bf16 %v10381_v18 }
 0x3e7   :  { %v5262_v1 = vadd.f32 %v5244_v32, %v5243_v12  ;;  %v5348_v10 = vmul.f32 %v4696_v44, %v8498_v61  ;;  %v4482_v32 = vmul.f32 %v4466_v28, %v8408_v37  ;;  %v4785_v28 = vmul.f32 %v4769_v52, %v8372_v2 }
 0x3e8   :  { %5313 = vadd.xlane.f32.xlu1 %v5312_v45  ;;  %5210 = vadd.xlane.f32.xlu0 %v5209_v56  ;;  %v10379_v45 = vld [vmem:[#allocation134_spill] sm:$0xff]  ;;  %v10386_v52 = vunpack.c.l.bf16 %v10375_v49 }
 0x3e9   :  { %v4391_v7 = vunpack.c.l.bf16 %v10379_v45  ;;  %v4392_v47 = vunpack.c.h.bf16 %v10379_v45  ;;  %v10380_v56 = vld [vmem:[#allocation178_spill] sm:$0xff] }
 0x3ea   :  { %v4845_v30 = vunpack.c.l.bf16 %v10380_v56  ;;  %v4846_v20 = vunpack.c.h.bf16 %v10380_v56 }
 0x3eb   :  { %v5139_v55 = vmul.f32 %v4391_v7, %v8520_v41  ;;  %v5140_v39 = vmul.f32 %v4392_v47, %v8523_v46 }
 0x3ec   :  { %5416 = vadd.xlane.f32.xlu1 %v5415_v21  ;;  %5413 = vadd.xlane.f32.xlu0 %v5412_v60  ;;  %v5449_v21 = vmul.f32 %v4845_v30, %v8470_v15  ;;  %v5347_v60 = vmul.f32 %v9993_v54, %v8493_v9  ;;  %v4483_v54 = vmul.f32 %v4467_v19, %v8414_v34  ;;  %v10383_v19 = vunpack.c.l.bf16 %v10373_v26 }
 0x3ed   :  { %v5159_v58 = vadd.f32 %v5140_v39, %v5139_v55  ;;  %v4862_v14 = vmul.f32 %v4846_v20, %v8372_v2 }
 0x3ee   :  { %v4501_v39 = vadd.f32 %v4483_v54, %v4482_v32  ;;  %v10387_v32 = vunpack.c.h.bf16 %v10375_v49 }
 0x3f0   :  { %4576 = vadd.xlane.f32.xlu1 %v4575_v22  ;;  %4425 = vadd.xlane.f32.xlu0 %v4424_v25  ;;  %v5450_v22 = vmul.f32 %v4846_v20, %v8476_v29  ;;  %v10382_v25 = vld [vmem:[#allocation179_spill] sm:$0xff] }
 0x3f1   :  { %v9994_v11 = vunpack.c.l.bf16 %v10382_v25  ;;  %v4848_v13 = vunpack.c.h.bf16 %v10382_v25  ;;  %v10394_v20 = vunpack.c.l.bf16 %v10382_v25 }
 0x3f2   :  { %v5465_v12 = vadd.f32 %v5450_v22, %v5449_v21  ;;  %v4784_v21 = vmul.f32 %v4768_v40, %v8366_v53  ;;  %v10384_v22 = vunpack.c.h.bf16 %v10373_v26 }
 0x3f3   :  { %v5452_v55 = vmul.f32 %v4848_v13, %v8491_v57 }
 0x3f4   :  { %4727 = vadd.xlane.f32.xlu1 %v4726_v59  ;;  %4724 = vadd.xlane.f32.xlu0 %v4723_v4  ;;  %v5365_v59 = vadd.f32 %v5348_v10, %v5347_v60  ;;  %v5451_v4 = vmul.f32 %v9994_v11, %v8482_v5  ;;  %v4635_v60 = vmul.f32 %v10384_v22, %v8400_v6  ;;  %v10385_v10 = vld [vmem:[#allocation142_spill] sm:$0xff] }
 0x3f5   :  { %v4468_v11 = vunpack.c.l.bf16 %v10385_v10  ;;  %v9995_v54 = vunpack.c.h.bf16 %v10385_v10 }
 0x3f6   :  { %v5468_v48 = vadd.f32 %v5452_v55, %v5451_v4  ;;  %v10388_v4 = vld [vmem:[#allocation172_spill] sm:$0xff] }
 0x3f7   :  { %v4772_v55 = vunpack.c.l.bf16 %v10388_v4  ;;  %v5192_v26 = vmul.f32 %v4468_v11, %v8520_v41 }
 0x3f8   :  { %5263 = vadd.xlane.f32.xlu1 %v5262_v1  ;;  %5160 = vadd.xlane.f32.xlu0 %v5159_v58  ;;  %v4634_v1 = vmul.f32 %v10383_v19, %v8398_v0  ;;  %v4800_v58 = vadd.f32 %v4785_v28, %v4784_v21  ;;  %v9996_v21 = vunpack.c.h.bf16 %v10388_v4 }
 0x3fa   :  { %v4652_v40 = vadd.f32 %v4635_v60, %v4634_v1  ;;  %v5400_v1 = vmul.f32 %v4772_v55, %v8493_v9  ;;  %v5401_v60 = vmul.f32 %v9996_v21, %v8498_v61 }
 0x3fc   :  { %5466 = vadd.xlane.f32.xlu1 %v5465_v12  ;;  %5366 = vadd.xlane.f32.xlu0 %v5365_v59  ;;  %v4786_v12 = vmul.f32 %v10386_v52, %v8380_v36  ;;  %v4787_v59 = vmul.f32 %v10387_v32, %v8386_v43  ;;  %v10390_v52 = vld [vmem:[#allocation187_spill] sm:$0xff] }
 0x3fd   :  { %v4924_v32 = vunpack.c.l.bf16 %v10390_v52 }
 0x3fe   :  { %v4803_v28 = vadd.f32 %v4787_v59, %v4786_v12  ;;  %v10391_v12 = vld [vmem:[#allocation186_spill] sm:$0xff] }
 0x3ff   :  { %v10000_v59 = vunpack.c.l.bf16 %v10391_v12  ;;  %v5504_v21 = vmul.f32 %v4924_v32, %v8482_v5  ;;  %v4559_v5 = vmul.f32 %v4543_v3, %v8408_v37 }
 0x400   :  { %4502 = vadd.xlane.f32.xlu1 %v4501_v39  ;;  %5469 = vadd.xlane.f32.xlu0 %v5468_v48  ;;  %v5193_v39 = vmul.f32 %v9995_v54, %v8523_v46  ;;  %v10389_v48 = vld [vmem:[#allocation157_spill] sm:$0xff]  ;;  %v10001_v54 = vunpack.c.h.bf16 %v10390_v52 }
 0x401   :  { %v9998_v19 = vunpack.c.l.bf16 %v10389_v48  ;;  %v9997_v49 = vunpack.c.h.bf16 %v10389_v48 }
 0x402   :  { %v5212_v22 = vadd.f32 %v5193_v39, %v5192_v26  ;;  %v9999_v26 = vunpack.c.h.bf16 %v10391_v12  ;;  %v5418_v39 = vadd.f32 %v5401_v60, %v5400_v1 }
 0x404   :  { %4801 = vadd.xlane.f32.xlu1 %v4800_v58  ;;  %4653 = vadd.xlane.f32.xlu0 %v4652_v40  ;;  %v5296_v58 = vmul.f32 %v9998_v19, %v8503_v8  ;;  %v5297_v40 = vmul.f32 %v9997_v49, %v8510_v31  ;;  %v5502_v49 = vmul.f32 %v10000_v59, %v8470_v15  ;;  %v10392_v59 = vld [vmem:[#allocation135_spill] sm:$0xff] }
 0x405   :  { %v5503_v1 = vmul.f32 %v9999_v26, %v8476_v29  ;;  %v4407_v15 = vmul.f32 %v4391_v7, %v8422_v33  ;;  %v4408_v29 = vmul.f32 %v4392_v47, %v8432_v63  ;;  %v10393_v7 = vunpack.c.l.bf16 %v10381_v18 }
 0x406   :  { %v4394_v45 = vunpack.c.h.bf16 %v10392_v59 }
 0x408   :  { %5057 = vadd.xlane.f32.xlu1 %v8806_v38  ;;  %4804 = vadd.xlane.f32.xlu0 %v4803_v28  ;;  %v5505_v38 = vmul.f32 %v10001_v54, %v8491_v57  ;;  %v5315_v28 = vadd.f32 %v5297_v40, %v5296_v58  ;;  %v4560_v57 = vmul.f32 %v4544_v51, %v8414_v34  ;;  %v4393_v54 = vunpack.c.l.bf16 %v10392_v59 }
 0x409   :  { %v4861_v51 = vmul.f32 %v4845_v30, %v8366_v53  ;;  %v5142_v18 = vmul.f32 %v4394_v45, %v8533_v35 }
 0x40a   :  { %v4578_v3 = vadd.f32 %v4560_v57, %v4559_v5  ;;  %v5141_v56 = vmul.f32 %v4393_v54, %v8529_v62  ;;  %v10396_v5 = vld [vmem:[#allocation150_spill] sm:$0xff] }
 0x40b   :  { %v4545_v57 = vunpack.c.l.bf16 %v10396_v5 }
 0x40c   :  { %5213 = vadd.xlane.f32.xlu1 %v5212_v22  ;;  %5110 = vadd.xlane.f32.xlu0 %v8818_v50  ;;  %v5521_v50 = vadd.f32 %v5505_v38, %v5504_v21  ;;  %v5518_v22 = vadd.f32 %v5503_v1, %v5502_v49  ;;  %v4711_v21 = vmul.f32 %v10393_v7, %v8398_v0 }
 0x40d   :  { %v4269_v60 = vpop.xlane.xlu1 %4268  ;;  %v4263_v19 = vpop.xlane.xlu0 %4262  ;;  %v4712_v49 = vmul.f32 %v4696_v44, %v8400_v6  ;;  %v10395_v44 = vld [vmem:[#allocation165_spill] sm:$0xff]  ;;  %v5162_v7 = vadd.f32 %v5142_v18, %v5141_v56  ;;  %v10398_v18 = vunpack.c.h.bf16 %v10385_v10  ;;  %v10399_v10 = vunpack.c.h.bf16 %v10388_v4 }
 0x40e   :  { %v4697_v1 = vunpack.c.l.bf16 %v10395_v44 }
 0x410   :  { %5419 = vadd.xlane.f32.xlu1 %v5418_v39  ;;  %5316 = vadd.xlane.f32.xlu0 %v5315_v28  ;;  %v4863_v28 = vmul.f32 %v10394_v20, %v8380_v36 }
 0x411   :  { %v4272_v58 = vpop.xlane.xlu1 %4271  ;;  %v4266_v40 = vpop.xlane.xlu0 %4265 }
 0x412   :  { %v4285_v26 = vadd.f32 %v4266_v40, %v4263_v19  ;;  %v4427_v19 = vadd.f32 %v4408_v29, %v4407_v15  ;;  %v4729_v15 = vadd.f32 %v4712_v49, %v4711_v21  ;;  %v4546_v29 = vunpack.c.h.bf16 %v10396_v5  ;;  %v10397_v21 = vld [vmem:[#allocation180_spill] sm:$0xff] }
 0x413   :  { %v4850_v49 = vunpack.c.h.bf16 %v10397_v21 }
 0x414   :  { %v4286_v47 = vadd.f32 %v4285_v26, %v4269_v60  ;;  %5522 = vadd.xlane.f32.xlu1 %v5521_v50  ;;  %5519 = vadd.xlane.f32.xlu0 %v5518_v22  ;;  %v4864_v26 = vmul.f32 %v4848_v13, %v8386_v43  ;;  %v10002_v60 = vunpack.c.h.bf16 %v10395_v44  ;;  %v4877_v22 = vadd.f32 %v4862_v14, %v4861_v51 }
 0x415   :  { %v4278_v39 = vpop.xlane.xlu1 %4277  ;;  %v4275_v30 = vpop.xlane.xlu0 %4274  ;;  %v5246_v14 = vmul.f32 %v4546_v29, %v8523_v46 }
 0x416   :  { %v4287_v38 = vadd.f32 %v4286_v47, %v4272_v58  ;;  %v4880_v40 = vadd.f32 %v4864_v26, %v4863_v28  ;;  %v5349_v47 = vmul.f32 %v4697_v1, %v8503_v8  ;;  %v5350_v20 = vmul.f32 %v10002_v60, %v8510_v31 }
 0x417   :  { %v4484_v26 = vmul.f32 %v4468_v11, %v8422_v33  ;;  %v4788_v11 = vmul.f32 %v4772_v55, %v8398_v0 }
 0x418   :  { %v4288_v50 = vadd.f32 %v4287_v38, %v4275_v30  ;;  %4579 = vadd.xlane.f32.xlu1 %v4578_v3  ;;  %4428 = vadd.xlane.f32.xlu0 %v4427_v19  ;;  %v5245_v3 = vmul.f32 %v4545_v57, %v8520_v41  ;;  %v4849_v19 = vunpack.c.l.bf16 %v10397_v21  ;;  %v5368_v28 = vadd.f32 %v5350_v20, %v5349_v47 }
 0x419   :  { %v4284_v58 = vpop.xlane.xlu1 %4283  ;;  %v4281_v25 = vpop.xlane.xlu0 %4280 }
 0x41a   :  { %v4289_v13 = vadd.f32 %v4288_v50, %v4278_v39  ;;  %v4485_v50 = vmul.f32 %v10398_v18, %v8432_v63  ;;  %v4865_v5 = vmul.f32 %v4849_v19, %v8398_v0 }
 0x41c   :  { %v4290_v51 = vadd.f32 %v4289_v13, %v4281_v25  ;;  %4878 = vadd.xlane.f32.xlu1 %v4877_v22  ;;  %4730 = vadd.xlane.f32.xlu0 %v4729_v15  ;;  %v5265_v22 = vadd.f32 %v5246_v14, %v5245_v3  ;;  %v5453_v15 = vmul.f32 %v4849_v19, %v8493_v9  ;;  %v10401_v3 = vunpack.c.h.bf16 %v10389_v48 }
 0x41d   :  { %v4343_v39 = vpop.xlane.xlu1 %4342  ;;  %v4340_v30 = vpop.xlane.xlu0 %4339 }
 0x41e   :  { %v4291_v38 = vadd.f32 %v4290_v51, %v4284_v58  ;;  %v4362_v56 = vadd.f32 %v4343_v39, %v4340_v30  ;;  %v5454_v58 = vmul.f32 %v4850_v49, %v8498_v61  ;;  %v4637_v51 = vmul.f32 %v10401_v3, %v8414_v34 }
 0x41f   :  { %v4504_v30 = vadd.f32 %v4485_v50, %v4484_v26  ;;  %v10404_v50 = vunpack.c.h.bf16 %v10391_v12  ;;  %v10409_v3 = vunpack.c.h.bf16 %v10326_v17 }
 0x420   :  { %5163 = vadd.xlane.f32.xlu1 %v5162_v7  ;;  %4881 = vadd.xlane.f32.xlu0 %v4880_v40  ;;  %v4789_v40 = vmul.f32 %v10399_v10, %v8400_v6  ;;  %v10400_v7 = vunpack.c.l.bf16 %v10389_v48  ;;  %v4292_v14 = vrot.slane %v4291_v38, 4  ;;  %v4940_v10 = vmul.f32 %v4924_v32, %v8380_v36 }
 0x421   :  { %v4349_v25 = vpop.xlane.xlu1 %4348  ;;  %v4346_v13 = vpop.xlane.xlu0 %4345  ;;  %v10405_v36 = vunpack.c.l.bf16 %v10334_v27 }
 0x422   :  { %v4363_v47 = vadd.f32 %v4362_v56, %v4346_v13  ;;  %v4636_v20 = vmul.f32 %v10400_v7, %v8408_v37  ;;  %v5471_v56 = vadd.f32 %v5454_v58, %v5453_v15  ;;  %v4806_v60 = vadd.f32 %v4789_v40, %v4788_v11  ;;  %v10407_v11 = vld [vmem:[#allocation158_spill] sm:$0xff] }
 0x423   :  { %v10402_v7 = vunpack.c.h.bf16 %v10390_v52  ;;  %v4939_v15 = vmul.f32 %v10404_v50, %v8372_v2  ;;  %v5090_v32 = vmul.f32 %v10405_v36, %v8537_v23  ;;  %v4623_v40 = vunpack.c.h.bf16 %v10407_v11 }
 0x424   :  { %5369 = vadd.xlane.f32.xlu1 %v5368_v28  ;;  %5266 = vadd.xlane.f32.xlu0 %v5265_v22  ;;  %v4364_v39 = vadd.f32 %v4363_v47, %v4349_v25  ;;  %v4655_v4 = vadd.f32 %v4637_v51, %v4636_v20  ;;  %v10403_v28 = vunpack.c.l.bf16 %v10391_v12  ;;  %v4293_v25 = vadd.f32 %v4292_v14, %v4291_v38  ;;  %v10410_v14 = vld [vmem:[#allocation143_spill] sm:$0xff] }
 0x425   :  { %v4355_v18 = vpop.xlane.xlu1 %4354  ;;  %v4352_v55 = vpop.xlane.xlu0 %4351  ;;  %v4941_v48 = vmul.f32 %v10402_v7, %v8386_v43  ;;  %v10406_v43 = vunpack.c.h.bf16 %v10334_v27  ;;  %v10408_v12 = vunpack.c.l.bf16 %v10326_v17  ;;  %v5038_v51 = vmul.f32 %v10409_v3, %v8543_v42 }
 0x426   :  { %v4365_v13 = vadd.f32 %v4364_v39, %v4352_v55  ;;  %v4938_v22 = vmul.f32 %v10403_v28, %v8366_v53  ;;  %v4622_v53 = vunpack.c.l.bf16 %v10407_v11  ;;  %v4470_v39 = vunpack.c.l.bf16 %v10410_v14 }
 0x427   :  { %v5091_v52 = vmul.f32 %v10406_v43, %v8543_v42  ;;  %v4957_v20 = vadd.f32 %v4941_v48, %v4940_v10  ;;  %v5037_v2 = vmul.f32 %v10408_v12, %v8537_v23  ;;  %v5299_v17 = vmul.f32 %v4623_v40, %v8523_v46 }
 0x428   :  { %4505 = vadd.xlane.f32.xlu1 %v4504_v30  ;;  %5472 = vadd.xlane.f32.xlu0 %v5471_v56  ;;  %v4366_v26 = vadd.f32 %v4365_v13, %v4355_v18  ;;  %v4294_v30 = vrot.slane %v4293_v25, 2  ;;  %v4954_v27 = vadd.f32 %v4939_v15, %v4938_v22  ;;  %v4471_v18 = vunpack.c.h.bf16 %v10410_v14  ;;  %v10412_v15 = vld [vmem:[#allocation173_spill] sm:$0xff] }
 0x429   :  { %v4361_v58 = vpop.xlane.xlu1 %4360  ;;  %v4358_v47 = vpop.xlane.xlu0 %4357  ;;  %v5112_v10 = vadd.f32 %v5091_v52, %v5090_v32  ;;  %v5298_v7 = vmul.f32 %v4622_v53, %v8520_v41  ;;  %v4775_v43 = vunpack.c.h.bf16 %v10412_v15 }
 0x42a   :  { %v4367_v38 = vadd.f32 %v4366_v26, %v4358_v47  ;;  %v10411_v26 = vld [vmem:[#allocation188_spill] sm:$0xff]  ;;  %v4295_v47 = vadd.f32 %v4294_v30, %v4293_v25  ;;  %v5195_v32 = vmul.f32 %v4471_v18, %v8533_v35 }
 0x42b   :  { %v4926_v50 = vunpack.c.l.bf16 %v10411_v26  ;;  %v4927_v22 = vunpack.c.h.bf16 %v10411_v26  ;;  %v5318_v3 = vadd.f32 %v5299_v17, %v5298_v7 }
 0x42c   :  { %v4368_v56 = vadd.f32 %v4367_v38, %v4361_v58  ;;  %4807 = vadd.xlane.f32.xlu1 %v4806_v60  ;;  %4656 = vadd.xlane.f32.xlu0 %v4655_v4  ;;  %v5059_v60 = vadd.f32 %v5038_v51, %v5037_v2  ;;  %v5194_v4 = vmul.f32 %v4470_v39, %v8529_v62  ;;  %v4774_v58 = vunpack.c.l.bf16 %v10412_v15 }
 0x42d   :  { %v4420_v55 = vpop.xlane.xlu1 %4419  ;;  %v4417_v13 = vpop.xlane.xlu0 %4416  ;;  %v5506_v51 = vmul.f32 %v4926_v50, %v8493_v9  ;;  %v5507_v25 = vmul.f32 %v4927_v22, %v8498_v61  ;;  %v4296_v30 = vrot.slane %v4295_v47, 1  ;;  %v4561_v61 = vmul.f32 %v4545_v57, %v8422_v33 }
 0x42e   :  { %v4369_v48 = vrot.slane %v4368_v56, 4  ;;  %v4439_v28 = vadd.f32 %v4420_v55, %v4417_v13  ;;  %v5403_v55 = vmul.f32 %v4775_v43, %v8510_v31  ;;  %v4942_v11 = vmul.f32 %v4926_v50, %v8398_v0  ;;  %v10418_v0 = vld [vmem:[#allocation56_spill] sm:$0xff]  ;;  %v10419_v50 = vld [vmem:[#allocation129_spill] sm:$0xff] }
 0x42f   :  { %v5524_v17 = vadd.f32 %v5507_v25, %v5506_v51  ;;  %v4790_v14 = vmul.f32 %v4774_v58, %v8408_v37 }
 0x430   :  { %v4370_v36 = vadd.f32 %v4369_v48, %v4368_v56  ;;  %4958 = vadd.xlane.f32.xlu1 %v4957_v20  ;;  %4955 = vadd.xlane.f32.xlu0 %v4954_v27  ;;  %v5402_v20 = vmul.f32 %v4774_v58, %v8503_v8  ;;  %v5215_v27 = vadd.f32 %v5195_v32, %v5194_v4  ;;  %v10424_v58 = vld [vmem:[#allocation121_spill] sm:$0xff] }
 0x431   :  { %v5043_v52 = vpop.xlane.xlu1 %5042  ;;  %v4423_v38 = vpop.xlane.xlu0 %4422  ;;  %v4297_v4 = vadd.f32 %v4296_v30, %v4295_v47  ;;  %v4713_v47 = vmul.f32 %v4697_v1, %v8408_v37  ;;  %v10426_v15 = vunpack.c.h.bf16 %v10424_v58 }
 0x432   :  { %v4371_v12 = vrot.slane %v4370_v36, 2  ;;  %v9133_v2 = vadd.f32 %v4439_v28, %v4423_v38  ;;  %v4562_v28 = vmul.f32 %v4546_v29, %v8432_v63  ;;  %v5421_v32 = vadd.f32 %v5403_v55, %v5402_v20  ;;  %v10413_v38 = vld [vmem:[#allocation151_spill] sm:$0xff] }
 0x433   :  { %v4547_v59 = vunpack.c.l.bf16 %v10413_v38  ;;  %v4548_v19 = vunpack.c.h.bf16 %v10413_v38 }
 0x434   :  { %v4372_v56 = vadd.f32 %v4371_v12, %v4370_v36  ;;  %5113 = vadd.xlane.f32.xlu1 %v5112_v10  ;;  %5060 = vadd.xlane.f32.xlu0 %v5059_v60  ;;  %v4409_v10 = vmul.f32 %v4393_v54, %v8434_v16  ;;  %v4410_v60 = vmul.f32 %v4394_v45, %v8440_v24  ;;  %v10414_v12 = vunpack.c.h.bf16 %v10395_v44 }
 0x435   :  { %v5096_v13 = vpop.xlane.xlu1 %5095  ;;  %v5046_v7 = vpop.xlane.xlu0 %5045  ;;  %v4866_v54 = vmul.f32 %v4850_v49, %v8400_v6  ;;  %v4581_v51 = vadd.f32 %v4562_v28, %v4561_v61  ;;  %v10415_v49 = vld [vmem:[#allocation136_spill] sm:$0xff]  ;;  %v5247_v44 = vmul.f32 %v4547_v59, %v8529_v62 }
 0x436   :  { %v4373_v9 = vrot.slane %v4372_v56, 1  ;;  %v5065_v48 = vadd.f32 %v5046_v7, %v5043_v52  ;;  %v4430_v21 = vadd.f32 %v4410_v60, %v4409_v10  ;;  %v4395_v25 = vunpack.c.l.bf16 %v10415_v49  ;;  %v10417_v10 = vld [vmem:[#allocation166_spill] sm:$0xff] }
 0x437   :  { %v4396_v20 = vunpack.c.h.bf16 %v10415_v49  ;;  %v4883_v1 = vadd.f32 %v4866_v54, %v4865_v5  ;;  %v5248_v7 = vmul.f32 %v4548_v19, %v8533_v35  ;;  %v4699_v60 = vunpack.c.l.bf16 %v10417_v10 }
 0x438   :  { %v4374_v36 = vadd.f32 %v4373_v9, %v4372_v56  ;;  %5319 = vadd.xlane.f32.xlu1 %v5318_v3  ;;  %5216 = vadd.xlane.f32.xlu0 %v5215_v27  ;;  %v4714_v3 = vmul.f32 %v10414_v12, %v8414_v34  ;;  %v10416_v9 = vld [vmem:[#allocation181_spill] sm:$0xff] }
 0x439   :  { %v5149_v57 = vpop.xlane.xlu1 %5148  ;;  %v5099_v52 = vpop.xlane.xlu0 %5098  ;;  %v4851_v61 = vunpack.c.l.bf16 %v10416_v9  ;;  %v4852_v28 = vunpack.c.h.bf16 %v10416_v9  ;;  %v5351_v12 = vmul.f32 %v4699_v60, %v8520_v41  ;;  %v4715_v49 = vmul.f32 %v4699_v60, %v8422_v33 }
 0x43a   :  { %v5118_v29 = vadd.f32 %v5099_v52, %v5096_v13  ;;  %v9167_v45 = vsel %vm4991_vm2, %v4297_v4, %v4374_v36  ;;  %v4732_v13 = vadd.f32 %v4714_v3, %v4713_v47  ;;  %v4700_v4 = vunpack.c.h.bf16 %v10417_v10 }
 0x43b   :  { %v5268_v52 = vadd.f32 %v5248_v7, %v5247_v44  ;;  %v5455_v5 = vmul.f32 %v4851_v61, %v8503_v8  ;;  %v5456_v54 = vmul.f32 %v4852_v28, %v8510_v31  ;;  %v4639_v44 = vmul.f32 %v4623_v40, %v8432_v63 }
 0x43c   :  { %5525 = vadd.xlane.f32.xlu1 %v5524_v17  ;;  %5422 = vadd.xlane.f32.xlu0 %v5421_v32  ;;  %v5144_v17 = vmul.f32 %v4396_v20, %v8543_v42  ;;  %v4486_v7 = vmul.f32 %v4470_v39, %v8434_v16  ;;  %v4943_v40 = vmul.f32 %v4927_v22, %v8400_v6  ;;  %v10421_v6 = vld [vmem:[#allocation35_spill] sm:$0xff]  ;;  %v10422_v22 = vunpack.c.h.bf16 %v10419_v50 }
 0x43d   :  { %v5049_v30 = vpop.xlane.xlu1 %5048  ;;  %v5152_v56 = vpop.xlane.xlu0 %5151 }
 0x43e   :  { %v9178_v27 = vadd.f32 %v5065_v48, %v5049_v30  ;;  %v5171_v55 = vadd.f32 %v5152_v56, %v5149_v57  ;;  %v5143_v48 = vmul.f32 %v4395_v25, %v8537_v23  ;;  %v5474_v56 = vadd.f32 %v5456_v54, %v5455_v5 }
 0x43f   :  { %v10420_v54 = vunpack.c.l.bf16 %v10419_v50 }
 0x440   :  { %4582 = vadd.xlane.f32.xlu1 %v4581_v51  ;;  %4431 = vadd.xlane.f32.xlu0 %v4430_v21  ;;  %v5165_v47 = vadd.f32 %v5144_v17, %v5143_v48 }
 0x441   :  { %v5202_v36 = vpop.xlane.xlu1 %5201  ;;  %v5102_v32 = vpop.xlane.xlu0 %5101  ;;  %v5092_v26 = vmul.f32 %v10420_v54, %v10418_v0 }
 0x442   :  { %v5119_v57 = vadd.f32 %v5118_v29, %v5102_v32  ;;  %v5352_v29 = vmul.f32 %v4700_v4, %v8523_v46 }
 0x444   :  { %4884 = vadd.xlane.f32.xlu1 %v4883_v1  ;;  %4733 = vadd.xlane.f32.xlu0 %v4732_v13  ;;  %v4638_v1 = vmul.f32 %v4622_v53, %v8422_v33  ;;  %v5371_v13 = vadd.f32 %v5352_v29, %v5351_v12  ;;  %v10423_v12 = vld [vmem:[#allocation159_spill] sm:$0xff] }
 0x445   :  { %v5155_v3 = vpop.xlane.xlu1 %5154  ;;  %v5205_v51 = vpop.xlane.xlu0 %5204  ;;  %v4624_v29 = vunpack.c.l.bf16 %v10423_v12 }
 0x446   :  { %v9208_v21 = vadd.f32 %v5171_v55, %v5155_v3  ;;  %v5224_v30 = vadd.f32 %v5205_v51, %v5202_v36  ;;  %v4487_v55 = vmul.f32 %v4471_v18, %v8440_v24  ;;  %v4658_v53 = vadd.f32 %v4639_v44, %v4638_v1 }
 0x447   :  { %v4791_v18 = vmul.f32 %v4775_v43, %v8414_v34  ;;  %v10425_v3 = vunpack.c.l.bf16 %v10424_v58  ;;  %v5040_v43 = vmul.f32 %v10426_v15, %v10421_v6  ;;  %v4960_v1 = vadd.f32 %v4943_v40, %v4942_v11  ;;  %v10428_v40 = vld [vmem:[#allocation189_spill] sm:$0xff] }
 0x448   :  { %5269 = vadd.xlane.f32.xlu1 %v5268_v52  ;;  %5166 = vadd.xlane.f32.xlu0 %v5165_v47  ;;  %v4507_v39 = vadd.f32 %v4487_v55, %v4486_v7  ;;  %v5093_v47 = vmul.f32 %v10422_v22, %v10421_v6  ;;  %v5300_v54 = vmul.f32 %v4624_v29, %v8529_v62 }
 0x449   :  { %v5258_v48 = vpop.xlane.xlu1 %5257  ;;  %v5255_v17 = vpop.xlane.xlu0 %5254  ;;  %v5039_v51 = vmul.f32 %v10425_v3, %v10418_v0  ;;  %v4809_v44 = vadd.f32 %v4791_v18, %v4790_v14  ;;  %v4929_v14 = vunpack.c.h.bf16 %v10428_v40  ;;  %v10429_v18 = vld [vmem:[#allocation174_spill] sm:$0xff] }
 0x44a   :  { %v9222_v36 = vadd.f32 %v5258_v48, %v5255_v17  ;;  %v5115_v50 = vadd.f32 %v5093_v47, %v5092_v26  ;;  %v4776_v26 = vunpack.c.l.bf16 %v10429_v18  ;;  %v4777_v22 = vunpack.c.h.bf16 %v10429_v18 }
 0x44c   :  { %5475 = vadd.xlane.f32.xlu1 %v5474_v56  ;;  %5372 = vadd.xlane.f32.xlu0 %v5371_v13  ;;  %v4625_v56 = vunpack.c.h.bf16 %v10423_v12  ;;  %v10427_v13 = vld [vmem:[#allocation144_spill] sm:$0xff] }
 0x44d   :  { %v4497_v32 = vpop.xlane.xlu1 %4496  ;;  %v4494_v52 = vpop.xlane.xlu0 %4493  ;;  %v4472_v7 = vunpack.c.l.bf16 %v10427_v13  ;;  %v4473_v55 = vunpack.c.h.bf16 %v10427_v13  ;;  %v4792_v13 = vmul.f32 %v4776_v26, %v8422_v33 }
 0x44e   :  { %v9236_v5 = vadd.f32 %v4497_v32, %v4494_v52  ;;  %v5301_v11 = vmul.f32 %v4625_v56, %v8533_v35 }
 0x450   :  { %4659 = vadd.xlane.f32.xlu1 %v4658_v53  ;;  %4508 = vadd.xlane.f32.xlu0 %v4507_v39  ;;  %v5062_v53 = vadd.f32 %v5040_v43, %v5039_v51  ;;  %v4928_v39 = vunpack.c.l.bf16 %v10428_v40  ;;  %v5321_v51 = vadd.f32 %v5301_v11, %v5300_v54  ;;  %v5509_v43 = vmul.f32 %v4929_v14, %v8510_v31  ;;  %v10430_v11 = vld [vmem:[#allocation58_spill] sm:$0xff] }
 0x451   :  { %v5105_v48 = vpop.xlane.xlu1 %5104  ;;  %v5052_v17 = vpop.xlane.xlu0 %5051  ;;  %v4563_v31 = vmul.f32 %v4547_v59, %v8434_v16 }
 0x452   :  { %v9254_v32 = vadd.f32 %v5119_v57, %v5105_v48  ;;  %v9257_v52 = vadd.f32 %v9178_v27, %v5052_v17  ;;  %v5196_v27 = vmul.f32 %v4472_v7, %v8537_v23  ;;  %v5197_v57 = vmul.f32 %v4473_v55, %v8543_v42 }
 0x453   :  { %v5508_v15 = vmul.f32 %v4928_v39, %v8503_v8 }
 0x454   :  { %4961 = vadd.xlane.f32.xlu1 %v4960_v1  ;;  %4810 = vadd.xlane.f32.xlu0 %v4809_v44  ;;  %v5218_v1 = vadd.f32 %v5197_v57, %v5196_v27  ;;  %v5404_v44 = vmul.f32 %v4776_v26, %v8520_v41  ;;  %v4411_v27 = vmul.f32 %v4395_v25, %v10430_v11  ;;  %v10431_v57 = vld [vmem:[#allocation37_spill] sm:$0xff] }
 0x455   :  { %v5308_v47 = vpop.xlane.xlu1 %5307  ;;  %v5208_v58 = vpop.xlane.xlu0 %5207  ;;  %v5527_v8 = vadd.f32 %v5509_v43, %v5508_v15  ;;  %v10432_v43 = vld [vmem:[#allocation152_spill] sm:$0xff]  ;;  %v4868_v25 = vmul.f32 %v4852_v28, %v8414_v34 }
 0x456   :  { %v9275_v3 = vadd.f32 %v5224_v30, %v5208_v58  ;;  %v5405_v30 = vmul.f32 %v4777_v22, %v8523_v46 }
 0x458   :  { %5116 = vadd.xlane.f32.xlu1 %v5115_v50  ;;  %5063 = vadd.xlane.f32.xlu0 %v5062_v53  ;;  %v4564_v50 = vmul.f32 %v4548_v19, %v8440_v24  ;;  %v5424_v53 = vadd.f32 %v5405_v30, %v5404_v44  ;;  %v4867_v19 = vmul.f32 %v4851_v61, %v8408_v37  ;;  %v10433_v44 = vld [vmem:[#allocation137_spill] sm:$0xff] }
 0x459   :  { %v4571_v48 = vpop.xlane.xlu1 %4570  ;;  %v5311_v17 = vpop.xlane.xlu0 %5310  ;;  %v10004_v61 = vunpack.c.l.bf16 %v10433_v44  ;;  %v10003_v30 = vunpack.c.h.bf16 %v10433_v44 }
 0x45a   :  { %v9289_v54 = vadd.f32 %v5311_v17, %v5308_v47  ;;  %v4412_v47 = vmul.f32 %v4396_v20, %v10431_v57  ;;  %v4549_v17 = vunpack.c.l.bf16 %v10432_v43  ;;  %v4716_v20 = vmul.f32 %v4700_v4, %v8432_v63 }
 0x45b   :  { %v4886_v60 = vadd.f32 %v4868_v25, %v4867_v19 }
 0x45c   :  { %5322 = vadd.xlane.f32.xlu1 %v5321_v51  ;;  %5219 = vadd.xlane.f32.xlu0 %v5218_v1  ;;  %v4584_v51 = vadd.f32 %v4564_v50, %v4563_v31  ;;  %v4433_v1 = vadd.f32 %v4412_v47, %v4411_v27  ;;  %v5249_v10 = vmul.f32 %v4549_v17, %v8537_v23  ;;  %v10434_v31 = vld [vmem:[#allocation182_spill] sm:$0xff]  ;;  %v10435_v47 = vld [vmem:[#allocation167_spill] sm:$0xff] }
 0x45d   :  { %v5158_v58 = vpop.xlane.xlu1 %5157  ;;  %v4574_v15 = vpop.xlane.xlu0 %4573  ;;  %v4735_v4 = vadd.f32 %v4716_v20, %v4715_v49  ;;  %v4853_v50 = vunpack.c.l.bf16 %v10434_v31  ;;  %v5146_v27 = vmul.f32 %v10003_v30, %v10421_v6 }
 0x45e   :  { %v9305_v59 = vadd.f32 %v9208_v21, %v5158_v58  ;;  %v9307_v38 = vadd.f32 %v4574_v15, %v4571_v48  ;;  %v4550_v21 = vunpack.c.h.bf16 %v10432_v43  ;;  %v4701_v58 = vunpack.c.l.bf16 %v10435_v47 }
 0x45f   :  { %v4702_v15 = vunpack.c.h.bf16 %v10435_v47  ;;  %v4869_v43 = vmul.f32 %v4853_v50, %v8422_v33 }
 0x460   :  { %5528 = vadd.xlane.f32.xlu1 %v5527_v8  ;;  %5425 = vadd.xlane.f32.xlu0 %v5424_v53  ;;  %v5250_v8 = vmul.f32 %v4550_v21, %v8543_v42  ;;  %v4854_v53 = vunpack.c.h.bf16 %v10434_v31 }
 0x461   :  { %v5361_v9 = vpop.xlane.xlu1 %5360  ;;  %v5261_v28 = vpop.xlane.xlu0 %5260 }
 0x462   :  { %v9325_v48 = vadd.f32 %v9222_v36, %v5261_v28  ;;  %v5145_v36 = vmul.f32 %v10004_v61, %v10418_v0  ;;  %v5458_v28 = vmul.f32 %v4854_v53, %v8523_v46  ;;  %v5353_v61 = vmul.f32 %v4701_v58, %v8529_v62 }
 0x464   :  { %4585 = vadd.xlane.f32.xlu1 %v4584_v51  ;;  %4434 = vadd.xlane.f32.xlu0 %v4433_v1  ;;  %v5271_v51 = vadd.f32 %v5250_v8, %v5249_v10  ;;  %v5457_v1 = vmul.f32 %v4853_v50, %v8520_v41  ;;  %v5168_v30 = vadd.f32 %v5146_v27, %v5145_v36 }
 0x465   :  { %v4500_v19 = vpop.xlane.xlu1 %4499  ;;  %v5364_v25 = vpop.xlane.xlu0 %5363  ;;  %v4488_v36 = vmul.f32 %v4472_v7, %v10430_v11  ;;  %v4489_v27 = vmul.f32 %v4473_v55, %v10431_v57  ;;  %v4945_v7 = vmul.f32 %v4929_v14, %v8414_v34  ;;  %v4793_v55 = vmul.f32 %v4777_v22, %v8432_v63 }
 0x466   :  { %v9344_v49 = vadd.f32 %v9236_v5, %v4500_v19  ;;  %v9346_v20 = vadd.f32 %v5364_v25, %v5361_v9  ;;  %v5354_v5 = vmul.f32 %v4702_v15, %v8533_v35  ;;  %v5477_v19 = vadd.f32 %v5458_v28, %v5457_v1 }
 0x467   :  { %v4640_v25 = vmul.f32 %v4624_v29, %v8434_v16 }
 0x468   :  { %4887 = vadd.xlane.f32.xlu1 %v4886_v60  ;;  %4736 = vadd.xlane.f32.xlu0 %v4735_v4  ;;  %v4641_v60 = vmul.f32 %v4625_v56, %v8440_v24  ;;  %v5374_v4 = vadd.f32 %v5354_v5, %v5353_v61  ;;  %v4944_v56 = vmul.f32 %v4928_v39, %v8408_v37 }
 0x469   :  { %v4651_v9 = vpop.xlane.xlu1 %4650  ;;  %v4648_v10 = vpop.xlane.xlu0 %4647  ;;  %v4510_v61 = vadd.f32 %v4489_v27, %v4488_v36 }
 0x46a   :  { %v9360_v8 = vadd.f32 %v4651_v9, %v4648_v10  ;;  %v10436_v9 = vld [vmem:[#allocation160_spill] sm:$0xff]  ;;  %v4963_v18 = vadd.f32 %v4945_v7, %v4944_v56 }
 0x46b   :  { %v4626_v10 = vunpack.c.l.bf16 %v10436_v9 }
 0x46c   :  { %5272 = vadd.xlane.f32.xlu1 %v5271_v51  ;;  %5169 = vadd.xlane.f32.xlu0 %v5168_v30  ;;  %v10437_v30 = vld [vmem:[#allocation145_spill] sm:$0xff]  ;;  %v4812_v51 = vadd.f32 %v4793_v55, %v4792_v13 }
 0x46d   :  { %v5108_v1 = vpop.xlane.xlu1 %5107  ;;  %v5055_v28 = vpop.xlane.xlu0 %5054  ;;  %v4474_v37 = vunpack.c.l.bf16 %v10437_v30  ;;  %v4475_v39 = vunpack.c.h.bf16 %v10437_v30  ;;  %v5302_v22 = vmul.f32 %v4626_v10, %v8537_v23 }
 0x46e   :  { %v9376_v29 = vadd.f32 %v9254_v32, %v5108_v1  ;;  %v9379_v12 = vadd.f32 %v9257_v52, %v5055_v28  ;;  %v4627_v32 = vunpack.c.h.bf16 %v10436_v9  ;;  %v4661_v52 = vadd.f32 %v4641_v60, %v4640_v25 }
 0x470   :  { %5478 = vadd.xlane.f32.xlu1 %v5477_v19  ;;  %5375 = vadd.xlane.f32.xlu0 %v5374_v4  ;;  %v5303_v5 = vmul.f32 %v4627_v32, %v8543_v42  ;;  %v10438_v19 = vld [vmem:[#allocation190_spill] sm:$0xff]  ;;  %v10439_v4 = vld [vmem:[#allocation175_spill] sm:$0xff] }
 0x471   :  { %v5314_v40 = vpop.xlane.xlu1 %5313  ;;  %v5211_v34 = vpop.xlane.xlu0 %5210  ;;  %v4930_v25 = vunpack.c.l.bf16 %v10438_v19  ;;  %v4931_v60 = vunpack.c.h.bf16 %v10438_v19  ;;  %v4778_v36 = vunpack.c.l.bf16 %v10439_v4  ;;  %v4779_v27 = vunpack.c.h.bf16 %v10439_v4 }
 0x472   :  { %v9397_v14 = vadd.f32 %v9289_v54, %v5314_v40  ;;  %v9400_v26 = vadd.f32 %v9275_v3, %v5211_v34  ;;  %v5198_v3 = vmul.f32 %v4474_v37, %v10418_v0  ;;  %v5199_v54 = vmul.f32 %v4475_v39, %v10421_v6 }
 0x473   :  { %v5324_v7 = vadd.f32 %v5303_v5, %v5302_v22  ;;  %v5510_v13 = vmul.f32 %v4930_v25, %v8520_v41  ;;  %v5511_v55 = vmul.f32 %v4931_v60, %v8523_v46  ;;  %v5407_v40 = vmul.f32 %v4779_v27, %v8533_v35 }
 0x474   :  { %4662 = vadd.xlane.f32.xlu1 %v4661_v52  ;;  %4511 = vadd.xlane.f32.xlu0 %v4510_v61  ;;  %v5221_v52 = vadd.f32 %v5199_v54, %v5198_v3  ;;  %v5406_v61 = vmul.f32 %v4778_v36, %v8529_v62  ;;  %v10440_v54 = vld [vmem:[#allocation36_spill] sm:$0xff]  ;;  %v4794_v30 = vmul.f32 %v4778_v36, %v8434_v16 }
 0x475   :  { %v5417_v1 = vpop.xlane.xlu1 %5416  ;;  %v5414_v28 = vpop.xlane.xlu0 %5413  ;;  %v5530_v46 = vadd.f32 %v5511_v55, %v5510_v13  ;;  %v4643_v36 = vmul.f32 %v4627_v32, %v10431_v57  ;;  %v4947_v9 = vmul.f32 %v4931_v60, %v8432_v63  ;;  %v10448_v32 = vld [vmem:[#allocation191_spill] sm:$0xff] }
 0x476   :  { %v9418_v56 = vadd.f32 %v5417_v1, %v5414_v28  ;;  %v5427_v3 = vadd.f32 %v5407_v40, %v5406_v61  ;;  %v10441_v1 = vunpack.c.l.bf16 %v10433_v44  ;;  %v10442_v28 = vld [vmem:[#allocation57_spill] sm:$0xff] }
 0x478   :  { %4964 = vadd.xlane.f32.xlu1 %v4963_v18  ;;  %4813 = vadd.xlane.f32.xlu0 %v4812_v51  ;;  %v4565_v18 = vmul.f32 %v4549_v17, %v10430_v11  ;;  %v4566_v51 = vmul.f32 %v4550_v21, %v10431_v57  ;;  %v4870_v17 = vmul.f32 %v4854_v53, %v8432_v63 }
 0x479   :  { %v4577_v34 = vpop.xlane.xlu1 %4576  ;;  %v4426_v22 = vpop.xlane.xlu0 %4425  ;;  %v4717_v21 = vmul.f32 %v4701_v58, %v8434_v16 }
 0x47a   :  { %v9433_v5 = vadd.f32 %v9307_v38, %v4577_v34  ;;  %v9436_v41 = vadd.f32 %v9133_v2, %v4426_v22  ;;  %v4413_v38 = vmul.f32 %v10441_v1, %v10440_v54  ;;  %v10443_v2 = vunpack.c.h.bf16 %v10433_v44  ;;  %v10445_v1 = vld [vmem:[#allocation153_spill] sm:$0xff] }
 0x47b   :  { %v4718_v44 = vmul.f32 %v4702_v15, %v8440_v24  ;;  %v4587_v40 = vadd.f32 %v4566_v51, %v4565_v18  ;;  %v4552_v31 = vunpack.c.h.bf16 %v10445_v1  ;;  %v4889_v15 = vadd.f32 %v4870_v17, %v4869_v43  ;;  %v10446_v51 = vld [vmem:[#allocation183_spill] sm:$0xff] }
 0x47c   :  { %5325 = vadd.xlane.f32.xlu1 %v5324_v7  ;;  %5222 = vadd.xlane.f32.xlu0 %v5221_v52  ;;  %v4414_v34 = vmul.f32 %v10443_v2, %v10442_v28  ;;  %v10444_v7 = vld [vmem:[#allocation168_spill] sm:$0xff]  ;;  %v4551_v2 = vunpack.c.l.bf16 %v10445_v1 }
 0x47d   :  { %v4728_v13 = vpop.xlane.xlu1 %4727  ;;  %v4725_v55 = vpop.xlane.xlu0 %4724  ;;  %v4703_v52 = vunpack.c.l.bf16 %v10444_v7  ;;  %v4704_v61 = vunpack.c.h.bf16 %v10444_v7 }
 0x47e   :  { %v9450_v22 = vadd.f32 %v4728_v13, %v4725_v55  ;;  %v4436_v50 = vadd.f32 %v4414_v34, %v4413_v38  ;;  %v4738_v55 = vadd.f32 %v4718_v44, %v4717_v21  ;;  %v10005_v38 = vunpack.c.h.bf16 %v10446_v51 }
 0x47f   :  { %v5356_v18 = vmul.f32 %v4704_v61, %v8543_v42  ;;  %v4490_v44 = vmul.f32 %v4474_v37, %v10440_v54  ;;  %v4795_v37 = vmul.f32 %v4779_v27, %v8440_v24 }
 0x480   :  { %5531 = vadd.xlane.f32.xlu1 %v5530_v46  ;;  %5428 = vadd.xlane.f32.xlu0 %v5427_v3  ;;  %v5355_v46 = vmul.f32 %v4703_v52, %v8537_v23  ;;  %v4855_v3 = vunpack.c.l.bf16 %v10446_v51 }
 0x481   :  { %v5264_v53 = vpop.xlane.xlu1 %5263  ;;  %v5161_v13 = vpop.xlane.xlu0 %5160  ;;  %v4815_v27 = vadd.f32 %v4795_v37, %v4794_v30 }
 0x482   :  { %v9469_v58 = vadd.f32 %v9325_v48, %v5264_v53  ;;  %v9472_v47 = vadd.f32 %v9305_v59, %v5161_v13  ;;  %v5251_v48 = vmul.f32 %v4551_v2, %v10418_v0  ;;  %v5252_v59 = vmul.f32 %v4552_v31, %v10421_v6 }
 0x483   :  { %v5377_v21 = vadd.f32 %v5356_v18, %v5355_v46  ;;  %v5459_v53 = vmul.f32 %v4855_v3, %v8529_v62  ;;  %v4871_v1 = vmul.f32 %v4855_v3, %v8434_v16 }
 0x484   :  { %4588 = vadd.xlane.f32.xlu1 %v4587_v40  ;;  %4437 = vadd.xlane.f32.xlu0 %v4436_v50  ;;  %v4491_v40 = vmul.f32 %v4475_v39, %v10442_v28  ;;  %v5274_v50 = vadd.f32 %v5252_v59, %v5251_v48  ;;  %v10447_v39 = vld [vmem:[#allocation161_spill] sm:$0xff]  ;;  %v4642_v59 = vmul.f32 %v4626_v10, %v10430_v11 }
 0x485   :  { %v9488_v34 = vpop.xlane.xlu1 %5466  ;;  %v5367_v43 = vpop.xlane.xlu0 %5366  ;;  %v10006_v18 = vunpack.c.h.bf16 %v10447_v39  ;;  %v4946_v10 = vmul.f32 %v4930_v25, %v8422_v33 }
 0x486   :  { %v9491_v17 = vadd.f32 %v9346_v20, %v5367_v43  ;;  %v5460_v20 = vmul.f32 %v10005_v38, %v8533_v35 }
 0x487   :  { %v4966_v63 = vadd.f32 %v4947_v9, %v4946_v10 }
 0x488   :  { %4890 = vadd.xlane.f32.xlu1 %v4889_v15  ;;  %4739 = vadd.xlane.f32.xlu0 %v4738_v55  ;;  %v4628_v15 = vunpack.c.l.bf16 %v10447_v39  ;;  %v4513_v55 = vadd.f32 %v4491_v40, %v4490_v44  ;;  %v5480_v48 = vadd.f32 %v5460_v20, %v5459_v53  ;;  %v5305_v44 = vmul.f32 %v10006_v18, %v10421_v6 }
 0x489   :  { %v9505_v13 = vpop.xlane.xlu1 %4502  ;;  %v9507_v46 = vpop.xlane.xlu0 %5469  ;;  %v4933_v40 = vunpack.c.h.bf16 %v10448_v32 }
 0x48a   :  { %v4644_v3 = vmul.f32 %v4628_v15, %v10440_v54 }
 0x48b   :  { %v5513_v60 = vmul.f32 %v4933_v40, %v8533_v35  ;;  %v4720_v35 = vmul.f32 %v4704_v61, %v10431_v57 }
 0x48c   :  { %5378 = vadd.xlane.f32.xlu1 %v5377_v21  ;;  %5275 = vadd.xlane.f32.xlu0 %v5274_v50  ;;  %v5304_v21 = vmul.f32 %v4628_v15, %v10418_v0  ;;  %v10449_v50 = vld [vmem:[#allocation176_spill] sm:$0xff] }
 0x48d   :  { %v4802_v43 = vpop.xlane.xlu1 %4801  ;;  %v4654_v38 = vpop.xlane.xlu0 %4653  ;;  %v4780_v53 = vunpack.c.l.bf16 %v10449_v50  ;;  %v4781_v20 = vunpack.c.h.bf16 %v10449_v50 }
 0x48e   :  { %v9524_v4 = vadd.f32 %v9360_v8, %v4654_v38  ;;  %v4932_v8 = vunpack.c.l.bf16 %v10448_v32  ;;  %v4664_v38 = vadd.f32 %v4643_v36, %v4642_v59  ;;  %v5327_v19 = vadd.f32 %v5305_v44, %v5304_v21  ;;  %v10450_v44 = vld [vmem:[#allocation169_spill] sm:$0xff] }
 0x48f   :  { %v4705_v10 = vunpack.c.l.bf16 %v10450_v44 }
 0x490   :  { %4514 = vadd.xlane.f32.xlu1 %v4513_v55  ;;  %5481 = vadd.xlane.f32.xlu0 %v5480_v48  ;;  %v5512_v25 = vmul.f32 %v4932_v8, %v8529_v62  ;;  %v5408_v55 = vmul.f32 %v4780_v53, %v8537_v23  ;;  %v5409_v48 = vmul.f32 %v4781_v20, %v8543_v42 }
 0x491   :  { %v5058_v30 = vpop.xlane.xlu1 %5057  ;;  %v4805_v37 = vpop.xlane.xlu0 %4804  ;;  %v4719_v62 = vmul.f32 %v4703_v52, %v10430_v11  ;;  %v4706_v52 = vunpack.c.h.bf16 %v10450_v44  ;;  %v4949_v44 = vmul.f32 %v4933_v40, %v8440_v24 }
 0x492   :  { %v9543_v18 = vadd.f32 %v9379_v12, %v5058_v30  ;;  %v9545_v33 = vadd.f32 %v4805_v37, %v4802_v43  ;;  %v5430_v21 = vadd.f32 %v5409_v48, %v5408_v55  ;;  %v5357_v37 = vmul.f32 %v4705_v10, %v10418_v0 }
 0x494   :  { %4816 = vadd.xlane.f32.xlu1 %v4815_v27  ;;  %4665 = vadd.xlane.f32.xlu0 %v4664_v38  ;;  %v4567_v27 = vmul.f32 %v4551_v2, %v10440_v54  ;;  %v4741_v2 = vadd.f32 %v4720_v35, %v4719_v62 }
 0x495   :  { %v5214_v59 = vpop.xlane.xlu1 %5213  ;;  %v5111_v36 = vpop.xlane.xlu0 %5110 }
 0x496   :  { %v9554_v12 = vadd.f32 %v9400_v26, %v5214_v59  ;;  %v9557_v43 = vadd.f32 %v9376_v29, %v5111_v36  ;;  %v4568_v26 = vmul.f32 %v4552_v31, %v10442_v28  ;;  %v5533_v29 = vadd.f32 %v5513_v60, %v5512_v25 }
 0x497   :  { %v10451_v31 = vunpack.c.h.bf16 %v10446_v51  ;;  %v10453_v51 = vunpack.c.h.bf16 %v10447_v39  ;;  %v4948_v39 = vmul.f32 %v4932_v8, %v8434_v16 }
 0x498   :  { %5328 = vadd.xlane.f32.xlu1 %v5327_v19  ;;  %4967 = vadd.xlane.f32.xlu0 %v4966_v63  ;;  %v4590_v50 = vadd.f32 %v4568_v26, %v4567_v27  ;;  %v10452_v19 = vld [vmem:[#allocation184_spill] sm:$0xff] }
 0x499   :  { %v5420_v9 = vpop.xlane.xlu1 %5419  ;;  %v5317_v38 = vpop.xlane.xlu0 %5316  ;;  %v4872_v30 = vmul.f32 %v10451_v31, %v8440_v24  ;;  %v4857_v63 = vunpack.c.l.bf16 %v10452_v19  ;;  %v4645_v48 = vmul.f32 %v10453_v51, %v10442_v28  ;;  %v4969_v24 = vadd.f32 %v4949_v44, %v4948_v39  ;;  %v10457_v44 = vld [vmem:[#allocation193_spill] sm:$0xff] }
 0x49a   :  { %v9574_v7 = vadd.f32 %v9418_v56, %v5420_v9  ;;  %v9577_v61 = vadd.f32 %v9397_v14, %v5317_v38  ;;  %v5358_v56 = vmul.f32 %v4706_v52, %v10421_v6  ;;  %v4858_v14 = vunpack.c.h.bf16 %v10452_v19 }
 0x49b   :  { %v4892_v59 = vadd.f32 %v4872_v30, %v4871_v1  ;;  %v5461_v62 = vmul.f32 %v4857_v63, %v8537_v23  ;;  %v4667_v15 = vadd.f32 %v4645_v48, %v4644_v3  ;;  %v4796_v9 = vmul.f32 %v4780_v53, %v10430_v11 }
 0x49c   :  { %5534 = vadd.xlane.f32.xlu1 %v5533_v29  ;;  %5431 = vadd.xlane.f32.xlu0 %v5430_v21  ;;  %v5380_v36 = vadd.f32 %v5358_v56, %v5357_v37  ;;  %v5462_v35 = vmul.f32 %v4858_v14, %v8543_v42  ;;  %v4797_v38 = vmul.f32 %v4781_v20, %v10431_v57 }
 0x49d   :  { %v5523_v25 = vpop.xlane.xlu1 %5522  ;;  %v5520_v60 = vpop.xlane.xlu0 %5519  ;;  %v4874_v3 = vmul.f32 %v4858_v14, %v10431_v57  ;;  %v4722_v48 = vmul.f32 %v4706_v52, %v10442_v28 }
 0x49e   :  { %v9589_v55 = vadd.f32 %v5523_v25, %v5520_v60  ;;  %v4818_v8 = vadd.f32 %v4797_v38, %v4796_v9  ;;  %v4873_v60 = vmul.f32 %v4857_v63, %v10430_v11  ;;  %v4936_v9 = vunpack.c.l.bf16 %v10457_v44 }
 0x49f   :  { %v4937_v38 = vunpack.c.h.bf16 %v10457_v44 }
 0x4a0   :  { %4742 = vadd.xlane.f32.xlu1 %v4741_v2  ;;  %4591 = vadd.xlane.f32.xlu0 %v4590_v50  ;;  %v10454_v2 = vld [vmem:[#allocation192_spill] sm:$0xff]  ;;  %v4895_v14 = vadd.f32 %v4874_v3, %v4873_v60 }
 0x4a1   :  { %v4580_v27 = vpop.xlane.xlu1 %4579  ;;  %v4429_v26 = vpop.xlane.xlu0 %4428  ;;  %v4934_v50 = vunpack.c.l.bf16 %v10454_v2  ;;  %v4935_v1 = vunpack.c.h.bf16 %v10454_v2  ;;  %v4518_v2 = vadd.f32 %v9344_v49, %v9505_v13 }
 0x4a2   :  { %v9600_v29 = vadd.f32 %v9433_v5, %v4580_v27  ;;  %v9603_v21 = vadd.f32 %v9436_v41, %v4429_v26  ;;  %v5483_v5 = vadd.f32 %v5462_v35, %v5461_v62  ;;  %v10455_v41 = vld [vmem:[#allocation177_spill] sm:$0xff] }
 0x4a3   :  { %v4782_v31 = vunpack.c.l.bf16 %v10455_v41  ;;  %v4783_v30 = vunpack.c.h.bf16 %v10455_v41  ;;  %v5514_v40 = vmul.f32 %v4934_v50, %v8537_v23  ;;  %v5515_v53 = vmul.f32 %v4935_v1, %v8543_v42  ;;  %v10456_v42 = vld [vmem:[#allocation185_spill] sm:$0xff] }
 0x4a4   :  { %5381 = vadd.xlane.f32.xlu1 %v5380_v36  ;;  %4893 = vadd.xlane.f32.xlu0 %v4892_v59  ;;  %v4721_v23 = vmul.f32 %v4705_v10, %v10440_v54  ;;  %v4859_v59 = vunpack.c.l.bf16 %v10456_v42  ;;  %v4860_v35 = vunpack.c.h.bf16 %v10456_v42 }
 0x4a5   :  { %v4879_v37 = vpop.xlane.xlu1 %4878  ;;  %v4731_v32 = vpop.xlane.xlu0 %4730  ;;  %v5410_v20 = vmul.f32 %v4782_v31, %v10418_v0  ;;  %v5411_v56 = vmul.f32 %v4783_v30, %v10421_v6  ;;  %v5536_v36 = vadd.f32 %v5515_v53, %v5514_v40  ;;  %v4798_v52 = vmul.f32 %v4782_v31, %v10440_v54 }
 0x4a6   :  { %v9616_v16 = vadd.f32 %v9450_v22, %v4731_v32  ;;  %v4744_v10 = vadd.f32 %v4722_v48, %v4721_v23  ;;  %v5463_v39 = vmul.f32 %v4859_v59, %v10418_v0  ;;  %v5517_v32 = vmul.f32 %v4937_v38, %v10421_v6 }
 0x4a7   :  { %v5433_v62 = vadd.f32 %v5411_v56, %v5410_v20 }
 0x4a8   :  { %4668 = vadd.xlane.f32.xlu1 %v4667_v15  ;;  %5484 = vadd.xlane.f32.xlu0 %v5483_v5  ;;  %v4799_v15 = vmul.f32 %v4783_v30, %v10442_v28 }
 0x4a9   :  { %v5164_v19 = vpop.xlane.xlu1 %5163  ;;  %v4882_v25 = vpop.xlane.xlu0 %4881 }
 0x4aa   :  { %v9625_v22 = vadd.f32 %v9472_v47, %v5164_v19  ;;  %v9627_v51 = vadd.f32 %v4882_v25, %v4879_v37  ;;  %v5516_v37 = vmul.f32 %v4936_v9, %v10418_v0  ;;  %v4821_v49 = vadd.f32 %v4799_v15, %v4798_v52 }
 0x4ab   :  { %v4952_v0 = vmul.f32 %v4936_v9, %v10440_v54 }
 0x4ac   :  { %4970 = vadd.xlane.f32.xlu1 %v4969_v24  ;;  %4819 = vadd.xlane.f32.xlu0 %v4818_v8  ;;  %v4950_v24 = vmul.f32 %v4934_v50, %v10430_v11  ;;  %v4951_v8 = vmul.f32 %v4935_v1, %v10431_v57  ;;  %v5539_v20 = vadd.f32 %v5517_v32, %v5516_v37 }
 0x4ad   :  { %v5370_v63 = vpop.xlane.xlu1 %5369  ;;  %v5267_v27 = vpop.xlane.xlu0 %5266  ;;  %v4875_v11 = vmul.f32 %v4859_v59, %v10440_v54  ;;  %v4876_v57 = vmul.f32 %v4860_v35, %v10442_v28 }
 0x4ae   :  { %v9634_v47 = vadd.f32 %v9491_v17, %v5370_v63  ;;  %v9637_v26 = vadd.f32 %v9469_v58, %v5267_v27  ;;  %v5489_v17 = vadd.f32 %v9507_v46, %v9488_v34  ;;  %v5464_v58 = vmul.f32 %v4860_v35, %v10421_v6 }
 0x4af   :  { %v4972_v56 = vadd.f32 %v4951_v8, %v4950_v24  ;;  %v4953_v6 = vmul.f32 %v4937_v38, %v10442_v28  ;;  %v4898_v25 = vadd.f32 %v4876_v57, %v4875_v11 }
 0x4b0   :  { %5537 = vadd.xlane.f32.xlu1 %v5536_v36  ;;  %5434 = vadd.xlane.f32.xlu0 %v5433_v62  ;;  %v5486_v34 = vadd.f32 %v5464_v58, %v5463_v39 }
 0x4b1   :  { %v4506_v5 = vpop.xlane.xlu1 %4505  ;;  %v5473_v41 = vpop.xlane.xlu0 %5472 }
 0x4b2   :  { %v4519_v31 = vadd.f32 %v4518_v2, %v4506_v5  ;;  %v5490_v30 = vadd.f32 %v5489_v17, %v5473_v41 }
 0x4b4   :  { %4896 = vadd.xlane.f32.xlu1 %v4895_v14  ;;  %4745 = vadd.xlane.f32.xlu0 %v4744_v10 }
 0x4b5   :  { %v4808_v13 = vpop.xlane.xlu1 %4807  ;;  %v4657_v46 = vpop.xlane.xlu0 %4656 }
 0x4b6   :  { %v4825_v40 = vadd.f32 %v9545_v33, %v4808_v13  ;;  %v4672_v53 = vadd.f32 %v9524_v4, %v4657_v46  ;;  %v4975_v33 = vadd.f32 %v4953_v6, %v4952_v0 }
 0x4b8   :  { %4822 = vadd.xlane.f32.xlu1 %v4821_v49  ;;  %5487 = vadd.xlane.f32.xlu0 %v5486_v34 }
 0x4b9   :  { %v4959_v50 = vpop.xlane.xlu1 %4958  ;;  %v4956_v1 = vpop.xlane.xlu0 %4955 }
 0x4ba   :  { %v4978_v19 = vadd.f32 %v4959_v50, %v4956_v1 }
 0x4bc   :  { %5540 = vadd.xlane.f32.xlu1 %v5539_v20  ;;  %4973 = vadd.xlane.f32.xlu0 %v4972_v56 }
 0x4bd   :  { %v5114_v4 = vpop.xlane.xlu1 %5113  ;;  %v5061_v60 = vpop.xlane.xlu0 %5060 }
 0x4be   :  { %v5123_v3 = vadd.f32 %v9557_v43, %v5114_v4  ;;  %v5070_v23 = vadd.f32 %v9543_v18, %v5061_v60 }
 0x4c0   :  { %4976 = vadd.xlane.f32.xlu1 %v4975_v33  ;;  %4899 = vadd.xlane.f32.xlu0 %v4898_v25 }
 0x4c1   :  { %v5320_v48 = vpop.xlane.xlu1 %5319  ;;  %v5217_v42 = vpop.xlane.xlu0 %5216 }
 0x4c2   :  { %v5333_v54 = vadd.f32 %v9577_v61, %v5320_v48  ;;  %v5228_v28 = vadd.f32 %v9554_v12, %v5217_v42 }
 0x4c5   :  { %v5526_v59 = vpop.xlane.xlu1 %5525  ;;  %v5423_v36 = vpop.xlane.xlu0 %5422 }
 0x4c6   :  { %v5543_v62 = vadd.f32 %v9589_v55, %v5526_v59  ;;  %v5438_v35 = vadd.f32 %v9574_v7, %v5423_v36 }
 0x4c9   :  { %v4583_v63 = vpop.xlane.xlu1 %4582  ;;  %v4432_v27 = vpop.xlane.xlu0 %4431 }
 0x4ca   :  { %v4596_v43 = vadd.f32 %v9600_v29, %v4583_v63  ;;  %v4443_v18 = vadd.f32 %v9603_v21, %v4432_v27 }
 0x4cd   :  { %v4885_v14 = vpop.xlane.xlu1 %4884  ;;  %v4734_v10 = vpop.xlane.xlu0 %4733 }
 0x4ce   :  { %v4902_v52 = vadd.f32 %v9627_v51, %v4885_v14  ;;  %v4749_v61 = vadd.f32 %v9616_v16, %v4734_v10 }
 0x4d1   :  { %v5270_v15 = vpop.xlane.xlu1 %5269  ;;  %v5167_v12 = vpop.xlane.xlu0 %5166 }
 0x4d2   :  { %v5281_v39 = vadd.f32 %v9637_v26, %v5270_v15  ;;  %v5176_v55 = vadd.f32 %v9625_v22, %v5167_v12 }
 0x4d5   :  { %v5476_v44 = vpop.xlane.xlu1 %5475  ;;  %v5373_v7 = vpop.xlane.xlu0 %5372 }
 0x4d6   :  { %v5491_v9 = vadd.f32 %v5490_v30, %v5476_v44  ;;  %v5386_v38 = vadd.f32 %v9634_v47, %v5373_v7 }
 0x4d9   :  { %v4660_v29 = vpop.xlane.xlu1 %4659  ;;  %v4509_v2 = vpop.xlane.xlu0 %4508 }
 0x4da   :  { %v4673_v21 = vadd.f32 %v4672_v53, %v4660_v29  ;;  %v4520_v17 = vadd.f32 %v4519_v31, %v4509_v2 }
 0x4dd   :  { %v4962_v58 = vpop.xlane.xlu1 %4961  ;;  %v4811_v5 = vpop.xlane.xlu0 %4810 }
 0x4de   :  { %v4979_v51 = vadd.f32 %v4978_v19, %v4962_v58  ;;  %v4826_v41 = vadd.f32 %v4825_v40, %v4811_v5 }
 0x4e1   :  { %v5117_v16 = vpop.xlane.xlu1 %5116  ;;  %v5064_v37 = vpop.xlane.xlu0 %5063 }
 0x4e2   :  { %v5124_v32 = vadd.f32 %v5123_v3, %v5117_v16  ;;  %v5071_v24 = vadd.f32 %v5070_v23, %v5064_v37 }
 0x4e4   :  { %v5125_v26 = vrot.slane %v5124_v32, 4  ;;  %v5072_v8 = vrot.slane %v5071_v24, 4 }
 0x4e5   :  { %v5323_v22 = vpop.xlane.xlu1 %5322  ;;  %v5220_v49 = vpop.xlane.xlu0 %5219 }
 0x4e6   :  { %v5126_v34 = vadd.f32 %v5125_v26, %v5124_v32  ;;  %v5073_v30 = vadd.f32 %v5072_v8, %v5071_v24  ;;  %v9672_v13 = vadd.f32 %v5333_v54, %v5323_v22  ;;  %v5229_v47 = vadd.f32 %v5228_v28, %v5220_v49 }
 0x4e8   :  { %v5127_v46 = vrot.slane %v5126_v34, 2  ;;  %v5074_v53 = vrot.slane %v5073_v30, 2 }
 0x4e9   :  { %v5529_v31 = vpop.xlane.xlu1 %5528  ;;  %v5426_v20 = vpop.xlane.xlu0 %5425 }
 0x4ea   :  { %v5128_v56 = vadd.f32 %v5127_v46, %v5126_v34  ;;  %v5075_v0 = vadd.f32 %v5074_v53, %v5073_v30  ;;  %v9674_v40 = vadd.f32 %v5543_v62, %v5529_v31  ;;  %v9676_v6 = vadd.f32 %v5438_v35, %v5426_v20 }
 0x4ec   :  { %v5129_v11 = vrot.slane %v5128_v56, 1  ;;  %v5076_v57 = vrot.slane %v5075_v0, 1 }
 0x4ed   :  { %v4586_v50 = vpop.xlane.xlu1 %4585  ;;  %v4435_v1 = vpop.xlane.xlu0 %4434 }
 0x4ee   :  { %v5130_v19 = vadd.f32 %v5129_v11, %v5128_v56  ;;  %v5077_v33 = vadd.f32 %v5076_v57, %v5075_v0  ;;  %v9678_v25 = vadd.f32 %v4596_v43, %v4586_v50  ;;  %v4444_v4 = vadd.f32 %v4443_v18, %v4435_v1 }
 0x4f0   :  { %v5555_v60 = vsel %vm4991_vm2, %v5077_v33, %v5130_v19 }
 0x4f1   :  { %v4888_v3 = vpop.xlane.xlu1 %4887  ;;  %v4737_v23 = vpop.xlane.xlu0 %4736 }
 0x4f2   :  { %v9681_v48 = vadd.f32 %v4902_v52, %v4888_v3  ;;  %v9683_v42 = vadd.f32 %v4749_v61, %v4737_v23 }
 0x4f5   :  { %v5273_v54 = vpop.xlane.xlu1 %5272  ;;  %v5170_v28 = vpop.xlane.xlu0 %5169 }
 0x4f6   :  { %v5282_v59 = vadd.f32 %v5281_v39, %v5273_v54  ;;  %v5177_v36 = vadd.f32 %v5176_v55, %v5170_v28 }
 0x4f8   :  { %v5178_v62 = vrot.slane %v5177_v36, 4 }
 0x4f9   :  { %v5479_v35 = vpop.xlane.xlu1 %5478  ;;  %v5376_v63 = vpop.xlane.xlu0 %5375 }
 0x4fa   :  { %v5179_v27 = vadd.f32 %v5178_v62, %v5177_v36  ;;  %v9685_v14 = vadd.f32 %v5491_v9, %v5479_v35  ;;  %v9687_v43 = vadd.f32 %v5386_v38, %v5376_v63 }
 0x4fc   :  { %v5180_v18 = vrot.slane %v5179_v27, 2 }
 0x4fd   :  { %v4663_v10 = vpop.xlane.xlu1 %4662  ;;  %v4512_v15 = vpop.xlane.xlu0 %4511 }
 0x4fe   :  { %v5181_v12 = vadd.f32 %v5180_v18, %v5179_v27  ;;  %v9689_v52 = vadd.f32 %v4673_v21, %v4663_v10  ;;  %v4521_v61 = vadd.f32 %v4520_v17, %v4512_v15 }
 0x500   :  { %v5182_v44 = vrot.slane %v5181_v12, 1 }
 0x501   :  { %v4965_v7 = vpop.xlane.xlu1 %4964  ;;  %v4814_v39 = vpop.xlane.xlu0 %4813 }
 0x502   :  { %v5183_v55 = vadd.f32 %v5182_v44, %v5181_v12  ;;  %v9691_v29 = vadd.f32 %v4979_v51, %v4965_v7  ;;  %v9693_v2 = vadd.f32 %v4826_v41, %v4814_v39 }
 0x504   :  { %v5556_v9 = vsel %vm4993_vm3, %v5555_v60, %v5183_v55 }
 0x505   :  { %v5326_v38 = vpop.xlane.xlu1 %5325  ;;  %v5223_v58 = vpop.xlane.xlu0 %5222 }
 0x506   :  { %v5230_v5 = vadd.f32 %v5229_v47, %v5223_v58 }
 0x508   :  { %v5231_v16 = vrot.slane %v5230_v5, 4 }
 0x509   :  { %v9696_v37 = vpop.xlane.xlu1 %5531  ;;  %v9698_v21 = vpop.xlane.xlu0 %5428 }
 0x50a   :  { %v5232_v17 = vadd.f32 %v5231_v16, %v5230_v5 }
 0x50c   :  { %v5233_v32 = vrot.slane %v5232_v17, 2 }
 0x50d   :  { %v4589_v24 = vpop.xlane.xlu1 %4588  ;;  %v4438_v26 = vpop.xlane.xlu0 %4437 }
 0x50e   :  { %v5234_v8 = vadd.f32 %v5233_v32, %v5232_v17  ;;  %v4445_v22 = vadd.f32 %v4444_v4, %v4438_v26 }
 0x510   :  { %v5235_v51 = vrot.slane %v5234_v8, 1  ;;  %v4446_v49 = vrot.slane %v4445_v22, 4 }
 0x511   :  { %v9700_v41 = vpop.xlane.xlu1 %4890  ;;  %v9702_v34 = vpop.xlane.xlu0 %4739 }
 0x512   :  { %v5236_v30 = vadd.f32 %v5235_v51, %v5234_v8  ;;  %v4447_v47 = vadd.f32 %v4446_v49, %v4445_v22 }
 0x514   :  { %v5557_v46 = vsel %vm4995_vm4, %v5556_v9, %v5236_v30  ;;  %v4448_v53 = vrot.slane %v4447_v47, 2 }
 0x515   :  { %v5379_v31 = vpop.xlane.xlu1 %5378  ;;  %v5276_v20 = vpop.xlane.xlu0 %5275 }
 0x516   :  { %v4449_v56 = vadd.f32 %v4448_v53, %v4447_v47  ;;  %v5283_v0 = vadd.f32 %v5282_v59, %v5276_v20  ;;  %v5335_v59 = vadd.f32 %v9672_v13, %v5326_v38  ;;  %v4598_v13 = vadd.f32 %v9678_v25, %v4589_v24 }
 0x517   :  { %v5388_v26 = vadd.f32 %v9687_v43, %v5379_v31 }
 0x518   :  { %v4450_v11 = vrot.slane %v4449_v56, 1  ;;  %v5284_v57 = vrot.slane %v5283_v0, 4 }
 0x519   :  { %v4515_v50 = vpop.xlane.xlu1 %4514  ;;  %v9705_v1 = vpop.xlane.xlu0 %5481 }
 0x51a   :  { %v4451_v19 = vadd.f32 %v4450_v11, %v4449_v56  ;;  %v5285_v33 = vadd.f32 %v5284_v57, %v5283_v0  ;;  %v4522_v4 = vadd.f32 %v4521_v61, %v4515_v50 }
 0x51c   :  { %v4994_v60 = vsel %vm4993_vm3, %v9167_v45, %v4451_v19  ;;  %v5286_v3 = vrot.slane %v5285_v33, 2  ;;  %v4523_v23 = vrot.slane %v4522_v4, 4 }
 0x51d   :  { %v9709_v54 = vpop.xlane.xlu1 %4816  ;;  %v4666_v28 = vpop.xlane.xlu0 %4665 }
 0x51e   :  { %v5287_v36 = vadd.f32 %v5286_v3, %v5285_v33  ;;  %v4524_v62 = vadd.f32 %v4523_v23, %v4522_v4  ;;  %v4675_v25 = vadd.f32 %v9689_v52, %v4666_v28 }
 0x520   :  { %v5288_v35 = vrot.slane %v5287_v36, 1  ;;  %v4525_v63 = vrot.slane %v4524_v62, 2 }
 0x521   :  { %v5329_v27 = vpop.xlane.xlu1 %5328  ;;  %v9712_v18 = vpop.xlane.xlu0 %4967 }
 0x522   :  { %v5289_v10 = vadd.f32 %v5288_v35, %v5287_v36  ;;  %v4526_v15 = vadd.f32 %v4525_v63, %v4524_v62  ;;  %v5336_v12 = vadd.f32 %v5335_v59, %v5329_v27  ;;  %v4751_v27 = vadd.f32 %v9683_v42, %v9702_v34 }
 0x524   :  { %v5558_v45 = vsel %vm4997_vm5, %v5557_v46, %v5289_v10  ;;  %v4527_v61 = vrot.slane %v4526_v15, 1  ;;  %v5337_v44 = vrot.slane %v5336_v12, 4 }
 0x525   :  { %v9715_v7 = vpop.xlane.xlu1 %5534  ;;  %v5432_v39 = vpop.xlane.xlu0 %5431 }
 0x526   :  { %v4528_v55 = vadd.f32 %v4527_v61, %v4526_v15  ;;  %v5338_v9 = vadd.f32 %v5337_v44, %v5336_v12  ;;  %v5493_v44 = vadd.f32 %v9685_v14, %v9705_v1 }
 0x528   :  { %v4996_v38 = vsel %vm4995_vm4, %v4994_v60, %v4528_v55  ;;  %v5339_v58 = vrot.slane %v5338_v9, 2  ;;  %v5440_v60 = vadd.f32 %v9676_v6, %v9698_v21 }
 0x529   :  { %v4743_v5 = vpop.xlane.xlu1 %4742  ;;  %v4592_v16 = vpop.xlane.xlu0 %4591 }
 0x52a   :  { %v5340_v17 = vadd.f32 %v5339_v58, %v5338_v9  ;;  %v4599_v32 = vadd.f32 %v4598_v13, %v4592_v16  ;;  %v5441_v28 = vadd.f32 %v5440_v60, %v5432_v39  ;;  %v4828_v9 = vadd.f32 %v9693_v2, %v9709_v54 }
 0x52b   :  { %v4981_v2 = vadd.f32 %v9691_v29, %v9712_v18 }
 0x52c   :  { %v5341_v8 = vrot.slane %v5340_v17, 1  ;;  %v4600_v22 = vrot.slane %v4599_v32, 4 }
 0x52d   :  { %v5382_v51 = vpop.xlane.xlu1 %5381  ;;  %v9720_v49 = vpop.xlane.xlu0 %4893 }
 0x52e   :  { %v5342_v30 = vadd.f32 %v5341_v8, %v5340_v17  ;;  %v4601_v47 = vadd.f32 %v4600_v22, %v4599_v32  ;;  %v5389_v46 = vadd.f32 %v5388_v26, %v5382_v51  ;;  %v5545_v32 = vadd.f32 %v9674_v40, %v9696_v37 }
 0x530   :  { %v5559_v24 = vsel %vm4999_vm6, %v5558_v45, %v5342_v30  ;;  %v4602_v53 = vrot.slane %v4601_v47, 2  ;;  %v5390_v20 = vrot.slane %v5389_v46, 4  ;;  %v4752_v45 = vadd.f32 %v4751_v27, %v4743_v5 }
 0x531   :  { %v4669_v56 = vpop.xlane.xlu1 %4668  ;;  %v5485_v0 = vpop.xlane.xlu0 %5484  ;;  %v5546_v54 = vadd.f32 %v5545_v32, %v9715_v7 }
 0x532   :  { %v4603_v11 = vadd.f32 %v4602_v53, %v4601_v47  ;;  %v5391_v57 = vadd.f32 %v5390_v20, %v5389_v46  ;;  %v4676_v43 = vadd.f32 %v4675_v25, %v4669_v56  ;;  %v5494_v42 = vadd.f32 %v5493_v44, %v5485_v0 }
 0x534   :  { %v4604_v31 = vrot.slane %v4603_v11, 1  ;;  %v5392_v50 = vrot.slane %v5391_v57, 2  ;;  %v4677_v19 = vrot.slane %v4676_v43, 4 }
 0x535   :  { %v4971_v33 = vpop.xlane.xlu1 %4970  ;;  %v4820_v4 = vpop.xlane.xlu0 %4819 }
 0x536   :  { %v4605_v3 = vadd.f32 %v4604_v31, %v4603_v11  ;;  %v5393_v23 = vadd.f32 %v5392_v50, %v5391_v57  ;;  %v4678_v52 = vadd.f32 %v4677_v19, %v4676_v43  ;;  %v4829_v16 = vadd.f32 %v4828_v9, %v4820_v4 }
 0x537   :  { %v4982_v53 = vadd.f32 %v4981_v2, %v4971_v33 }
 0x538   :  { %v4998_v36 = vsel %vm4997_vm5, %v4996_v38, %v4605_v3  ;;  %v5394_v62 = vrot.slane %v5393_v23, 1  ;;  %v4679_v59 = vrot.slane %v4678_v52, 2 }
 0x539   :  { %v5538_v35 = vpop.xlane.xlu1 %5537  ;;  %v5435_v63 = vpop.xlane.xlu0 %5434 }
 0x53a   :  { %v5395_v10 = vadd.f32 %v5394_v62, %v5393_v23  ;;  %v4680_v15 = vadd.f32 %v4679_v59, %v4678_v52  ;;  %v5442_v12 = vadd.f32 %v5441_v28, %v5435_v63  ;;  %v5547_v40 = vadd.f32 %v5546_v54, %v5538_v35 }
 0x53c   :  { %v5560_v6 = vsel %vm5001_vm7, %v5559_v24, %v5395_v10  ;;  %v4681_v21 = vrot.slane %v4680_v15, 1  ;;  %v5443_v61 = vrot.slane %v5442_v12, 4  ;;  %v4904_v24 = vadd.f32 %v9681_v48, %v9700_v41 }
 0x53d   :  { %v4897_v39 = vpop.xlane.xlu1 %4896  ;;  %v4746_v55 = vpop.xlane.xlu0 %4745 }
 0x53e   :  { %v4682_v13 = vadd.f32 %v4681_v21, %v4680_v15  ;;  %v5444_v38 = vadd.f32 %v5443_v61, %v5442_v12  ;;  %v4753_v58 = vadd.f32 %v4752_v45, %v4746_v55  ;;  %v4905_v29 = vadd.f32 %v4904_v24, %v9720_v49 }
 0x540   :  { %v5000_v34 = vsel %vm4999_vm6, %v4998_v36, %v4682_v13  ;;  %v5445_v5 = vrot.slane %v5444_v38, 2  ;;  %v4754_v17 = vrot.slane %v4753_v58, 4  ;;  %v4906_v4 = vadd.f32 %v4905_v29, %v4897_v39 }
 0x541   :  { %v4823_v26 = vpop.xlane.xlu1 %4822  ;;  %v5488_v8 = vpop.xlane.xlu0 %5487 }
 0x542   :  { %v5446_v14 = vadd.f32 %v5445_v5, %v5444_v38  ;;  %v4755_v1 = vadd.f32 %v4754_v17, %v4753_v58  ;;  %v4830_v22 = vadd.f32 %v4829_v16, %v4823_v26  ;;  %v5495_v51 = vadd.f32 %v5494_v42, %v5488_v8  ;;  %v6058_v26 = vld [vmem:[%s9761_s4] ss:$0 sm:$0xff]  ;;  %s6448_s4 = scalar_lea.vmem %s5597_s5, 32 }
 0x543   :  { %p6449_p0 = scmp.ne.s32.totalorder %s5597_s5, %s6448_s4  ;;  %p6454_p2 = scmp.lt.s32.totalorder %s6448_s4, %s6448_s4 }
 0x544   :  { %v5447_v30 = vrot.slane %v5446_v14, 1  ;;  %v4756_v47 = vrot.slane %v4755_v1, 2  ;;  %v4831_v46 = vrot.slane %v4830_v22, 4  ;;  %v5496_v25 = vrot.slane %v5495_v51, 4 }
 0x545   :  { %v5541_v37 = vpop.xlane.xlu1 %5540  ;;  %v4974_v20 = vpop.xlane.xlu0 %4973  ;;  %p6455_p3 = por %p6454_p2, %p6453_p1 }
 0x546   :  { %v5448_v56 = vadd.f32 %v5447_v30, %v5446_v14  ;;  %v4757_v0 = vadd.f32 %v4756_v47, %v4755_v1  ;;  %v4832_v11 = vadd.f32 %v4831_v46, %v4830_v22  ;;  %v5497_v57 = vadd.f32 %v5496_v25, %v5495_v51 }
 0x547   :  { %v5548_v18 = vadd.f32 %v5547_v40, %v5541_v37  ;;  %v4983_v7 = vadd.f32 %v4982_v53, %v4974_v20  ;;  %p6456_p4 = pnand %p6455_p3, %p6449_p0 }
 0x548   :  { %v5561_v43 = vsel %vm5003_vm8, %v5560_v6, %v5448_v56  ;;  %v4758_v31 = vrot.slane %v4757_v0, 1  ;;  %v4833_v50 = vrot.slane %v4832_v11, 2  ;;  %v5498_v19 = vrot.slane %v5497_v57, 2 }
 0x549   :  { %v5549_v48 = vrot.slane %v5548_v18, 4  ;;  %v4977_v41 = vpop.xlane.xlu1 %4976  ;;  %v4900_v33 = vpop.xlane.xlu0 %4899 }
 0x54a   :  { %v4759_v60 = vadd.f32 %v4758_v31, %v4757_v0  ;;  %v4834_v3 = vadd.f32 %v4833_v50, %v4832_v11  ;;  %v5499_v23 = vadd.f32 %v5498_v19, %v5497_v57  ;;  %v4984_v52 = vadd.f32 %v4983_v7, %v4977_v41 }
 0x54b   :  { %v5550_v28 = vadd.f32 %v5549_v48, %v5548_v18  ;;  %v4907_v36 = vadd.f32 %v4906_v4, %v4900_v33 }
 0x54c   :  { %v5002_v62 = vsel %vm5001_vm7, %v5000_v34, %v4759_v60  ;;  %v4835_v49 = vrot.slane %v4834_v3, 1  ;;  %v5500_v59 = vrot.slane %v5499_v23, 1  ;;  %v4985_v35 = vrot.slane %v4984_v52, 4 }
 0x54d   :  { %v5551_v63 = vrot.slane %v5550_v28, 2  ;;  %v4908_v27 = vrot.slane %v4907_v36, 4 }
 0x54e   :  { %v4836_v10 = vadd.f32 %v4835_v49, %v4834_v3  ;;  %v5501_v15 = vadd.f32 %v5500_v59, %v5499_v23  ;;  %v4986_v12 = vadd.f32 %v4985_v35, %v4984_v52 }
 0x54f   :  { %v5552_v45 = vadd.f32 %v5551_v63, %v5550_v28  ;;  %v4909_v6 = vadd.f32 %v4908_v27, %v4907_v36 }
 0x550   :  { %v5004_v21 = vsel %vm5003_vm8, %v5002_v62, %v4836_v10  ;;  %v5562_v61 = vsel %vm5005_vm9, %v5561_v43, %v5501_v15  ;;  %v4987_v44 = vrot.slane %v4986_v12, 2 }
 0x551   :  { %v5553_v39 = vrot.slane %v5552_v45, 1  ;;  %v4910_v55 = vrot.slane %v4909_v6, 2 }
 0x552   :  { %v4988_v9 = vadd.f32 %v4987_v44, %v4986_v12 }
 0x553   :  { %v5554_v13 = vadd.f32 %v5553_v39, %v5552_v45  ;;  %v4911_v38 = vadd.f32 %v4910_v55, %v4909_v6 }
 0x554   :  { %v4989_v58 = vrot.slane %v4988_v9, 1 }
 0x555   :  { %v4912_v42 = vrot.slane %v4911_v38, 1  ;;  %v5563_v34 = vsel %vm5007_vm10, %v5562_v61, %v5554_v13 }
 0x556   :  { %v4990_v16 = vadd.f32 %v4989_v58, %v4988_v9  ;;  %v5565_v32 = vrot.slane %v5563_v34, 7 }
 0x557   :  { %v4913_v5 = vadd.f32 %v4912_v42, %v4911_v38 }
 0x559   :  { %v5006_v17 = vsel %vm5005_vm9, %v5004_v21, %v4913_v5 }
 0x55a   :  { %v5008_v8 = vsel %vm5007_vm10, %v5006_v17, %v4990_v16 }
 0x55b   :  { %v5568_v14 = vsel %vm5567_vm11, %v5008_v8, %v5565_v32 }
 0x55c   :  { %v5576_v1 = vadd.f32 %v6058_v26, %v5568_v14 }
 0x55e   :  { %v5578_v22 = vsel %vm5577_vm12, %v5576_v1, -inf }
 0x55f   :  { %5579 = vmax.xlane.f32.xlu0 %v5578_v22 }
 0x5e8   :  { %v5580_v51 = vpop.xlane.xlu0 %5579 }
 0x5e9   :  { %v5581_v2 = vsub.f32 %v5576_v1, %v5580_v51 }
 0x5eb   :  { %v5582_v54 = vmul.f32 1.442695, %v5581_v2 }
 0x5ed   :  { %6444 = vpow2.f32 %v5582_v54 }
 0x5fa   :  { %v6445_v30 = vpop.eup %6444 }
 0x5fb   :  { %v5584_v47 = vsel %vm5577_vm12, %v6445_v30, 0.0 }
 0x5fc   :  { %5585 = vadd.xlane.f32.xlu1 %v5584_v47 }
 0x685   :  { %v5586_v46 = vpop.xlane.xlu1 %5585 }
 0x686   :  { %6446 = vrcp.f32 %v5586_v46 }
 0x693   :  { %v6447_v25 = vpop.eup %6446 }
 0x694   :  { %v5588_v24 = vmul.f32 %v6447_v25, %v6445_v30 }
 0x696   :  { %5589 = vst.msk [vmem:[#allocation8] sm:$0x3] %vm5577_vm12, %v5588_v24 }
 0x697   :  { %6459 = shalt.err (!%p6456_p4)
}
 0x698   :  { %5599 = dma.vmem_to_hbm [thread:$0]  %s5597_s5, 32, %s9764_s7, [#allocation9]  }
 0x699   :  { %6472 = dma.done.wait [#allocation9], 32  }
 0x69a   :  { %6473 = vsyncadd [#allocation9], 4294967264 }
 0x69b   :  { %5603 = vsyncpa [#allocation9], 1 }
 0x69c   :  { %5604 = vsyncmov [#allocation7] }
 0x69f   :  { %s5605_s23 = vpop.sfrf %5604 }
 0x6a0   :  { %p6059_p5 = scmp.ne.s32.totalorder %s5605_s23, 0 }
 0x6a2   :  { %5609 = shalt.err (%p6059_p5)  }
 0x6a3   :  { %5611 = vsyncmov [#allocation7 + $0x1] }
 0x6a6   :  { %s5612_s24 = vpop.sfrf %5611 }
 0x6a7   :  { %p6060_p6 = scmp.ne.s32.totalorder %s5612_s24, 0 }
 0x6a9   :  { %5616 = shalt.err (%p6060_p6)  }

</bundles_post_ra>
